<compile_context>
chip_gen: v7x
topology: tpu7x:2x2x1
jax: 0.10.0
libtpu: 0.0.40
codegen_flags: <defaults>
</compile_context>

<pallas_src>
import functools

import jax
import jax.numpy as jnp
from jax.experimental import pallas as pl
from jax.experimental.pallas import tpu as pltpu


def _round_up(x, m):
    return ((x + m - 1) // m) * m


def moe_kernel(x_ref, w_ref, b_ref, out_ref, *, num_experts, gate_lanes):
    """Fused gate + experts MoE tile.

    x_ref   : (TB, D)                     bf16
    w_ref   : (D, gate_lanes + E*C_pad)   bf16  [gate cols | expert cols]
    b_ref   : (1, gate_lanes + E*C_pad)   f32   (padded gate lanes = -1e30)
    out_ref : (TB, C_pad)                 f32
    """
    c_pad = out_ref.shape[-1]

    # One MXU call covers the gate and all experts (f32 accumulation).
    fused = jnp.dot(x_ref[...], w_ref[...], preferred_element_type=jnp.float32)
    fused = fused + b_ref[...]

    # Softmax over the narrow gate segment only (128 lanes, f32 math).
    # Padded gate lanes carry a -1e30 bias -> exp() == 0, so the lane sum is
    # exactly the sum over the real experts.
    gate = fused[:, :gate_lanes]                       # (TB, gate_lanes)
    m = jnp.max(gate, axis=-1, keepdims=True)
    p = jnp.exp(gate - m)
    denom = jnp.sum(p, axis=-1, keepdims=True)
    gate_w = p * pl.reciprocal(denom, approx=True)     # (TB, gate_lanes)

    # Weighted sum over experts: per-expert lane-broadcast of gate_w[:, e]
    # times a lane-aligned 128-wide expert slice; only (TB, c_pad) slices
    # stay live (no full-width f32 intermediates beyond `fused`).
    acc = gate_w[:, 0:1] * fused[:, gate_lanes:gate_lanes + c_pad]
    for e in range(1, num_experts):
        off = gate_lanes + e * c_pad
        acc = acc + gate_w[:, e:e + 1] * fused[:, off:off + c_pad]

    out_ref[...] = acc.astype(out_ref.dtype)


def moe_forward(x, wg, bg, we, be, *, block_b=512):
    """MoE forward.

    x  : (B, D) float32
    wg : (D, E)       gate.weight.T
    bg : (E,)         gate.bias
    we : (E, D, C)    experts[e].weight.T
    be : (E, C)       experts[e].bias
    """
    B, D = x.shape
    E, d2, C = we.shape
    assert d2 == D and wg.shape == (D, E)

    c_pad = max(128, _round_up(C, 128))     # lane-dense class dim
    g_pad = max(128, _round_up(E, 128))     # narrow gate segment (de-replicated)

    # Batch tile: multiple of 8, no larger than needed, default 512.
    tb = max(8, min(block_b, _round_up(B, 8)))
    tb = _round_up(tb, 8)
    b_pad = pl.cdiv(B, tb) * tb

    # ---- wrapper-side weight fusion (done once, plain XLA) ----
    # Gate segment: zero-padded weight columns, -1e30 bias on padded lanes so
    # the in-kernel softmax ignores them exactly.
    wg_p = jnp.pad(wg, ((0, 0), (0, g_pad - E)))                         # (D, g_pad)
    bg_p = jnp.pad(bg.reshape(E), (0, g_pad - E), constant_values=-1e30)  # (g_pad,)

    # Expert segment: expert e's classes occupy lanes [e*c_pad, (e+1)*c_pad).
    we_p = jnp.pad(we, ((0, 0), (0, 0), (0, c_pad - C)))                 # (E, D, c_pad)
    be_p = jnp.pad(be, ((0, 0), (0, c_pad - C)))                         # (E, c_pad)
    we_flat = jnp.transpose(we_p, (1, 0, 2)).reshape(D, E * c_pad)
    be_flat = be_p.reshape(E * c_pad)

    w_fused = jnp.concatenate([wg_p, we_flat], axis=1).astype(jnp.bfloat16)
    b_fused = jnp.concatenate([bg_p, be_flat])[None, :].astype(jnp.float32)
    n_total = g_pad + E * c_pad

    x_p = jnp.pad(x, ((0, b_pad - B), (0, 0))).astype(jnp.bfloat16)

    # ---- VMEM budget (weights resident, x/out double-buffered, f32 interm) ----
    weight_bytes = D * n_total * 2
    bias_bytes = n_total * 4
    x_tile_bytes = tb * D * 2
    out_tile_bytes = tb * c_pad * 4
    interm_bytes = tb * n_total * 4 * 2      # f32 matmul result + epilogue slack
    budget = 2 * (weight_bytes + bias_bytes + x_tile_bytes + out_tile_bytes) + interm_bytes
    vmem_limit = int(min(max(2 * budget + (8 << 20), 32 << 20), 64 << 20))

    cost = pl.CostEstimate(
        flops=2 * b_pad * D * n_total + 4 * b_pad * n_total,
        transcendentals=b_pad * g_pad,
        bytes_accessed=(x_p.size * 2 + w_fused.size * 2
                        + b_fused.size * 4 + b_pad * c_pad * 4),
    )

    kernel = functools.partial(moe_kernel, num_experts=E, gate_lanes=g_pad)

    out = pl.pallas_call(
        kernel,
        out_shape=jax.ShapeDtypeStruct((b_pad, c_pad), jnp.float32),
        grid_spec=pltpu.PrefetchScalarGridSpec(
            num_scalar_prefetch=0,
            grid=(b_pad // tb,),
            in_specs=[
                pl.BlockSpec((tb, D), lambda i: (i, 0)),        # x batch tile
                pl.BlockSpec((D, n_total), lambda i: (0, 0)),   # fused weights (resident)
                pl.BlockSpec((1, n_total), lambda i: (0, 0)),   # fused bias (resident)
            ],
            out_specs=pl.BlockSpec((tb, c_pad), lambda i: (i, 0)),
        ),
        compiler_params=pltpu.CompilerParams(
            dimension_semantics=("parallel",),   # batch tiles -> both TCs on v7x
            vmem_limit_bytes=vmem_limit,
        ),
        cost_estimate=cost,
    )(x_p, w_fused, b_fused)

    return out[:B, :C]


def moe_reference(x, wg, bg, we, be):
    gate = x @ wg + bg                                        # (B, E)
    gate_w = jax.nn.softmax(gate, axis=1)
    expert_outputs = jnp.einsum("bd,edc->bec", x, we) + be[None, :, :]
    return jnp.sum(gate_w[:, :, None] * expert_outputs, axis=1)


if __name__ == "__main__":
    # Small shapes consistent with the module's forward.  B chosen so the
    # batch grid has 2 tiles of block_b=512 (pipelining + megacore sharding).
    B, D, E, C = 1024, 32, 4, 16

    key = jax.random.PRNGKey(0)
    kx, kwg, kbg, kwe, kbe = jax.random.split(key, 5)

    x = jax.random.normal(kx, (B, D), dtype=jnp.float32)
    # PyTorch Linear parameters, pre-transposed to (in, out).
    wg = jax.random.normal(kwg, (D, E), dtype=jnp.float32) * 0.1     # gate.weight.T
    bg = jax.random.normal(kbg, (E,), dtype=jnp.float32) * 0.1       # gate.bias
    we = jax.random.normal(kwe, (E, D, C), dtype=jnp.float32) * 0.1  # experts[e].weight.T
    be = jax.random.normal(kbe, (E, C), dtype=jnp.float32) * 0.1     # experts[e].bias

    out = moe_forward(x, wg, bg, we, be, block_b=512)
    jax.block_until_ready(out)

    ref = moe_reference(x, wg, bg, we, be)
    assert out.shape == (B, C)
    # bf16 MXU operands + approx reciprocal -> slightly loosened tolerance.
    assert jnp.allclose(out, ref, atol=2e-2, rtol=2e-2), "mismatch vs reference"

    print("KERNEL_OK")
</pallas_src>

<mosaic_0001>
module attributes {stable_mosaic.version = 11 : i64} {
  func.func @moe_kernel(%arg0: i32, %arg1: memref<512x32xbf16, #tpu.memory_space<vmem>>, %arg2: memref<32x640xbf16, #tpu.memory_space<vmem>>, %arg3: memref<1x640xf32, #tpu.memory_space<vmem>>, %arg4: memref<512x128xf32, #tpu.memory_space<vmem>>) attributes {dimension_semantics = [#tpu.dimension_semantics<parallel>], iteration_bounds = array<i64: 2>, scalar_prefetch = 0 : i64, scratch_operands = 0 : i64, tpu.core_type = #tpu.core_type<tc>, window_params = [{transform_indices = @transform_0, window_bounds = array<i64: 512, 32>}, {pipeline_mode = #tpu.pipeline_mode<synchronous>, transform_indices = @transform_1, window_bounds = array<i64: 32, 640>}, {pipeline_mode = #tpu.pipeline_mode<synchronous>, transform_indices = @transform_2, window_bounds = array<i64: 1, 640>}, {transform_indices = @transform_3, window_bounds = array<i64: 512, 128>}]} {
    %c0 = arith.constant 0 : index
    %c0_0 = arith.constant 0 : index
    %0 = vector.load %arg1[%c0, %c0_0] : memref<512x32xbf16, #tpu.memory_space<vmem>>, vector<512x32xbf16>
    %c0_1 = arith.constant 0 : index
    %c0_2 = arith.constant 0 : index
    %1 = vector.load %arg2[%c0_1, %c0_2] : memref<32x640xbf16, #tpu.memory_space<vmem>>, vector<32x640xbf16>
    %cst = arith.constant dense<0.000000e+00> : vector<512x640xf32>
    %2 = tpu.matmul %0, %1, %cst {dimension_numbers = #tpu.dot_dimension_numbers<[1], [0], [0], [1], [0, 0, 1, 1], [], []>} : vector<512x32xbf16>, vector<32x640xbf16>, vector<512x640xf32> -> vector<512x640xf32>
    %c0_3 = arith.constant 0 : index
    %c0_4 = arith.constant 0 : index
    %3 = vector.load %arg3[%c0_3, %c0_4] : memref<1x640xf32, #tpu.memory_space<vmem>>, vector<1x640xf32>
    %4 = vector.broadcast %3 : vector<1x640xf32> to vector<512x640xf32>
    %5 = arith.addf %2, %4 : vector<512x640xf32>
    %6 = vector.extract_strided_slice %5 {offsets = [0, 0], sizes = [512, 128], strides = [1, 1]} : vector<512x640xf32> to vector<512x128xf32>
    %cst_5 = arith.constant dense<0xFF800000> : vector<512xf32>
    %7 = vector.multi_reduction <maximumf>, %6, %cst_5 [1] : vector<512x128xf32> to vector<512xf32>
    %8 = vector.shape_cast %7 : vector<512xf32> to vector<512x1xf32>
    %9 = vector.broadcast %8 : vector<512x1xf32> to vector<512x128xf32>
    %10 = arith.subf %6, %9 : vector<512x128xf32>
    %11 = math.exp %10 : vector<512x128xf32>
    %cst_6 = arith.constant dense<0.000000e+00> : vector<512xf32>
    %12 = vector.multi_reduction <add>, %11, %cst_6 [1] : vector<512x128xf32> to vector<512xf32>
    %13 = vector.shape_cast %12 : vector<512xf32> to vector<512x1xf32>
    %14 = tpu.reciprocal %13 {approx = true} : vector<512x1xf32> -> vector<512x1xf32>
    %15 = vector.broadcast %14 : vector<512x1xf32> to vector<512x128xf32>
    %16 = arith.mulf %11, %15 : vector<512x128xf32>
    %17 = vector.extract_strided_slice %16 {offsets = [0, 0], sizes = [512, 1], strides = [1, 1]} : vector<512x128xf32> to vector<512x1xf32>
    %18 = vector.extract_strided_slice %5 {offsets = [0, 128], sizes = [512, 128], strides = [1, 1]} : vector<512x640xf32> to vector<512x128xf32>
    %19 = vector.broadcast %17 : vector<512x1xf32> to vector<512x128xf32>
    %20 = arith.mulf %19, %18 : vector<512x128xf32>
    %21 = vector.extract_strided_slice %16 {offsets = [0, 1], sizes = [512, 1], strides = [1, 1]} : vector<512x128xf32> to vector<512x1xf32>
    %22 = vector.extract_strided_slice %5 {offsets = [0, 256], sizes = [512, 128], strides = [1, 1]} : vector<512x640xf32> to vector<512x128xf32>
    %23 = vector.broadcast %21 : vector<512x1xf32> to vector<512x128xf32>
    %24 = arith.mulf %23, %22 : vector<512x128xf32>
    %25 = arith.addf %20, %24 : vector<512x128xf32>
    %26 = vector.extract_strided_slice %16 {offsets = [0, 2], sizes = [512, 1], strides = [1, 1]} : vector<512x128xf32> to vector<512x1xf32>
    %27 = vector.extract_strided_slice %5 {offsets = [0, 384], sizes = [512, 128], strides = [1, 1]} : vector<512x640xf32> to vector<512x128xf32>
    %28 = vector.broadcast %26 : vector<512x1xf32> to vector<512x128xf32>
    %29 = arith.mulf %28, %27 : vector<512x128xf32>
    %30 = arith.addf %25, %29 : vector<512x128xf32>
    %31 = vector.extract_strided_slice %16 {offsets = [0, 3], sizes = [512, 1], strides = [1, 1]} : vector<512x128xf32> to vector<512x1xf32>
    %32 = vector.extract_strided_slice %5 {offsets = [0, 512], sizes = [512, 128], strides = [1, 1]} : vector<512x640xf32> to vector<512x128xf32>
    %33 = vector.broadcast %31 : vector<512x1xf32> to vector<512x128xf32>
    %34 = arith.mulf %33, %32 : vector<512x128xf32>
    %35 = arith.addf %30, %34 : vector<512x128xf32>
    %c0_7 = arith.constant 0 : index
    %c0_8 = arith.constant 0 : index
    %36 = vector.load %arg4[%c0_7, %c0_8] : memref<512x128xf32, #tpu.memory_space<vmem>>, vector<512x128xf32>
    tpu.vector_store %arg4[%c0_7, %c0_8], %35 {strides = array<i32>} : memref<512x128xf32, #tpu.memory_space<vmem>>, vector<512x128xf32>,
    return
  }
  func.func @transform_0(%arg0: i32) -> (i32, i32) {
    %c0_i32 = arith.constant 0 : i32
    %c0_i32_0 = arith.constant 0 : i32
    return %arg0, %c0_i32 : i32, i32
  }
  func.func @transform_1(%arg0: i32) -> (i32, i32) {
    %c0_i32 = arith.constant 0 : i32
    %c0_i32_0 = arith.constant 0 : i32
    %c0_i32_1 = arith.constant 0 : i32
    return %c0_i32, %c0_i32_0 : i32, i32
  }
  func.func @transform_2(%arg0: i32) -> (i32, i32) {
    %c0_i32 = arith.constant 0 : i32
    %c0_i32_0 = arith.constant 0 : i32
    %c0_i32_1 = arith.constant 0 : i32
    return %c0_i32, %c0_i32_0 : i32, i32
  }
  func.func @transform_3(%arg0: i32) -> (i32, i32) {
    %c0_i32 = arith.constant 0 : i32
    %c0_i32_0 = arith.constant 0 : i32
    return %arg0, %c0_i32 : i32, i32
  }
}

</mosaic_0001>

<bundles_post_ra>
// kernel: tpu_custom_call.1
= control target key start
LH: loop header
LB: loop body
LE: loop exit
PB: predicated region body
PF: predicated region fallthrough
CT: control target
= control target key end

     0   :  { %8 = vsyncpa [#allocation3], 0  ;;  %s7989_s0 = inlined_call_operand.vmem [shape: bf16[1024,32], index: 0, kind: input, shape index: {}]   ;;  %s7990_s1 = inlined_call_operand.vmem [shape: bf16[32,640], index: 1, kind: input, shape index: {}]   ;;  %s7991_s2 = inlined_call_operand.vmem [shape: f32[1,640], index: 2, kind: input, shape index: {}]   ;;  %s7992_s3 = inlined_call_operand.hbm [shape: f32[1024,128], index: 3, kind: output, shape index: {}]  }
   0x1   :  { %10 = vsyncpa [#allocation3 + $0x1], 0  ;;  %s4718_s12 = smov 0   ;;  %s4720_s13 = smov 0  }
   0x2   :  { %s4722_s14 = smov 0   ;;  %s4724_s15 = smov 0  }
   0x3 LB: > { %s4739_s16 = sadd.s32 4294967295, %s4689_s15   ;;  %s3832_s17 = sadd.s32 4294967294, %s4689_s15   ;;  %s4689_s15 = sphi %s4724_s15, %s8776_s15   ;;  %s4685_s14 = sphi %s4722_s14, %s8775_s14   ;;  %s4681_s13 = sphi %s4720_s13, %s8774_s13   ;;  %s4677_s12 = sphi %s4718_s12, %s8773_s12  }
   0x4   : > { %s4743_s18 = sadd.s32 1, %s4689_s15   ;;  %s91_s19 = sadd.s32 1, %s4685_s14 }
   0x5   : > { %s88_s20 = ssub.s32 %s4689_s15, %s4743_s18  ;;  %p101_p0 = scmp.ne.s32.totalorder %s4685_s14, %s4681_s13 }
   0x6   : > { %p89_p1 = scmp.eq.s32.totalorder %s88_s20, 0  ;;  %p102_p2 = scmp.eq.s32.totalorder %s4739_s16, 1 }
   0x7   : > { %p107_p3 = scmp.ne.s32.totalorder %s4681_s13, %s4677_s12  ;;  %p108_p4 = scmp.eq.s32.totalorder %s3832_s17, 1 }
   0x8   : > { %s4754_s21 = scalar_select %p89_p1, %s4685_s14, %s91_s19  }
   0x9   : > { %p4756_p5 = por %p102_p2, %p101_p0  ;;  %p4760_p6 = por %p108_p4, %p107_p3 }
   0xa   : > { %p3835_p7 = scmp.ge.s32.totalorder %s4689_s15, 1  ;;  %p141_p8 = scmp.lt.s32.totalorder %s4689_s15, 3 }
   0xc   : > { %p142_p9 = pnand %p3835_p7, %p141_p8 }
   0xe   : > { %145 = sbr.rel (%p142_p9) target bundleno = 1533 (0x5fd), region = 32 }
  0x15   : > { %v4316_v0 = vld [vmem:[%s7990_s1 + $0x4] ss:$20 sps:$4 sm:$0xff]   ;;  %s3837_s26 = sshll.u32 %s4739_s16, 6  ;;  %v4318_v1 = vld [vmem:[%s7990_s1] ss:$20 sps:$4 sm:$0xff]   ;;  %v7993_v2 = vmov 0   ;;  %v251_v41 = vlaneseq }
  0x16   : > { %617 = vmatprep.mubr.bf16.mxu0 %v7993_v2  ;;  %857 = vmatprep.mubr.bf16.mxu1 %v7993_v2  ;;  %p166_p10 = scmp.lt.s32.totalorder %s3837_s26, 127  ;;  %v4319_v3 = vld [vmem:[%s7990_s1 + $0x2c] ss:$20 sps:$4 sm:$0xff]   ;;  %v4321_v4 = vld [vmem:[%s7990_s1 + $0x28] ss:$20 sps:$4 sm:$0xff]   ;;  %vm488_vm0 = vcmask 261120  }
  0x17   : > { %585 = vmatprep.subr.bf16.mxu0 %v4316_v0  ;;  %4085 = vmatprep.subr.bf16.mxu1 %v4316_v0  ;;  %v4356_v31 = vld [vmem:[%s7990_s1 + $0xc] ss:$20 sps:$4 sm:$0xff]   ;;  %v4354_v32 = vld [vmem:[%s7990_s1 + $0x8] ss:$20 sps:$4 sm:$0xff]   ;;  %v4357_v34 = vld [vmem:[%s7990_s1 + $0x30] ss:$20 sps:$4 sm:$0xff]  }
  0x18   : > { %586 = vmatpush1.bf16.msra.mxu0 %v4318_v1  ;;  %4087 = vmatpush1.bf16.msra.mxu1 %v4318_v1  ;;  %s8778_s26 = smov (!%p166_p10, %s3837_s26), 127  ;;  %v4359_v33 = vld [vmem:[%s7990_s1 + $0x34] ss:$20 sps:$4 sm:$0xff]   ;;  %v5014_v42 = vshrl.u32 %v251_v41, 7  ;;  %v249_v44 = vld [vmem:[%s7991_s2] sm:$0x1f] }
  0x19   : > { %587 = vmatprep.subr.bf16.mxu0 %v4319_v3  ;;  %4086 = vmatprep.subr.bf16.mxu1 %v4319_v3  ;;  %s3838_s6 = sshll.u32 %s8778_s26, 2  ;;  %s162_s8 = sand.u32 1, %s4681_s13  }
  0x1a   : > { %4135 = vset.pattern.permute.xlu1 %v7993_v2  ;;  %4134 = vset.pattern.permute.xlu0 %v7993_v2  ;;  %s4786_s9 = scalar_lea.vmem %s7989_s0, %s3838_s6  ;;  %8097 = vst [vmem:[#allocation5_spill] sm:$0xff] %v5014_v42  ;;  %v253_v43 = vsub.s32 0, %v5014_v42  ;;  %s3982_s11 = sshll.u32 %s4739_s16, 13 }
  0x1b   : > { %v4789_v5 = vld [vmem:[%s4786_s9] sm:$0xff]   ;;  %v4801_v7 = vld [vmem:[%s4786_s9 + $0x8] sm:$0xff]   ;;  %v4813_v9 = vld [vmem:[%s4786_s9 + $0x10] sm:$0xff]   ;;  %s7940_s24 = scalar_lea.hbm %s7992_s3, %s3982_s11  ;;  %s7948_s25 = scalar_lea.sflag [#allocation3], %s162_s8 }
  0x1c   : > { %588 = vmatpush1.bf16.msra.mxu0 %v4321_v4  ;;  %4088 = vmatpush1.bf16.msra.mxu1 %v4321_v4  ;;  %v4792_v6 = vld [vmem:[%s4786_s9 + $0xc0] sm:$0xff]   ;;  %v4804_v8 = vld [vmem:[%s4786_s9 + $0xc8] sm:$0xff]   ;;  %v4816_v10 = vld [vmem:[%s4786_s9 + $0xd0] sm:$0xff]   ;;  %v5023_v45 = vrot.slane %v249_v44, %v253_v43  ;;  %s4695_s26 = smov [#allocation2]  }
  0x1d   : > { %v4825_v11 = vld [vmem:[%s4786_s9 + $0x18] sm:$0xff]   ;;  %v4837_v13 = vld [vmem:[%s4786_s9 + $0x20] sm:$0xff]   ;;  %v4849_v15 = vld [vmem:[%s4786_s9 + $0x28] sm:$0xff]   ;;  %938 = vmatprep.subr.bf16.mxu1 %v4356_v31  ;;  %s4631_s27 = sshll.u32 %s4695_s26, 4  ;;  %s4632_s27 = int_to_ptr.vmem [resolvable:$false] %s4631_s27 }
  0x1e   : > { %v4828_v12 = vld [vmem:[%s4786_s9 + $0xd8] sm:$0xff]   ;;  %v4840_v14 = vld [vmem:[%s4786_s9 + $0xe0] sm:$0xff]   ;;  %v4852_v16 = vld [vmem:[%s4786_s9 + $0xe8] sm:$0xff]   ;;  %s4633_s28 = scalar_lea.vmem %s4632_s27, 16384 }
  0x1f   : > { %3881 = vmatmul.mubr.msk.bf16.vlgmr.msra.gmra.mrb[0].mxu0 %vm488_vm0, %v4789_v5  ;;  %3905 = vmatmul.mubr.msk.bf16.vlgmr.msra.gmra.mrb[0].mxu1 %vm488_vm0, %v4792_v6  ;;  %v4861_v17 = vld [vmem:[%s4786_s9 + $0x30] sm:$0xff]   ;;  %v4873_v19 = vld [vmem:[%s4786_s9 + $0x38] sm:$0xff]   ;;  %v4885_v21 = vld [vmem:[%s4786_s9 + $0x40] sm:$0xff]  }
  0x20   : > { %627 = vmatprep.mubr.bf16.mxu0 %v7993_v2  ;;  %867 = vmatprep.mubr.bf16.mxu1 %v7993_v2  ;;  %v4864_v18 = vld [vmem:[%s4786_s9 + $0xf0] sm:$0xff]   ;;  %v4876_v20 = vld [vmem:[%s4786_s9 + $0xf8] sm:$0xff]   ;;  %v4891_v22 = vld [vmem:[%s4786_s9 + $0x48] sm:$0xff]  }
  0x21   : > { %v4897_v23 = vld [vmem:[%s4786_s9 + $0x50] sm:$0xff]   ;;  %v4903_v24 = vld [vmem:[%s4786_s9 + $0x58] sm:$0xff]   ;;  %v4909_v25 = vld [vmem:[%s4786_s9 + $0x60] sm:$0xff]   ;;  %939 = vmatpush1.bf16.msra.mxu1 %v4354_v32 }
  0x22   : > { %v4915_v26 = vld [vmem:[%s4786_s9 + $0x68] sm:$0xff]   ;;  %v4921_v27 = vld [vmem:[%s4786_s9 + $0x70] sm:$0xff]   ;;  %v4927_v28 = vld [vmem:[%s4786_s9 + $0x78] sm:$0xff]   ;;  %940 = vmatprep.subr.bf16.mxu1 %v4359_v33 }
  0x23   : > { %v4933_v29 = vld [vmem:[%s4786_s9 + $0x80] sm:$0xff]   ;;  %v4939_v30 = vld [vmem:[%s4786_s9 + $0x88] sm:$0xff]   ;;  %v4957_v35 = vld [vmem:[%s4786_s9 + $0x90] sm:$0xff]  }
  0x24   : > { %v4966_v36 = vld [vmem:[%s4786_s9 + $0x98] sm:$0xff]   ;;  %v4975_v37 = vld [vmem:[%s4786_s9 + $0xa0] sm:$0xff]   ;;  %v4984_v38 = vld [vmem:[%s4786_s9 + $0xa8] sm:$0xff]  }
  0x25   : > { %941 = vmatpush1.bf16.msra.mxu1 %v4357_v34  ;;  %v4993_v39 = vld [vmem:[%s4786_s9 + $0xb0] sm:$0xff]   ;;  %v5002_v40 = vld [vmem:[%s4786_s9 + $0xb8] sm:$0xff]  }
  0x27   : > { %3882 = vmatmul.mubr.msk.bf16.gmra.mrb[4].mxu0 %vm488_vm0, %v4801_v7  ;;  %3906 = vmatmul.mubr.msk.bf16.gmra.mrb[4].mxu1 %vm488_vm0, %v4804_v8 }
  0x28   : > { %637 = vmatprep.mubr.bf16.mxu0 %v7993_v2  ;;  %877 = vmatprep.mubr.bf16.mxu1 %v7993_v2 }
  0x2f   : > { %3883 = vmatmul.mubr.msk.bf16.gmra.mrb[8].mxu0 %vm488_vm0, %v4813_v9  ;;  %3907 = vmatmul.mubr.msk.bf16.gmra.mrb[8].mxu1 %vm488_vm0, %v4816_v10 }
  0x30   : > { %647 = vmatprep.mubr.bf16.mxu0 %v7993_v2  ;;  %887 = vmatprep.mubr.bf16.mxu1 %v7993_v2 }
  0x37   : > { %3884 = vmatmul.mubr.msk.bf16.gmra.mrb[12].mxu0 %vm488_vm0, %v4825_v11  ;;  %3908 = vmatmul.mubr.msk.bf16.gmra.mrb[12].mxu1 %vm488_vm0, %v4828_v12 }
  0x38   : > { %657 = vmatprep.mubr.bf16.mxu0 %v7993_v2  ;;  %897 = vmatprep.mubr.bf16.mxu1 %v7993_v2 }
  0x3f   : > { %3885 = vmatmul.mubr.msk.bf16.gmra.mrb[16].mxu0 %vm488_vm0, %v4837_v13  ;;  %3909 = vmatmul.mubr.msk.bf16.gmra.mrb[16].mxu1 %vm488_vm0, %v4840_v14 }
  0x40   : > { %667 = vmatprep.mubr.bf16.mxu0 %v7993_v2  ;;  %907 = vmatprep.mubr.bf16.mxu1 %v7993_v2 }
  0x47   : > { %3886 = vmatmul.mubr.msk.bf16.gmra.mrb[20].mxu0 %vm488_vm0, %v4849_v15  ;;  %3910 = vmatmul.mubr.msk.bf16.gmra.mrb[20].mxu1 %vm488_vm0, %v4852_v16 }
  0x48   : > { %677 = vmatprep.mubr.bf16.mxu0 %v7993_v2  ;;  %917 = vmatprep.mubr.bf16.mxu1 %v7993_v2 }
  0x4f   : > { %3887 = vmatmul.mubr.msk.bf16.gmra.mrb[24].mxu0 %vm488_vm0, %v4861_v17  ;;  %3911 = vmatmul.mubr.msk.bf16.gmra.mrb[24].mxu1 %vm488_vm0, %v4864_v18 }
  0x50   : > { %687 = vmatprep.mubr.bf16.mxu0 %v7993_v2  ;;  %927 = vmatprep.mubr.bf16.mxu1 %v7993_v2 }
  0x57   : > { %3888 = vmatmul.mubr.msk.bf16.gmra.mrb[28].mxu0 %vm488_vm0, %v4873_v19  ;;  %3912 = vmatmul.mubr.msk.bf16.gmra.mrb[28].mxu1 %vm488_vm0, %v4876_v20 }
  0x58   : > { %697 = vmatprep.mubr.bf16.mxu0 %v7993_v2  ;;  %970 = vmatprep.mubr.bf16.mxu1 %v7993_v2 }
  0x5f   : > { %3889 = vmatmul.mubr.msk.bf16.gmra.mrb[32].mxu0 %vm488_vm0, %v4885_v21  ;;  %3913 = vmatmul.mubr.msk.bf16.vlgmr.msra.gmra.mrb[32].mxu1 %vm488_vm0, %v4789_v5 }
  0x60   : > { %707 = vmatprep.mubr.bf16.mxu0 %v7993_v2  ;;  %980 = vmatprep.mubr.bf16.mxu1 %v7993_v2 }
  0x67   : > { %3890 = vmatmul.mubr.msk.bf16.gmra.mrb[36].mxu0 %vm488_vm0, %v4891_v22  ;;  %3914 = vmatmul.mubr.msk.bf16.gmra.mrb[36].mxu1 %vm488_vm0, %v4801_v7 }
  0x68   : > { %717 = vmatprep.mubr.bf16.mxu0 %v7993_v2  ;;  %990 = vmatprep.mubr.bf16.mxu1 %v7993_v2 }
  0x6f   : > { %3891 = vmatmul.mubr.msk.bf16.gmra.mrb[40].mxu0 %vm488_vm0, %v4897_v23  ;;  %3915 = vmatmul.mubr.msk.bf16.gmra.mrb[40].mxu1 %vm488_vm0, %v4813_v9 }
  0x70   : > { %727 = vmatprep.mubr.bf16.mxu0 %v7993_v2  ;;  %1000 = vmatprep.mubr.bf16.mxu1 %v7993_v2 }
  0x77   : > { %3892 = vmatmul.mubr.msk.bf16.gmra.mrb[44].mxu0 %vm488_vm0, %v4903_v24  ;;  %3916 = vmatmul.mubr.msk.bf16.gmra.mrb[44].mxu1 %vm488_vm0, %v4825_v11 }
  0x78   : > { %737 = vmatprep.mubr.bf16.mxu0 %v7993_v2  ;;  %1010 = vmatprep.mubr.bf16.mxu1 %v7993_v2 }
  0x7f   : > { %3893 = vmatmul.mubr.msk.bf16.gmra.mrb[48].mxu0 %vm488_vm0, %v4909_v25  ;;  %3917 = vmatmul.mubr.msk.bf16.gmra.mrb[48].mxu1 %vm488_vm0, %v4837_v13 }
  0x80   : > { %747 = vmatprep.mubr.bf16.mxu0 %v7993_v2  ;;  %1020 = vmatprep.mubr.bf16.mxu1 %v7993_v2 }
  0x87   : > { %3894 = vmatmul.mubr.msk.bf16.gmra.mrb[52].mxu0 %vm488_vm0, %v4915_v26  ;;  %3918 = vmatmul.mubr.msk.bf16.gmra.mrb[52].mxu1 %vm488_vm0, %v4849_v15 }
  0x88   : > { %757 = vmatprep.mubr.bf16.mxu0 %v7993_v2  ;;  %1030 = vmatprep.mubr.bf16.mxu1 %v7993_v2 }
  0x8f   : > { %3895 = vmatmul.mubr.msk.bf16.gmra.mrb[56].mxu0 %vm488_vm0, %v4921_v27  ;;  %3919 = vmatmul.mubr.msk.bf16.gmra.mrb[56].mxu1 %vm488_vm0, %v4861_v17 }
  0x90   : > { %767 = vmatprep.mubr.bf16.mxu0 %v7993_v2  ;;  %1040 = vmatprep.mubr.bf16.mxu1 %v7993_v2 }
  0x97   : > { %3896 = vmatmul.mubr.msk.bf16.gmra.mrb[60].mxu0 %vm488_vm0, %v4927_v28  ;;  %3920 = vmatmul.mubr.msk.bf16.gmra.mrb[60].mxu1 %vm488_vm0, %v4873_v19 }
  0x98   : > { %777 = vmatprep.mubr.bf16.mxu0 %v7993_v2  ;;  %1050 = vmatprep.mubr.bf16.mxu1 %v7993_v2 }
  0x9f   : > { %3897 = vmatmul.mubr.msk.bf16.gmra.mrb[64].mxu0 %vm488_vm0, %v4933_v29  ;;  %3921 = vmatmul.mubr.msk.bf16.gmra.mrb[64].mxu1 %vm488_vm0, %v4885_v21 }
  0xa0   : > { %787 = vmatprep.mubr.bf16.mxu0 %v7993_v2  ;;  %1060 = vmatprep.mubr.bf16.mxu1 %v7993_v2 }
  0xa7   : > { %3898 = vmatmul.mubr.msk.bf16.gmra.mrb[68].mxu0 %vm488_vm0, %v4939_v30  ;;  %3922 = vmatmul.mubr.msk.bf16.gmra.mrb[68].mxu1 %vm488_vm0, %v4891_v22 }
  0xa8   : > { %797 = vmatprep.mubr.bf16.mxu0 %v7993_v2  ;;  %1070 = vmatprep.mubr.bf16.mxu1 %v7993_v2 }
  0xaf   : > { %3899 = vmatmul.mubr.msk.bf16.gmra.mrb[72].mxu0 %vm488_vm0, %v4957_v35  ;;  %3923 = vmatmul.mubr.msk.bf16.gmra.mrb[72].mxu1 %vm488_vm0, %v4897_v23 }
  0xb0   : > { %807 = vmatprep.mubr.bf16.mxu0 %v7993_v2  ;;  %1080 = vmatprep.mubr.bf16.mxu1 %v7993_v2 }
  0xb7   : > { %3900 = vmatmul.mubr.msk.bf16.gmra.mrb[76].mxu0 %vm488_vm0, %v4966_v36  ;;  %3924 = vmatmul.mubr.msk.bf16.gmra.mrb[76].mxu1 %vm488_vm0, %v4903_v24 }
  0xb8   : > { %817 = vmatprep.mubr.bf16.mxu0 %v7993_v2  ;;  %1090 = vmatprep.mubr.bf16.mxu1 %v7993_v2 }
  0xbf   : > { %3901 = vmatmul.mubr.msk.bf16.gmra.mrb[80].mxu0 %vm488_vm0, %v4975_v37  ;;  %3925 = vmatmul.mubr.msk.bf16.gmra.mrb[80].mxu1 %vm488_vm0, %v4909_v25 }
  0xc0   : > { %827 = vmatprep.mubr.bf16.mxu0 %v7993_v2 }
  0xc7   : > { %3902 = vmatmul.mubr.msk.bf16.gmra.mrb[84].mxu0 %vm488_vm0, %v4984_v38 }
  0xc8   : > { %837 = vmatprep.mubr.bf16.mxu0 %v7993_v2 }
  0xcf   : > { %3903 = vmatmul.mubr.msk.bf16.gmra.mrb[88].mxu0 %vm488_vm0, %v4993_v39 }
  0xd0   : > { %847 = vmatprep.mubr.bf16.mxu0 %v7993_v2 }
  0xd7   : > { %3904 = vmatmul.mubr.msk.bf16.gmra.mrb[92].mxu0 %vm488_vm0, %v5002_v40 }
  0xd8   : > { %4021 = vmatprep.mubr.msk.bf16.mxu0 %vm488_vm0, %v4789_v5 }
  0xf2   : > { %v619_v46 = vpop.f32.mrb[0].mxu0  ;;  %v859_v47 = vpop.f32.mrb[0].mxu1 }
  0xf3   : > { %v5029_v48 = vadd.f32 %v619_v46, %v5023_v45  ;;  %v5031_v49 = vpop.f32.mrb[1].mxu0  ;;  %v5033_v50 = vpop.f32.mrb[1].mxu1  ;;  %v5036_v53 = vadd.f32 %v859_v47, %v5023_v45 }
  0xf4   : > { %8098 = vst [vmem:[#allocation6_spill] sm:$0xff] %v5031_v49  ;;  %8099 = vst [vmem:[#allocation7_spill] sm:$0xff] %v5033_v50  ;;  %v623_v51 = vpop.f32.mrb[2].mxu0  ;;  %v863_v52 = vpop.f32.mrb[2].mxu1 }
  0xf5   : > { %v5039_v54 = vadd.f32 %v863_v52, %v5023_v45  ;;  %v5041_v55 = vpop.f32.mrb[3].mxu0  ;;  %1580 = vmax.xlane.f32.xlu0 %v5029_v48  ;;  %v5044_v56 = vpop.f32.mrb[3].mxu1  ;;  %v5052_v59 = vadd.f32 %v623_v51, %v5023_v45 }
  0xf6   : > { %8100 = vst [vmem:[#allocation8_spill] sm:$0xff] %v5041_v55  ;;  %8101 = vst [vmem:[#allocation9_spill] sm:$0xff] %v5044_v56 }
  0xf7   : > { %1678 = vmax.xlane.f32.xlu1 %v5039_v54 }
  0xf9   : > { %1676 = vmax.xlane.f32.xlu0 %v5036_v53 }
  0xfa   : > { %v629_v57 = vpop.f32.mrb[4].mxu0  ;;  %v869_v58 = vpop.f32.mrb[4].mxu1 }
  0xfb   : > { %v5055_v60 = vadd.f32 %v629_v57, %v5023_v45  ;;  %v5057_v61 = vpop.f32.mrb[5].mxu0  ;;  %v5059_v62 = vpop.f32.mrb[5].mxu1  ;;  %v5066_v3 = vadd.f32 %v869_v58, %v5023_v45 }
  0xfc   : > { %8102 = vst [vmem:[#allocation10_spill] sm:$0xff] %v5057_v61  ;;  %8103 = vst [vmem:[#allocation11_spill] sm:$0xff] %v5059_v62  ;;  %v633_v63 = vpop.f32.mrb[6].mxu0  ;;  %v873_v0 = vpop.f32.mrb[6].mxu1 }
  0xfd   : > { %v5061_v1 = vpop.f32.mrb[7].mxu0  ;;  %1584 = vmax.xlane.f32.xlu1 %v5055_v60  ;;  %1582 = vmax.xlane.f32.xlu0 %v5052_v59  ;;  %v5068_v4 = vpop.f32.mrb[7].mxu1  ;;  %v5071_v5 = vadd.f32 %v633_v63, %v5023_v45  ;;  %v5079_v31 = vadd.f32 %v873_v0, %v5023_v45 }
  0xfe   : > { %8104 = vst [vmem:[#allocation12_spill] sm:$0xff] %v5061_v1  ;;  %8105 = vst [vmem:[#allocation13_spill] sm:$0xff] %v5068_v4 }
 0x101   : > { %1586 = vmax.xlane.f32.xlu1 %v5071_v5  ;;  %1680 = vmax.xlane.f32.xlu0 %v5066_v3 }
 0x102   : > { %v639_v32 = vpop.f32.mrb[8].mxu0  ;;  %v879_v33 = vpop.f32.mrb[8].mxu1 }
 0x103   : > { %v5082_v34 = vadd.f32 %v639_v32, %v5023_v45  ;;  %v5084_v41 = vpop.f32.mrb[9].mxu0  ;;  %v5086_v43 = vpop.f32.mrb[9].mxu1  ;;  %v5093_v51 = vadd.f32 %v879_v33, %v5023_v45 }
 0x104   : > { %8106 = vst [vmem:[#allocation14_spill] sm:$0xff] %v5084_v41  ;;  %8107 = vst [vmem:[#allocation15_spill] sm:$0xff] %v5086_v43  ;;  %v643_v44 = vpop.f32.mrb[10].mxu0  ;;  %v883_v46 = vpop.f32.mrb[10].mxu1 }
 0x105   : > { %v5088_v47 = vpop.f32.mrb[11].mxu0  ;;  %1682 = vmax.xlane.f32.xlu1 %v5079_v31  ;;  %1588 = vmax.xlane.f32.xlu0 %v5082_v34  ;;  %v5095_v52 = vpop.f32.mrb[11].mxu1  ;;  %v5098_v57 = vadd.f32 %v643_v44, %v5023_v45  ;;  %v5106_v58 = vadd.f32 %v883_v46, %v5023_v45 }
 0x106   : > { %8108 = vst [vmem:[#allocation16_spill] sm:$0xff] %v5088_v47  ;;  %8109 = vst [vmem:[#allocation17_spill] sm:$0xff] %v5095_v52 }
 0x109   : > { %1590 = vmax.xlane.f32.xlu1 %v5098_v57  ;;  %1684 = vmax.xlane.f32.xlu0 %v5093_v51 }
 0x10a   : > { %v649_v63 = vpop.f32.mrb[12].mxu0  ;;  %v889_v0 = vpop.f32.mrb[12].mxu1 }
 0x10b   : > { %v5109_v32 = vadd.f32 %v649_v63, %v5023_v45  ;;  %v5111_v33 = vpop.f32.mrb[13].mxu0  ;;  %v5113_v44 = vpop.f32.mrb[13].mxu1  ;;  %v5120_v46 = vadd.f32 %v889_v0, %v5023_v45 }
 0x10c   : > { %8110 = vst [vmem:[#allocation18_spill] sm:$0xff] %v5111_v33  ;;  %8111 = vst [vmem:[#allocation19_spill] sm:$0xff] %v5113_v44  ;;  %v653_v52 = vpop.f32.mrb[14].mxu0  ;;  %v893_v47 = vpop.f32.mrb[14].mxu1  ;;  %v8114_v44 = vmov 0  }
 0x10d   : > { %v5115_v43 = vpop.f32.mrb[15].mxu0  ;;  %1686 = vmax.xlane.f32.xlu1 %v5106_v58  ;;  %1592 = vmax.xlane.f32.xlu0 %v5109_v32  ;;  %v5122_v2 = vpop.f32.mrb[15].mxu1  ;;  %v5125_v63 = vadd.f32 %v653_v52, %v5023_v45 }
 0x10e   : > { %8112 = vst [vmem:[#allocation20_spill] sm:$0xff] %v5115_v43  ;;  %8113 = vst [vmem:[#allocation21_spill] sm:$0xff] %v5122_v2  ;;  %1100 = vmatprep.mubr.bf16.mxu1 %v8114_v44  ;;  %v5133_v43 = vadd.f32 %v893_v47, %v5023_v45 }
 0x10f   : > { %3926 = vmatmul.mubr.msk.bf16.gmra.mrb[84].mxu1 %vm488_vm0, %v4915_v26 }
 0x110   : > { %1110 = vmatprep.mubr.bf16.mxu1 %v8114_v44 }
 0x111   : > { %1594 = vmax.xlane.f32.xlu1 %v5125_v63  ;;  %1688 = vmax.xlane.f32.xlu0 %v5120_v46 }
 0x112   : > { %v659_v33 = vpop.f32.mrb[16].mxu0  ;;  %v899_v0 = vpop.f32.mrb[16].mxu1 }
 0x113   : > { %v5136_v41 = vadd.f32 %v659_v33, %v5023_v45  ;;  %v5138_v2 = vpop.f32.mrb[17].mxu0  ;;  %v5140_v52 = vpop.f32.mrb[17].mxu1  ;;  %v5147_v47 = vadd.f32 %v899_v0, %v5023_v45 }
 0x114   : > { %8115 = vst [vmem:[#allocation22_spill] sm:$0xff] %v5138_v2  ;;  %8116 = vst [vmem:[#allocation23_spill] sm:$0xff] %v5140_v52  ;;  %v663_v4 = vpop.f32.mrb[18].mxu0  ;;  %v903_v1 = vpop.f32.mrb[18].mxu1 }
 0x115   : > { %v5142_v61 = vpop.f32.mrb[19].mxu0  ;;  %1690 = vmax.xlane.f32.xlu1 %v5133_v43  ;;  %1596 = vmax.xlane.f32.xlu0 %v5136_v41  ;;  %v5149_v62 = vpop.f32.mrb[19].mxu1  ;;  %v5152_v33 = vadd.f32 %v663_v4, %v5023_v45 }
 0x116   : > { %8117 = vst [vmem:[#allocation24_spill] sm:$0xff] %v5142_v61  ;;  %8118 = vst [vmem:[#allocation25_spill] sm:$0xff] %v5149_v62  ;;  %v5160_v61 = vadd.f32 %v903_v1, %v5023_v45 }
 0x117   : > { %8119 = vst [vmem:[#allocation26_spill] sm:$0xff] %v5152_v33  ;;  %3927 = vmatmul.mubr.msk.bf16.gmra.mrb[88].mxu1 %vm488_vm0, %v4921_v27 }
 0x118   : > { %8120 = vst [vmem:[#allocation27_spill] sm:$0xff] %v5160_v61  ;;  %1120 = vmatprep.mubr.bf16.mxu1 %v8114_v44 }
 0x119   : > { %1598 = vmax.xlane.f32.xlu1 %v5152_v33  ;;  %1692 = vmax.xlane.f32.xlu0 %v5147_v47 }
 0x11a   : > { %v669_v52 = vpop.f32.mrb[20].mxu0  ;;  %v909_v0 = vpop.f32.mrb[20].mxu1 }
 0x11b   : > { %v5163_v2 = vadd.f32 %v669_v52, %v5023_v45  ;;  %v5165_v62 = vpop.f32.mrb[21].mxu0  ;;  %v5167_v4 = vpop.f32.mrb[21].mxu1  ;;  %v5174_v1 = vadd.f32 %v909_v0, %v5023_v45 }
 0x11c   : > { %8121 = vst [vmem:[#allocation28_spill] sm:$0xff] %v5165_v62  ;;  %8122 = vst [vmem:[#allocation29_spill] sm:$0xff] %v5167_v4  ;;  %v673_v56 = vpop.f32.mrb[22].mxu0  ;;  %v913_v55 = vpop.f32.mrb[22].mxu1 }
 0x11d   : > { %v5169_v50 = vpop.f32.mrb[23].mxu0  ;;  %1694 = vmax.xlane.f32.xlu1 %v5160_v61  ;;  %1600 = vmax.xlane.f32.xlu0 %v5163_v2  ;;  %8124 = vst [vmem:[#allocation31_spill] sm:$0xff] %v5174_v1  ;;  %v5176_v49 = vpop.f32.mrb[23].mxu1  ;;  %v5179_v52 = vadd.f32 %v673_v56, %v5023_v45 }
 0x11e   : > { %8123 = vst [vmem:[#allocation30_spill] sm:$0xff] %v5169_v50  ;;  %8125 = vst [vmem:[#allocation32_spill] sm:$0xff] %v5176_v49  ;;  %v5187_v50 = vadd.f32 %v913_v55, %v5023_v45 }
 0x11f   : > { %8126 = vst [vmem:[#allocation33_spill] sm:$0xff] %v5179_v52  ;;  %3928 = vmatmul.mubr.msk.bf16.gmra.mrb[92].mxu1 %vm488_vm0, %v4927_v28 }
 0x120   : > { %8127 = vst [vmem:[#allocation34_spill] sm:$0xff] %v5187_v50  ;;  %1130 = vmatprep.mubr.bf16.mxu1 %v8114_v44 }
 0x121   : > { %1602 = vmax.xlane.f32.xlu1 %v5179_v52  ;;  %1696 = vmax.xlane.f32.xlu0 %v5174_v1 }
 0x122   : > { %v679_v4 = vpop.f32.mrb[24].mxu0  ;;  %v919_v0 = vpop.f32.mrb[24].mxu1 }
 0x123   : > { %v5190_v62 = vadd.f32 %v679_v4, %v5023_v45  ;;  %v5192_v49 = vpop.f32.mrb[25].mxu0  ;;  %v5194_v56 = vpop.f32.mrb[25].mxu1  ;;  %v5201_v55 = vadd.f32 %v919_v0, %v5023_v45 }
 0x124   : > { %8129 = vst [vmem:[#allocation36_spill] sm:$0xff] %v5192_v49  ;;  %8130 = vst [vmem:[#allocation37_spill] sm:$0xff] %v5194_v56  ;;  %v683_v42 = vpop.f32.mrb[26].mxu0  ;;  %v923_v61 = vpop.f32.mrb[26].mxu1 }
 0x125   : > { %8128 = vst [vmem:[#allocation35_spill] sm:$0xff] %v5190_v62  ;;  %v5196_v33 = vpop.f32.mrb[27].mxu0  ;;  %1698 = vmax.xlane.f32.xlu1 %v5187_v50  ;;  %1604 = vmax.xlane.f32.xlu0 %v5190_v62  ;;  %v5203_v52 = vpop.f32.mrb[27].mxu1  ;;  %v5206_v4 = vadd.f32 %v683_v42, %v5023_v45 }
 0x126   : > { %8131 = vst [vmem:[#allocation38_spill] sm:$0xff] %v5196_v33  ;;  %8132 = vst [vmem:[#allocation39_spill] sm:$0xff] %v5203_v52  ;;  %v5214_v33 = vadd.f32 %v923_v61, %v5023_v45 }
 0x127   : > { %8133 = vst [vmem:[#allocation40_spill] sm:$0xff] %v5206_v4  ;;  %3929 = vmatmul.mubr.msk.bf16.gmra.mrb[96].mxu1 %vm488_vm0, %v4933_v29 }
 0x128   : > { %1140 = vmatprep.mubr.bf16.mxu1 %v8114_v44 }
 0x129   : > { %1606 = vmax.xlane.f32.xlu1 %v5206_v4  ;;  %1700 = vmax.xlane.f32.xlu0 %v5201_v55 }
 0x12a   : > { %v689_v56 = vpop.f32.mrb[28].mxu0  ;;  %v929_v0 = vpop.f32.mrb[28].mxu1 }
 0x12b   : > { %v5217_v49 = vadd.f32 %v689_v56, %v5023_v45  ;;  %v5219_v52 = vpop.f32.mrb[29].mxu0  ;;  %v5221_v42 = vpop.f32.mrb[29].mxu1  ;;  %v5228_v61 = vadd.f32 %v929_v0, %v5023_v45 }
 0x12c   : > { %8134 = vst [vmem:[#allocation41_spill] sm:$0xff] %v5219_v52  ;;  %8135 = vst [vmem:[#allocation42_spill] sm:$0xff] %v5221_v42  ;;  %v693_v50 = vpop.f32.mrb[30].mxu0  ;;  %v933_v62 = vpop.f32.mrb[30].mxu1 }
 0x12d   : > { %v5223_v1 = vpop.f32.mrb[31].mxu0  ;;  %1702 = vmax.xlane.f32.xlu1 %v5214_v33  ;;  %1608 = vmax.xlane.f32.xlu0 %v5217_v49  ;;  %v5230_v4 = vpop.f32.mrb[31].mxu1  ;;  %v5233_v56 = vadd.f32 %v693_v50, %v5023_v45 }
 0x12e   : > { %8136 = vst [vmem:[#allocation43_spill] sm:$0xff] %v5223_v1  ;;  %8137 = vst [vmem:[#allocation44_spill] sm:$0xff] %v5230_v4  ;;  %v5241_v1 = vadd.f32 %v933_v62, %v5023_v45 }
 0x12f   : > { %8138 = vst [vmem:[#allocation45_spill] sm:$0xff] %v5233_v56  ;;  %3930 = vmatmul.mubr.msk.bf16.gmra.mrb[100].mxu1 %vm488_vm0, %v4939_v30 }
 0x130   : > { %8139 = vst [vmem:[#allocation46_spill] sm:$0xff] %v5241_v1  ;;  %1150 = vmatprep.mubr.bf16.mxu1 %v8114_v44 }
 0x131   : > { %1610 = vmax.xlane.f32.xlu1 %v5233_v56  ;;  %1704 = vmax.xlane.f32.xlu0 %v5228_v61 }
 0x132   : > { %v699_v42 = vpop.f32.mrb[32].mxu0 }
 0x133   : > { %v5244_v0 = vadd.f32 %v699_v42, %v5023_v45  ;;  %v5246_v4 = vpop.f32.mrb[33].mxu0 }
 0x134   : > { %8141 = vst [vmem:[#allocation48_spill] sm:$0xff] %v5246_v4  ;;  %v703_v50 = vpop.f32.mrb[34].mxu0 }
 0x135   : > { %8140 = vst [vmem:[#allocation47_spill] sm:$0xff] %v5244_v0  ;;  %v5248_v52 = vpop.f32.mrb[35].mxu0  ;;  %1706 = vmax.xlane.f32.xlu1 %v5241_v1  ;;  %1612 = vmax.xlane.f32.xlu0 %v5244_v0  ;;  %v5253_v56 = vadd.f32 %v703_v50, %v5023_v45 }
 0x136   : > { %8142 = vst [vmem:[#allocation49_spill] sm:$0xff] %v5248_v52 }
 0x137   : > { %8143 = vst [vmem:[#allocation50_spill] sm:$0xff] %v5253_v56  ;;  %3931 = vmatmul.mubr.msk.bf16.gmra.mrb[104].mxu1 %vm488_vm0, %v4957_v35 }
 0x138   : > { %1160 = vmatprep.mubr.bf16.mxu1 %v8114_v44 }
 0x139   : > { %1614 = vmax.xlane.f32.xlu1 %v5253_v56 }
 0x13a   : > { %v709_v62 = vpop.f32.mrb[36].mxu0 }
 0x13b   : > { %v5260_v42 = vadd.f32 %v709_v62, %v5023_v45  ;;  %v5262_v4 = vpop.f32.mrb[37].mxu0 }
 0x13c   : > { %8145 = vst [vmem:[#allocation52_spill] sm:$0xff] %v5262_v4  ;;  %v713_v52 = vpop.f32.mrb[38].mxu0 }
 0x13d   : > { %8144 = vst [vmem:[#allocation51_spill] sm:$0xff] %v5260_v42  ;;  %v5265_v1 = vadd.f32 %v713_v52, %v5023_v45  ;;  %v5267_v0 = vpop.f32.mrb[39].mxu0  ;;  %1616 = vmax.xlane.f32.xlu0 %v5260_v42 }
 0x13e   : > { %8147 = vst [vmem:[#allocation54_spill] sm:$0xff] %v5267_v0 }
 0x13f   : > { %8146 = vst [vmem:[#allocation53_spill] sm:$0xff] %v5265_v1  ;;  %1618 = vmax.xlane.f32.xlu1 %v5265_v1  ;;  %3932 = vmatmul.mubr.msk.bf16.gmra.mrb[108].mxu1 %vm488_vm0, %v4966_v36 }
 0x140   : > { %1170 = vmatprep.mubr.bf16.mxu1 %v8114_v44 }
 0x142   : > { %v719_v50 = vpop.f32.mrb[40].mxu0 }
 0x143   : > { %v5275_v62 = vadd.f32 %v719_v50, %v5023_v45  ;;  %v5277_v4 = vpop.f32.mrb[41].mxu0 }
 0x144   : > { %8149 = vst [vmem:[#allocation56_spill] sm:$0xff] %v5277_v4  ;;  %v723_v56 = vpop.f32.mrb[42].mxu0 }
 0x145   : > { %8148 = vst [vmem:[#allocation55_spill] sm:$0xff] %v5275_v62  ;;  %v5280_v52 = vadd.f32 %v723_v56, %v5023_v45  ;;  %v5282_v0 = vpop.f32.mrb[43].mxu0  ;;  %1620 = vmax.xlane.f32.xlu0 %v5275_v62 }
 0x146   : > { %8151 = vst [vmem:[#allocation58_spill] sm:$0xff] %v5282_v0 }
 0x147   : > { %8150 = vst [vmem:[#allocation57_spill] sm:$0xff] %v5280_v52  ;;  %1622 = vmax.xlane.f32.xlu1 %v5280_v52  ;;  %3933 = vmatmul.mubr.msk.bf16.gmra.mrb[112].mxu1 %vm488_vm0, %v4975_v37 }
 0x148   : > { %1180 = vmatprep.mubr.bf16.mxu1 %v8114_v44 }
 0x14a   : > { %v729_v1 = vpop.f32.mrb[44].mxu0 }
 0x14b   : > { %v5290_v50 = vadd.f32 %v729_v1, %v5023_v45  ;;  %v5292_v4 = vpop.f32.mrb[45].mxu0 }
 0x14c   : > { %8153 = vst [vmem:[#allocation60_spill] sm:$0xff] %v5292_v4  ;;  %v733_v42 = vpop.f32.mrb[46].mxu0 }
 0x14d   : > { %8152 = vst [vmem:[#allocation59_spill] sm:$0xff] %v5290_v50  ;;  %v5295_v56 = vadd.f32 %v733_v42, %v5023_v45  ;;  %v5297_v0 = vpop.f32.mrb[47].mxu0  ;;  %1624 = vmax.xlane.f32.xlu0 %v5290_v50 }
 0x14e   : > { %8155 = vst [vmem:[#allocation62_spill] sm:$0xff] %v5297_v0 }
 0x14f   : > { %8154 = vst [vmem:[#allocation61_spill] sm:$0xff] %v5295_v56  ;;  %1626 = vmax.xlane.f32.xlu1 %v5295_v56  ;;  %3934 = vmatmul.mubr.msk.bf16.gmra.mrb[116].mxu1 %vm488_vm0, %v4984_v38 }
 0x150   : > { %1190 = vmatprep.mubr.bf16.mxu1 %v8114_v44 }
 0x152   : > { %v739_v52 = vpop.f32.mrb[48].mxu0 }
 0x153   : > { %v5305_v1 = vadd.f32 %v739_v52, %v5023_v45  ;;  %v5307_v4 = vpop.f32.mrb[49].mxu0 }
 0x154   : > { %8157 = vst [vmem:[#allocation64_spill] sm:$0xff] %v5307_v4  ;;  %v743_v62 = vpop.f32.mrb[50].mxu0 }
 0x155   : > { %8156 = vst [vmem:[#allocation63_spill] sm:$0xff] %v5305_v1  ;;  %v5310_v42 = vadd.f32 %v743_v62, %v5023_v45  ;;  %v5312_v0 = vpop.f32.mrb[51].mxu0  ;;  %1628 = vmax.xlane.f32.xlu0 %v5305_v1 }
 0x156   : > { %8159 = vst [vmem:[#allocation66_spill] sm:$0xff] %v5312_v0 }
 0x157   : > { %8158 = vst [vmem:[#allocation65_spill] sm:$0xff] %v5310_v42  ;;  %1630 = vmax.xlane.f32.xlu1 %v5310_v42  ;;  %3935 = vmatmul.mubr.msk.bf16.gmra.mrb[120].mxu1 %vm488_vm0, %v4993_v39 }
 0x158   : > { %1200 = vmatprep.mubr.bf16.mxu1 %v8114_v44 }
 0x15a   : > { %v749_v56 = vpop.f32.mrb[52].mxu0 }
 0x15b   : > { %v5320_v52 = vadd.f32 %v749_v56, %v5023_v45  ;;  %v5322_v4 = vpop.f32.mrb[53].mxu0 }
 0x15c   : > { %8161 = vst [vmem:[#allocation68_spill] sm:$0xff] %v5322_v4  ;;  %v753_v50 = vpop.f32.mrb[54].mxu0 }
 0x15d   : > { %8160 = vst [vmem:[#allocation67_spill] sm:$0xff] %v5320_v52  ;;  %v5325_v62 = vadd.f32 %v753_v50, %v5023_v45  ;;  %v5327_v0 = vpop.f32.mrb[55].mxu0  ;;  %1632 = vmax.xlane.f32.xlu0 %v5320_v52 }
 0x15e   : > { %8163 = vst [vmem:[#allocation70_spill] sm:$0xff] %v5327_v0 }
 0x15f   : > { %8162 = vst [vmem:[#allocation69_spill] sm:$0xff] %v5325_v62  ;;  %1634 = vmax.xlane.f32.xlu1 %v5325_v62  ;;  %3936 = vmatmul.mubr.msk.bf16.gmra.mrb[124].mxu1 %vm488_vm0, %v5002_v40 }
 0x160   : > { %1210 = vmatprep.mubr.bf16.mxu1 %v8114_v44 }
 0x162   : > { %v759_v42 = vpop.f32.mrb[56].mxu0 }
 0x163   : > { %v5335_v56 = vadd.f32 %v759_v42, %v5023_v45  ;;  %v5337_v4 = vpop.f32.mrb[57].mxu0 }
 0x164   : > { %8164 = vst [vmem:[#allocation71_spill] sm:$0xff] %v5337_v4  ;;  %v763_v1 = vpop.f32.mrb[58].mxu0 }
 0x165   : > { %v5340_v50 = vadd.f32 %v763_v1, %v5023_v45  ;;  %v5342_v0 = vpop.f32.mrb[59].mxu0  ;;  %1636 = vmax.xlane.f32.xlu0 %v5335_v56  ;;  %v4360_v1 = vld [vmem:[%s7990_s1 + $0x10] ss:$20 sps:$4 sm:$0xff]  }
 0x166   : > { %8166 = vst [vmem:[#allocation73_spill] sm:$0xff] %v5342_v0  ;;  %4017 = vmatprep.subr.bf16.mxu0 %v4360_v1 }
 0x167   : > { %8165 = vst [vmem:[#allocation72_spill] sm:$0xff] %v5340_v50  ;;  %1638 = vmax.xlane.f32.xlu1 %v5340_v50  ;;  %4018 = vmatpush3.bf16.msra.mxu0 %v4360_v1 }
 0x168   : > { %3937 = vmatmul.mubr.msk.bf16.gmra.mrb[128].mxu1 %vm488_vm0, %v4792_v6 }
 0x169   : > { %1220 = vmatprep.mubr.bf16.mxu1 %v8114_v44 }
 0x16a   : > { %v769_v62 = vpop.f32.mrb[60].mxu0 }
 0x16b   : > { %v5350_v42 = vadd.f32 %v769_v62, %v5023_v45  ;;  %v5352_v4 = vpop.f32.mrb[61].mxu0  ;;  %v4361_v62 = vld [vmem:[%s7990_s1 + $0x38] ss:$20 sps:$4 sm:$0xff]  }
 0x16c   : > { %8168 = vst [vmem:[#allocation75_spill] sm:$0xff] %v5352_v4  ;;  %v773_v52 = vpop.f32.mrb[62].mxu0  ;;  %4019 = vmatprep.subr.bf16.mxu0 %v4361_v62 }
 0x16d   : > { %8167 = vst [vmem:[#allocation74_spill] sm:$0xff] %v5350_v42  ;;  %v5358_v0 = vadd.f32 %v773_v52, %v5023_v45  ;;  %v5360_v50 = vpop.f32.mrb[63].mxu0  ;;  %1640 = vmax.xlane.f32.xlu0 %v5350_v42  ;;  %4020 = vmatpush3.bf16.msra.mxu0 %v4361_v62 }
 0x16e   : > { %8170 = vst [vmem:[#allocation77_spill] sm:$0xff] %v5360_v50 }
 0x16f   : > { %8169 = vst [vmem:[#allocation76_spill] sm:$0xff] %v5358_v0  ;;  %1642 = vmax.xlane.f32.xlu1 %v5358_v0 }
 0x170   : > { %4022 = vmatmul.mubr.msk.bf16.vlgmr.msra.gmra.mrb[96].mxu0 %vm488_vm0, %v4801_v7  ;;  %3938 = vmatmul.mubr.msk.bf16.gmra.mrb[132].mxu1 %vm488_vm0, %v4804_v8 }
 0x171   : > { %4025 = vmatprep.mubr.msk.bf16.mxu0 %vm488_vm0, %v4813_v9  ;;  %1230 = vmatprep.mubr.bf16.mxu1 %v8114_v44 }
 0x172   : > { %v779_v4 = vpop.f32.mrb[64].mxu0 }
 0x173   : > { %v5371_v52 = vadd.f32 %v779_v4, %v5023_v45  ;;  %v5373_v50 = vpop.f32.mrb[65].mxu0 }
 0x174   : > { %8171 = vst [vmem:[#allocation78_spill] sm:$0xff] %v5373_v50  ;;  %v783_v42 = vpop.f32.mrb[66].mxu0 }
 0x175   : > { %v5376_v1 = vadd.f32 %v783_v42, %v5023_v45  ;;  %v5378_v0 = vpop.f32.mrb[67].mxu0  ;;  %1644 = vmax.xlane.f32.xlu0 %v5371_v52 }
 0x176   : > { %8172 = vst [vmem:[#allocation79_spill] sm:$0xff] %v5378_v0 }
 0x177   : > { %1646 = vmax.xlane.f32.xlu1 %v5376_v1 }
 0x178   : > { %4026 = vmatmul.mubr.msk.bf16.gmra.mrb[100].mxu0 %vm488_vm0, %v4825_v11  ;;  %3939 = vmatmul.mubr.msk.bf16.gmra.mrb[136].mxu1 %vm488_vm0, %v4816_v10 }
 0x179   : > { %4029 = vmatprep.mubr.msk.bf16.mxu0 %vm488_vm0, %v4837_v13  ;;  %1240 = vmatprep.mubr.bf16.mxu1 %v8114_v44 }
 0x17a   : > { %v789_v6 = vpop.f32.mrb[68].mxu0 }
 0x17b   : > { %v5390_v4 = vadd.f32 %v789_v6, %v5023_v45  ;;  %v5392_v42 = vpop.f32.mrb[69].mxu0 }
 0x17c   : > { %8173 = vst [vmem:[#allocation80_spill] sm:$0xff] %v5392_v42  ;;  %v793_v62 = vpop.f32.mrb[70].mxu0 }
 0x17d   : > { %v5395_v50 = vadd.f32 %v793_v62, %v5023_v45  ;;  %v5397_v7 = vpop.f32.mrb[71].mxu0  ;;  %1648 = vmax.xlane.f32.xlu0 %v5390_v4 }
 0x17e   : > { %8175 = vst [vmem:[#allocation82_spill] sm:$0xff] %v5397_v7 }
 0x17f   : > { %8174 = vst [vmem:[#allocation81_spill] sm:$0xff] %v5395_v50  ;;  %1650 = vmax.xlane.f32.xlu1 %v5395_v50 }
 0x180   : > { %4030 = vmatmul.mubr.msk.bf16.gmra.mrb[104].mxu0 %vm488_vm0, %v4849_v15  ;;  %3940 = vmatmul.mubr.msk.bf16.gmra.mrb[140].mxu1 %vm488_vm0, %v4828_v12 }
 0x181   : > { %4033 = vmatprep.mubr.msk.bf16.mxu0 %vm488_vm0, %v4861_v17  ;;  %1250 = vmatprep.mubr.bf16.mxu1 %v8114_v44 }
 0x182   : > { %v799_v8 = vpop.f32.mrb[72].mxu0  ;;  %v1581_v9 = vpop.xlane.xlu0 %1580 }
 0x183   : > { %v5409_v6 = vadd.f32 %v799_v8, %v5023_v45  ;;  %v1708_v62 = vsub.f32 %v5029_v48, %v1581_v9  ;;  %v5412_v42 = vpop.f32.mrb[73].mxu0 }
 0x184   : > { %8176 = vst [vmem:[#allocation83_spill] sm:$0xff] %v5412_v42  ;;  %v803_v11 = vpop.f32.mrb[74].mxu0  ;;  %v1679_v10 = vpop.xlane.xlu1 %1678 }
 0x185   : > { %v1772_v7 = vmul.f32 1.442695, %v1708_v62  ;;  %v5415_v0 = vadd.f32 %v803_v11, %v5023_v45  ;;  %v5417_v13 = vpop.f32.mrb[75].mxu0  ;;  %1652 = vmax.xlane.f32.xlu0 %v5409_v6 }
 0x186   : > { %8177 = vst [vmem:[#allocation84_spill] sm:$0xff] %v5417_v13  ;;  %v1677_v50 = vpop.xlane.xlu0 %1676 }
 0x187   : > { %4362 = vpow2.f32 %v1772_v7  ;;  %v1756_v8 = vsub.f32 %v5036_v53, %v1677_v50  ;;  %1654 = vmax.xlane.f32.xlu1 %v5415_v0  ;;  %v1757_v7 = vsub.f32 %v5039_v54, %v1679_v10 }
 0x188   : > { %4034 = vmatmul.mubr.msk.bf16.gmra.mrb[108].mxu0 %vm488_vm0, %v4873_v19  ;;  %3941 = vmatmul.mubr.msk.bf16.gmra.mrb[144].mxu1 %vm488_vm0, %v4840_v14 }
 0x189   : > { %v1868_v48 = vmul.f32 1.442695, %v1756_v8  ;;  %4037 = vmatprep.mubr.msk.bf16.mxu0 %vm488_vm0, %v4885_v21  ;;  %v1870_v54 = vmul.f32 1.442695, %v1757_v7  ;;  %1260 = vmatprep.mubr.bf16.mxu1 %v8114_v44 }
 0x18a   : > { %v809_v9 = vpop.f32.mrb[76].mxu0  ;;  %v1585_v62 = vpop.xlane.xlu1 %1584 }
 0x18b   : > { %4364 = vpow2.f32 %v1868_v48  ;;  %v5430_v11 = vadd.f32 %v809_v9, %v5023_v45  ;;  %v1710_v15 = vsub.f32 %v5055_v60, %v1585_v62  ;;  %v1583_v53 = vpop.xlane.xlu0 %1582  ;;  %v5433_v50 = vpop.f32.mrb[77].mxu0 }
 0x18c   : > { %8178 = vst [vmem:[#allocation85_spill] sm:$0xff] %v5433_v50  ;;  %v1709_v17 = vsub.f32 %v5052_v59, %v1583_v53  ;;  %v813_v42 = vpop.f32.mrb[78].mxu0 }
 0x18d   : > { %v5438_v12 = vadd.f32 %v813_v42, %v5023_v45  ;;  %v5440_v8 = vpop.f32.mrb[79].mxu0  ;;  %1656 = vmax.xlane.f32.xlu0 %v5430_v11  ;;  %v1776_v60 = vmul.f32 1.442695, %v1710_v15 }
 0x18e   : > { %8179 = vst [vmem:[#allocation86_spill] sm:$0xff] %v5440_v8  ;;  %v1774_v48 = vmul.f32 1.442695, %v1709_v17  ;;  %v1587_v9 = vpop.xlane.xlu1 %1586 }
 0x18f   : > { %v1681_v62 = vpop.xlane.xlu0 %1680  ;;  %1658 = vmax.xlane.f32.xlu1 %v5438_v12  ;;  %v1711_v21 = vsub.f32 %v5071_v5, %v1587_v9 }
 0x190   : > { %4366 = vpow2.f32 %v1774_v48  ;;  %v1758_v59 = vsub.f32 %v5066_v3, %v1681_v62  ;;  %4038 = vmatmul.mubr.msk.bf16.gmra.mrb[112].mxu0 %vm488_vm0, %v4891_v22  ;;  %3942 = vmatmul.mubr.msk.bf16.gmra.mrb[148].mxu1 %vm488_vm0, %v4852_v16 }
 0x191   : > { %v5451_v42 = vpop.eup %4362  ;;  %4368 = vpow2.f32 %v1776_v60  ;;  %4041 = vmatprep.mubr.msk.bf16.mxu0 %vm488_vm0, %v4897_v23  ;;  %v1778_v5 = vmul.f32 1.442695, %v1711_v21  ;;  %1270 = vmatprep.mubr.bf16.mxu1 %v8114_v44 }
 0x192   : > { %v1683_v10 = vpop.xlane.xlu1 %1682  ;;  %1900 = vadd.xlane.f32.xlu0 %v5451_v42  ;;  %v819_v19 = vpop.f32.mrb[80].mxu0  ;;  %v1872_v15 = vmul.f32 1.442695, %v1758_v59  ;;  %4370 = vpow2.f32 %v1870_v54 }
 0x193   : > { %v1589_v53 = vpop.xlane.xlu0 %1588  ;;  %v5455_v17 = vpop.f32.mrb[81].mxu0  ;;  %v5464_v62 = vadd.f32 %v819_v19, %v5023_v45  ;;  %v1759_v9 = vsub.f32 %v5079_v31, %v1683_v10 }
 0x194   : > { %8180 = vst [vmem:[#allocation87_spill] sm:$0xff] %v5455_v17  ;;  %v823_v3 = vpop.f32.mrb[82].mxu0  ;;  %4372 = vpow2.f32 %v1872_v15  ;;  %v1712_v60 = vsub.f32 %v5082_v34, %v1589_v53 }
 0x195   : > { %v5458_v7 = vpop.eup %4364  ;;  %v5460_v14 = vpop.f32.mrb[83].mxu0  ;;  %4374 = vpow2.f32 %v1778_v5  ;;  %v1874_v31 = vmul.f32 1.442695, %v1759_v9 }
 0x196   : > { %8181 = vst [vmem:[#allocation88_spill] sm:$0xff] %v5460_v14  ;;  %v1591_v48 = vpop.xlane.xlu1 %1590  ;;  %1996 = vadd.xlane.f32.xlu0 %v5458_v7  ;;  %v1780_v15 = vmul.f32 1.442695, %v1712_v60 }
 0x197   : > { %v1685_v54 = vpop.xlane.xlu0 %1684  ;;  %v1713_v5 = vsub.f32 %v5098_v57, %v1591_v48 }
 0x198   : > { %v1760_v34 = vsub.f32 %v5093_v51, %v1685_v54  ;;  %4042 = vmatmul.mubr.msk.bf16.gmra.mrb[116].mxu0 %vm488_vm0, %v4903_v24  ;;  %4376 = vpow2.f32 %v1780_v15  ;;  %v5495_v54 = vadd.f32 %v823_v3, %v5023_v45  ;;  %3943 = vmatmul.mubr.msk.bf16.gmra.mrb[152].mxu1 %vm488_vm0, %v4864_v18 }
 0x199   : > { %4045 = vmatprep.mubr.msk.bf16.mxu0 %vm488_vm0, %v4909_v25  ;;  %4378 = vpow2.f32 %v1874_v31  ;;  %1280 = vmatprep.mubr.bf16.mxu1 %v8114_v44  ;;  %v1782_v18 = vmul.f32 1.442695, %v1713_v5 }
 0x19a   : > { %v5475_v59 = vpop.eup %4366  ;;  %v1687_v19 = vpop.xlane.xlu1 %1686  ;;  %1660 = vmax.xlane.f32.xlu0 %v5464_v62  ;;  %v1876_v51 = vmul.f32 1.442695, %v1760_v34 }
 0x19b   : > { %v829_v22 = vpop.f32.mrb[84].mxu0  ;;  %1902 = vadd.xlane.f32.xlu1 %v5475_v59  ;;  %v1593_v23 = vpop.xlane.xlu0 %1592  ;;  %v1761_v34 = vsub.f32 %v5106_v58, %v1687_v19 }
 0x19c   : > { %v5480_v53 = vpop.f32.mrb[85].mxu0  ;;  %v5482_v16 = vpop.eup %4368  ;;  %v5507_v15 = vadd.f32 %v829_v22, %v5023_v45  ;;  %4380 = vpow2.f32 %v1876_v51  ;;  %v1714_v25 = vsub.f32 %v5109_v32, %v1593_v23 }
 0x19d   : > { %8182 = vst [vmem:[#allocation89_spill] sm:$0xff] %v5480_v53  ;;  %v833_v10 = vpop.f32.mrb[86].mxu0  ;;  %v5486_v17 = vpop.eup %4370  ;;  %4382 = vpow2.f32 %v1782_v18  ;;  %v1878_v58 = vmul.f32 1.442695, %v1761_v34 }
 0x19e   : > { %v5484_v21 = vpop.f32.mrb[87].mxu0  ;;  %v5488_v50 = vpop.xlane.xlu1 %1594  ;;  %1904 = vadd.xlane.f32.xlu0 %v5482_v16  ;;  %v1784_v32 = vmul.f32 1.442695, %v1714_v25 }
 0x19f   : > { %8183 = vst [vmem:[#allocation90_spill] sm:$0xff] %v5484_v21  ;;  %1998 = vadd.xlane.f32.xlu1 %v5486_v17  ;;  %v1689_v60 = vpop.xlane.xlu0 %1688  ;;  %v5502_v9 = vpop.eup %4372 }
 0x1a0   : > { %v5516_v21 = vpop.eup %4374  ;;  %4046 = vmatmul.mubr.msk.bf16.gmra.mrb[120].mxu0 %vm488_vm0, %v4915_v26  ;;  %v1762_v22 = vsub.f32 %v5120_v46, %v1689_v60  ;;  %3944 = vmatmul.mubr.msk.bf16.gmra.mrb[156].mxu1 %vm488_vm0, %v4876_v20  ;;  %4384 = vpow2.f32 %v1784_v32  ;;  %v1715_v20 = vsub.f32 %v5125_v63, %v5488_v50 }
 0x1a1   : > { %4049 = vmatprep.mubr.msk.bf16.mxu0 %vm488_vm0, %v4921_v27  ;;  %v5538_v27 = vadd.f32 %v833_v10, %v5023_v45  ;;  %4386 = vpow2.f32 %v1878_v58 }
 0x1a2   : > { %v1691_v24 = vpop.xlane.xlu1 %1690  ;;  %2000 = vadd.xlane.f32.xlu0 %v5502_v9  ;;  %v839_v3 = vpop.f32.mrb[88].mxu0  ;;  %v1880_v46 = vmul.f32 1.442695, %v1762_v22  ;;  %v1786_v50 = vmul.f32 1.442695, %v1715_v20 }
 0x1a3   : > { %1662 = vmax.xlane.f32.xlu1 %v5495_v54  ;;  %v1597_v57 = vpop.xlane.xlu0 %1596  ;;  %v5511_v48 = vpop.f32.mrb[89].mxu0  ;;  %v5552_v32 = vadd.f32 %v839_v3, %v5023_v45  ;;  %v1763_v22 = vsub.f32 %v5133_v43, %v1691_v24 }
 0x1a4   : > { %8184 = vst [vmem:[#allocation91_spill] sm:$0xff] %v5511_v48  ;;  %v843_v31 = vpop.f32.mrb[90].mxu0  ;;  %v5529_v19 = vpop.eup %4376  ;;  %4388 = vpow2.f32 %v1880_v46  ;;  %v1716_v10 = vsub.f32 %v5136_v41, %v1597_v57 }
 0x1a5   : > { %v5514_v53 = vpop.f32.mrb[91].mxu0  ;;  %v5531_v51 = vpop.eup %4378  ;;  %4390 = vpow2.f32 %v1786_v50  ;;  %v1882_v41 = vmul.f32 1.442695, %v1763_v22  ;;  %v8190_v50 = vld [vmem:[#allocation31_spill] sm:$0xff] }
 0x1a6   : > { %8185 = vst [vmem:[#allocation92_spill] sm:$0xff] %v5514_v53  ;;  %v5518_v14 = vpop.xlane.xlu1 %1598  ;;  %1664 = vmax.xlane.f32.xlu0 %v5507_v15  ;;  %v5546_v34 = vpop.eup %4380  ;;  %v1788_v3 = vmul.f32 1.442695, %v1716_v10 }
 0x1a7   : > { %1906 = vadd.xlane.f32.xlu1 %v5516_v21  ;;  %v1693_v23 = vpop.xlane.xlu0 %1692 }
 0x1a8   : > { %4050 = vmatmul.mubr.msk.bf16.gmra.mrb[124].mxu0 %vm488_vm0, %v4927_v28  ;;  %v1764_v28 = vsub.f32 %v5147_v47, %v1693_v23  ;;  %4392 = vpow2.f32 %v1788_v3  ;;  %v5576_v47 = vadd.f32 %v843_v31, %v5023_v45  ;;  %v8188_v23 = vld [vmem:[#allocation26_spill] sm:$0xff] }
 0x1a9   : > { %4053 = vmatprep.mubr.msk.bf16.mxu0 %vm488_vm0, %v4933_v29  ;;  %4394 = vpow2.f32 %v1882_v41  ;;  %v1717_v20 = vsub.f32 %v8188_v23, %v5518_v14  ;;  %v8193_v41 = vld [vmem:[#allocation35_spill] sm:$0xff] }
 0x1aa   : > { %v5533_v5 = vpop.xlane.xlu1 %1694  ;;  %1908 = vadd.xlane.f32.xlu0 %v5529_v19  ;;  %v849_v26 = vpop.f32.mrb[92].mxu0  ;;  %v1884_v29 = vmul.f32 1.442695, %v1764_v28 }
 0x1ab   : > { %2002 = vadd.xlane.f32.xlu1 %v5531_v51  ;;  %v1601_v60 = vpop.xlane.xlu0 %1600  ;;  %v5540_v25 = vpop.f32.mrb[93].mxu0  ;;  %v1790_v22 = vmul.f32 1.442695, %v1717_v20 }
 0x1ac   : > { %8186 = vst [vmem:[#allocation93_spill] sm:$0xff] %v5540_v25  ;;  %v5544_v18 = vpop.f32.mrb[94].mxu0  ;;  %v5561_v25 = vpop.eup %4382  ;;  %v1718_v43 = vsub.f32 %v5163_v2, %v1601_v60  ;;  %v5586_v2 = vadd.f32 %v849_v26, %v5023_v45  ;;  %4396 = vpow2.f32 %v1884_v29 }
 0x1ad   : > { %v5548_v48 = vpop.f32.mrb[95].mxu0  ;;  %v5566_v46 = vpop.eup %4384 }
 0x1ae   : > { %8187 = vst [vmem:[#allocation94_spill] sm:$0xff] %v5548_v48  ;;  %2004 = vadd.xlane.f32.xlu0 %v5546_v34  ;;  %v1603_v58 = vpop.xlane.xlu1 %1602  ;;  %v5568_v48 = vpop.eup %4386  ;;  %8189 = vst [vmem:[#allocation26_spill] sm:$0xff] %v5586_v2  ;;  %v1792_v60 = vmul.f32 1.442695, %v1718_v43 }
 0x1af   : > { %1666 = vmax.xlane.f32.xlu1 %v5538_v27  ;;  %v1697_v63 = vpop.xlane.xlu0 %1696  ;;  %v5582_v10 = vpop.eup %4388 }
 0x1b0   : > { %4054 = vmatmul.mubr.msk.bf16.gmra.mrb[128].mxu0 %vm488_vm0, %v4939_v30  ;;  %v1766_v31 = vsub.f32 %v8190_v50, %v1697_v63  ;;  %v5592_v14 = vpop.eup %4390  ;;  %4398 = vpow2.f32 %v1792_v60 }
 0x1b1   : > { %4057 = vmatprep.mubr.msk.bf16.mxu0 %vm488_vm0, %v4957_v35  ;;  %v8191_v35 = vld [vmem:[#allocation27_spill] sm:$0xff]  ;;  %8192 = vst [vmem:[#allocation31_spill] sm:$0xff] %v5592_v14  ;;  %4400 = vpow2.f32 %v1790_v22 }
 0x1b2   : > { %1668 = vmax.xlane.f32.xlu0 %v5552_v32  ;;  %v1699_v24 = vpop.xlane.xlu1 %1698  ;;  %v1765_v3 = vsub.f32 %v8191_v35, %v5533_v5  ;;  %v1888_v26 = vmul.f32 1.442695, %v1766_v31  ;;  %v8194_v5 = vld [vmem:[#allocation33_spill] sm:$0xff]  ;;  %v5602_v20 = vpop.eup %4392  ;;  %v8197_v31 = vld [vmem:[#allocation34_spill] sm:$0xff] }
 0x1b3   : > { %1910 = vadd.xlane.f32.xlu1 %v5561_v25  ;;  %v1605_v57 = vpop.xlane.xlu0 %1604  ;;  %v1719_v43 = vsub.f32 %v8194_v5, %v1603_v58  ;;  %8195 = vst [vmem:[#allocation27_spill] sm:$0xff] %v5602_v20  ;;  %v5604_v50 = vpop.eup %4394  ;;  %v1767_v22 = vsub.f32 %v8197_v31, %v1699_v24 }
 0x1b4   : > { %v1720_v29 = vsub.f32 %v8193_v41, %v1605_v57  ;;  %v1886_v63 = vmul.f32 1.442695, %v1765_v3  ;;  %4402 = vpow2.f32 %v1888_v26 }
 0x1b5   : > { %v1794_v58 = vmul.f32 1.442695, %v1719_v43 }
 0x1b6   : > { %1912 = vadd.xlane.f32.xlu0 %v5566_v46  ;;  %v1607_v28 = vpop.xlane.xlu1 %1606  ;;  %4404 = vpow2.f32 %v1886_v63  ;;  %v5614_v35 = vpop.eup %4396 }
 0x1b7   : > { %2006 = vadd.xlane.f32.xlu1 %v5568_v48  ;;  %v1701_v30 = vpop.xlane.xlu0 %1700  ;;  %8198 = vst [vmem:[#allocation33_spill] sm:$0xff] %v5614_v35 }
 0x1b8   : > { %4058 = vmatmul.mubr.msk.bf16.gmra.mrb[132].mxu0 %vm488_vm0, %v4966_v36  ;;  %v1796_v36 = vmul.f32 1.442695, %v1720_v29  ;;  %v1768_v57 = vsub.f32 %v5201_v55, %v1701_v30 }
 0x1b9   : > { %4061 = vmatprep.mubr.msk.bf16.mxu0 %vm488_vm0, %v4975_v37  ;;  %v5611_v37 = vadd.f32 %v5544_v18, %v5023_v45  ;;  %v1890_v45 = vmul.f32 1.442695, %v1767_v22  ;;  %v8199_v18 = vld [vmem:[#allocation40_spill] sm:$0xff] }
 0x1ba   : > { %2008 = vadd.xlane.f32.xlu0 %v5582_v10  ;;  %v1703_v60 = vpop.xlane.xlu1 %1702  ;;  %4406 = vpow2.f32 %v1796_v36  ;;  %v1892_v55 = vmul.f32 1.442695, %v1768_v57  ;;  %v1721_v24 = vsub.f32 %v8199_v18, %v1607_v28  ;;  %v5624_v26 = vpop.eup %4398 }
 0x1bb   : > { %1670 = vmax.xlane.f32.xlu1 %v5576_v47  ;;  %v1609_v23 = vpop.xlane.xlu0 %1608  ;;  %8196 = vst [vmem:[#allocation35_spill] sm:$0xff] %v5611_v37  ;;  %4408 = vpow2.f32 %v1794_v58  ;;  %8200 = vst [vmem:[#allocation34_spill] sm:$0xff] %v5624_v26  ;;  %v5626_v29 = vpop.eup %4400  ;;  %v1769_v63 = vsub.f32 %v5214_v33, %v1703_v60  ;;  %v4618_v58 = vld [vmem:[%s4786_s9 + $0xc0] sm:$0xff]  }
 0x1bc   : > { %v1722_v30 = vsub.f32 %v5217_v49, %v1609_v23  ;;  %8201 = vst [vmem:[#allocation40_spill] sm:$0xff] %v5626_v29  ;;  %4410 = vpow2.f32 %v1892_v55  ;;  %v8205_v60 = vld [vmem:[#allocation45_spill] sm:$0xff] }
 0x1bd   : > { %4412 = vpow2.f32 %v1890_v45  ;;  %v1894_v33 = vmul.f32 1.442695, %v1769_v63 }
 0x1be   : > { %1672 = vmax.xlane.f32.xlu0 %v5586_v2  ;;  %v1611_v41 = vpop.xlane.xlu1 %1610  ;;  %v5632_v28 = vpop.eup %4402 }
 0x1bf   : > { %1914 = vadd.xlane.f32.xlu1 %v5592_v14  ;;  %v1705_v3 = vpop.xlane.xlu0 %1704  ;;  %8202 = vst [vmem:[#allocation95_spill] sm:$0xff] %v5632_v28  ;;  %v1723_v31 = vsub.f32 %v8205_v60, %v1611_v41 }
 0x1c0   : > { %4062 = vmatmul.mubr.msk.bf16.gmra.mrb[136].mxu0 %vm488_vm0, %v4984_v38  ;;  %v1800_v38 = vmul.f32 1.442695, %v1722_v30  ;;  %v1770_v49 = vsub.f32 %v5228_v61, %v1705_v3  ;;  %v5634_v43 = vpop.eup %4404  ;;  %v8204_v61 = vld [vmem:[#allocation47_spill] sm:$0xff] }
 0x1c1   : > { %4065 = vmatprep.mubr.msk.bf16.mxu0 %vm488_vm0, %v4993_v39  ;;  %v1798_v39 = vmul.f32 1.442695, %v1721_v24  ;;  %8203 = vst [vmem:[#allocation96_spill] sm:$0xff] %v5634_v43  ;;  %v8208_v30 = vld [vmem:[#allocation51_spill] sm:$0xff]  ;;  %v1802_v18 = vmul.f32 1.442695, %v1723_v31 }
 0x1c2   : > { %1916 = vadd.xlane.f32.xlu0 %v5602_v20  ;;  %4414 = vpow2.f32 %v1800_v38  ;;  %v1896_v23 = vmul.f32 1.442695, %v1770_v49  ;;  %v1707_v36 = vpop.xlane.xlu1 %1706  ;;  %v8209_v24 = vld [vmem:[#allocation46_spill] sm:$0xff]  ;;  %v8355_v20 = vmov 3  }
 0x1c3   : > { %2010 = vadd.xlane.f32.xlu1 %v5604_v50  ;;  %v1613_v5 = vpop.xlane.xlu0 %1612  ;;  %4416 = vpow2.f32 %v1798_v39  ;;  %v1771_v38 = vsub.f32 %v8209_v24, %v1707_v36  ;;  %v8216_v24 = vld [vmem:[#allocation59_spill] sm:$0xff] }
 0x1c4   : > { %v1724_v57 = vsub.f32 %v8204_v61, %v1613_v5  ;;  %v5644_v3 = vpop.eup %4406  ;;  %4418 = vpow2.f32 %v1896_v23  ;;  %v4619_v5 = vld [vmem:[%s4786_s9 + $0xc8] sm:$0xff]   ;;  %v8212_v61 = vld [vmem:[#allocation55_spill] sm:$0xff] }
 0x1c5   : > { %8206 = vst [vmem:[#allocation47_spill] sm:$0xff] %v5644_v3  ;;  %v5646_v55 = vpop.eup %4408  ;;  %4420 = vpow2.f32 %v1894_v33  ;;  %v1898_v36 = vmul.f32 1.442695, %v1771_v38  ;;  %v8213_v33 = vld [vmem:[#allocation50_spill] sm:$0xff]  ;;  %v8217_v38 = vld [vmem:[#allocation53_spill] sm:$0xff] }
 0x1c6   : > { %2012 = vadd.xlane.f32.xlu0 %v5614_v35  ;;  %8207 = vst [vmem:[#allocation45_spill] sm:$0xff] %v5646_v55  ;;  %v5652_v49 = vpop.eup %4410  ;;  %v1615_v39 = vpop.xlane.xlu1 %1614 }
 0x1c7   : > { %1674 = vmax.xlane.f32.xlu1 %v5611_v37  ;;  %8210 = vst [vmem:[#allocation51_spill] sm:$0xff] %v5652_v49  ;;  %v5654_v63 = vpop.eup %4412  ;;  %v1725_v60 = vsub.f32 %v8213_v33, %v1615_v39  ;;  %v4621_v33 = vld [vmem:[%s4786_s9 + $0xd8] sm:$0xff]   ;;  %v8347_v37 = vmov 1  }
 0x1c8   : > { %4066 = vmatmul.mubr.msk.bf16.gmra.mrb[140].mxu0 %vm488_vm0, %v5002_v40  ;;  %v1804_v40 = vmul.f32 1.442695, %v1724_v57  ;;  %8211 = vst [vmem:[#allocation46_spill] sm:$0xff] %v5654_v63 }
 0x1c9   : > { %4069 = vmatprep.mubr.msk.bf16.mxu0 %vm488_vm0, %v4618_v58  ;;  %v4620_v58 = vld [vmem:[%s4786_s9 + $0xd0] sm:$0xff]  }
 0x1ca   : > { %1920 = vadd.xlane.f32.xlu0 %v5624_v26  ;;  %v1617_v22 = vpop.xlane.xlu0 %1616  ;;  %4422 = vpow2.f32 %v1804_v40  ;;  %v8065_v26 = vmov 3  }
 0x1cb   : > { %1918 = vadd.xlane.f32.xlu1 %v5626_v29  ;;  %v1726_v45 = vsub.f32 %v8208_v30, %v1617_v22  ;;  %4424 = vpow2.f32 %v1802_v18  ;;  %v1806_v18 = vmul.f32 1.442695, %v1725_v60  ;;  %v8220_v60 = vld [vmem:[#allocation57_spill] sm:$0xff] }
 0x1cc   : > { %v5664_v31 = vpop.eup %4414  ;;  %v1619_v22 = vpop.xlane.xlu1 %1618 }
 0x1cd   : > { %v1808_v23 = vmul.f32 1.442695, %v1726_v45  ;;  %8214 = vst [vmem:[#allocation55_spill] sm:$0xff] %v5664_v31  ;;  %v5666_v30 = vpop.eup %4416  ;;  %v1727_v39 = vsub.f32 %v8217_v38, %v1619_v22  ;;  %v5685_v38 = vpop.f32.mrb[32].mxu1 }
 0x1ce   : > { %2016 = vadd.xlane.f32.xlu0 %v5632_v28  ;;  %8215 = vst [vmem:[#allocation50_spill] sm:$0xff] %v5666_v30 }
 0x1cf   : > { %2014 = vadd.xlane.f32.xlu1 %v5634_v43  ;;  %4426 = vpow2.f32 %v1808_v23 }
 0x1d0   : > { %4070 = vmatmul.mubr.msk.bf16.gmra.mrb[144].mxu0 %vm488_vm0, %v4619_v5  ;;  %4428 = vpow2.f32 %v1898_v36  ;;  %v5672_v5 = vpop.eup %4418  ;;  %v1810_v36 = vmul.f32 1.442695, %v1727_v39 }
 0x1d1   : > { %4073 = vmatprep.mubr.msk.bf16.mxu0 %vm488_vm0, %v4620_v58  ;;  %8218 = vst [vmem:[#allocation59_spill] sm:$0xff] %v5672_v5  ;;  %v5674_v58 = vpop.eup %4420 }
 0x1d2   : > { %1924 = vadd.xlane.f32.xlu0 %v5644_v3  ;;  %v1621_v41 = vpop.xlane.xlu0 %1620  ;;  %8219 = vst [vmem:[#allocation53_spill] sm:$0xff] %v5674_v58 }
 0x1d3   : > { %1922 = vadd.xlane.f32.xlu1 %v5646_v55  ;;  %v1728_v57 = vsub.f32 %v8212_v61, %v1621_v41 }
 0x1d4   : > { %v1623_v61 = vpop.xlane.xlu1 %1622 }
 0x1d5   : > { %v1812_v45 = vmul.f32 1.442695, %v1728_v57  ;;  %v4622_v57 = vld [vmem:[%s4786_s9 + $0xe0] sm:$0xff]   ;;  %v1729_v22 = vsub.f32 %v8220_v60, %v1623_v61 }
 0x1d6   : > { %2020 = vadd.xlane.f32.xlu0 %v5652_v49  ;;  %v8234_v49 = vld [vmem:[#allocation69_spill] sm:$0xff] }
 0x1d7   : > { %2018 = vadd.xlane.f32.xlu1 %v5654_v63  ;;  %4430 = vpow2.f32 %v1812_v45  ;;  %v1814_v61 = vmul.f32 1.442695, %v1729_v22  ;;  %v4624_v22 = vld [vmem:[%s4786_s9 + $0xf0] sm:$0xff]  }
 0x1d8   : > { %4074 = vmatmul.mubr.msk.bf16.gmra.mrb[148].mxu0 %vm488_vm0, %v4621_v33  ;;  %4432 = vpow2.f32 %v1806_v18  ;;  %v8223_v18 = vld [vmem:[#allocation63_spill] sm:$0xff]  ;;  %v8224_v33 = vld [vmem:[#allocation61_spill] sm:$0xff] }
 0x1d9   : > { %4077 = vmatprep.mubr.msk.bf16.mxu0 %vm488_vm0, %v4622_v57 }
 0x1da   : > { %1928 = vadd.xlane.f32.xlu0 %v5664_v31  ;;  %v1625_v40 = vpop.xlane.xlu0 %1624 }
 0x1db   : > { %1926 = vadd.xlane.f32.xlu1 %v5666_v30  ;;  %v1730_v41 = vsub.f32 %v8216_v24, %v1625_v40  ;;  %v5683_v40 = vpop.eup %4422 }
 0x1dc   : > { %8221 = vst [vmem:[#allocation57_spill] sm:$0xff] %v5683_v40  ;;  %v1627_v24 = vpop.xlane.xlu1 %1626  ;;  %v5687_v53 = vpop.eup %4424 }
 0x1dd   : > { %v1816_v23 = vmul.f32 1.442695, %v1730_v41  ;;  %8222 = vst [vmem:[#allocation97_spill] sm:$0xff] %v5687_v53  ;;  %v5690_v41 = vpop.f32.mrb[33].mxu1  ;;  %v1731_v57 = vsub.f32 %v8224_v33, %v1627_v24  ;;  %v5695_v60 = vpop.eup %4426 }
 0x1de   : > { %2024 = vadd.xlane.f32.xlu0 %v5672_v5  ;;  %8225 = vst [vmem:[#allocation63_spill] sm:$0xff] %v5695_v60  ;;  %v5697_v5 = vpop.f32.mrb[34].mxu1 }
 0x1df   : > { %2022 = vadd.xlane.f32.xlu1 %v5674_v58  ;;  %4434 = vpow2.f32 %v1816_v23  ;;  %v5702_v23 = vpop.f32.mrb[35].mxu1  ;;  %v1818_v24 = vmul.f32 1.442695, %v1731_v57 }
 0x1e0   : > { %4436 = vpow2.f32 %v1810_v36  ;;  %v5707_v36 = vpop.f32.mrb[36].mxu1 }
 0x1e2   : > { %1932 = vadd.xlane.f32.xlu0 %v5683_v40  ;;  %v1629_v45 = vpop.xlane.xlu0 %1628  ;;  %v5699_v40 = vpop.eup %4428 }
 0x1e3   : > { %1930 = vadd.xlane.f32.xlu1 %v5687_v53  ;;  %v1732_v39 = vsub.f32 %v8223_v18, %v1629_v45  ;;  %8226 = vst [vmem:[#allocation61_spill] sm:$0xff] %v5699_v40  ;;  %v4623_v53 = vld [vmem:[%s4786_s9 + $0xe8] sm:$0xff]   ;;  %v8227_v45 = vld [vmem:[#allocation65_spill] sm:$0xff]  ;;  %v5714_v33 = vpop.eup %4430 }
 0x1e4   : > { %v1631_v13 = vpop.xlane.xlu1 %1630  ;;  %4078 = vmatmul.mubr.msk.bf16.gmra.mrb[152].mxu0 %vm488_vm0, %v4623_v53  ;;  %8228 = vst [vmem:[#allocation65_spill] sm:$0xff] %v5714_v33  ;;  %v5718_v31 = vpop.eup %4432 }
 0x1e5   : > { %v1820_v8 = vmul.f32 1.442695, %v1732_v39  ;;  %4081 = vmatprep.mubr.msk.bf16.mxu0 %vm488_vm0, %v4624_v22  ;;  %v1733_v18 = vsub.f32 %v8227_v45, %v1631_v13  ;;  %v5712_v39 = vpop.f32.mrb[37].mxu1  ;;  %8229 = vst [vmem:[#allocation98_spill] sm:$0xff] %v5718_v31 }
 0x1e6   : > { %1936 = vadd.xlane.f32.xlu0 %v5695_v60  ;;  %v5716_v60 = vpop.f32.mrb[38].mxu1 }
 0x1e7   : > { %4438 = vpow2.f32 %v1820_v8  ;;  %2026 = vadd.xlane.f32.xlu1 %v5699_v40  ;;  %v5721_v53 = vpop.f32.mrb[39].mxu1  ;;  %v1822_v13 = vmul.f32 1.442695, %v1733_v18 }
 0x1e8   : > { %4440 = vpow2.f32 %v1814_v61  ;;  %v8230_v61 = vld [vmem:[#allocation67_spill] sm:$0xff]  ;;  %v5725_v22 = vpop.f32.mrb[40].mxu1 }
 0x1e9   : > { %8231 = vst [vmem:[#allocation67_spill] sm:$0xff] %v5725_v22  ;;  %4442 = vpow2.f32 %v1818_v24  ;;  %v5727_v40 = vpop.f32.mrb[41].mxu1  ;;  %v5729_v58 = vpop.eup %4434 }
 0x1ea   : > { %1940 = vadd.xlane.f32.xlu0 %v5714_v33  ;;  %v1633_v8 = vpop.xlane.xlu0 %1632  ;;  %8232 = vst [vmem:[#allocation99_spill] sm:$0xff] %v5727_v40  ;;  %8233 = vst [vmem:[#allocation100_spill] sm:$0xff] %v5729_v58  ;;  %v5732_v3 = vpop.f32.mrb[42].mxu1 }
 0x1eb   : > { %1934 = vadd.xlane.f32.xlu1 %v5718_v31  ;;  %v1734_v57 = vsub.f32 %v8230_v61, %v1633_v8  ;;  %8235 = vst [vmem:[#allocation69_spill] sm:$0xff] %v5732_v3  ;;  %v5734_v63 = vpop.eup %4436  ;;  %v5737_v31 = vpop.f32.mrb[43].mxu1  ;;  %v4625_v8 = vld [vmem:[%s4786_s9 + $0xf8] sm:$0xff]   ;;  %s3836_s9 = sshll.u32 %s162_s8, 9 }
 0x1ec   : > { %v1635_v45 = vpop.xlane.xlu1 %1634  ;;  %8236 = vst [vmem:[#allocation101_spill] sm:$0xff] %v5734_v63  ;;  %8237 = vst [vmem:[#allocation102_spill] sm:$0xff] %v5737_v31  ;;  %4082 = vmatmul.mubr.msk.bf16.gmra.mrb[156].mxu0 %vm488_vm0, %v4625_v8  ;;  %v5742_v24 = vpop.f32.mrb[44].mxu1  ;;  %s6231_s10 = scalar_lea.vmem [#allocation2], %s3836_s9 }
 0x1ed   : > { %v1824_v30 = vmul.f32 1.442695, %v1734_v57  ;;  %v1735_v33 = vsub.f32 %v8234_v49, %v1635_v45  ;;  %8238 = vst [vmem:[#allocation103_spill] sm:$0xff] %v5742_v24  ;;  %v5744_v61 = vpop.f32.mrb[45].mxu1  ;;  %s3770_s17 = sshll.u32 %s6231_s10, 4  ;;  %s7942_s17 = int_to_ptr.vmem [resolvable:$true] %s3770_s17 }
 0x1ee   : > { %1944 = vadd.xlane.f32.xlu0 %v5729_v58  ;;  %8239 = vst [vmem:[#allocation104_spill] sm:$0xff] %v5744_v61  ;;  %v5748_v57 = vpop.f32.mrb[46].mxu1  ;;  %v8246_v61 = vld [vmem:[#allocation72_spill] sm:$0xff]  ;;  %s4627_s16 = scalar_lea.vmem %s7942_s17, 8192  ;;  %p4634_p0 = scmp.lt.s32.totalorder %s7942_s17, %s4632_s27 }
 0x1ef   : > { %4444 = vpow2.f32 %v1824_v30  ;;  %1938 = vadd.xlane.f32.xlu1 %v5734_v63  ;;  %v1826_v18 = vmul.f32 1.442695, %v1735_v33  ;;  %8241 = vst [vmem:[#allocation106_spill] sm:$0xff] %v5748_v57  ;;  %v5753_v55 = vpop.f32.mrb[47].mxu1  ;;  %p4628_p11 = scmp.ne.s32.totalorder %s7942_s17, %s4627_s16  ;;  %p4635_p1 = scmp.lt.s32.totalorder %s4633_s28, %s4627_s16 }
 0x1f0   : > { %4446 = vpow2.f32 %v1822_v13  ;;  %8243 = vst [vmem:[#allocation108_spill] sm:$0xff] %v5753_v55  ;;  %v5757_v8 = vpop.f32.mrb[48].mxu1 }
 0x1f1   : > { %v5746_v49 = vpop.eup %4438  ;;  %8244 = vst [vmem:[#allocation109_spill] sm:$0xff] %v5757_v8  ;;  %4448 = vpow2.f32 %v1826_v18  ;;  %v5759_v13 = vpop.f32.mrb[49].mxu1  ;;  %p4629_p12 = pnand %p4628_p11, %p4756_p5  ;;  %p4636_p2 = por %p4635_p1, %p4634_p0 }
 0x1f2   : > { %8240 = vst [vmem:[#allocation105_spill] sm:$0xff] %v5746_v49  ;;  %v5750_v45 = vpop.eup %4440  ;;  %1948 = vadd.xlane.f32.xlu0 %v5746_v49  ;;  %v1637_v58 = vpop.xlane.xlu0 %1636  ;;  %8245 = vst [vmem:[#allocation110_spill] sm:$0xff] %v5759_v13 }
 0x1f3   : > { %8242 = vst [vmem:[#allocation107_spill] sm:$0xff] %v5750_v45  ;;  %1942 = vadd.xlane.f32.xlu1 %v5750_v45  ;;  %v1736_v30 = vsub.f32 %v5335_v56, %v1637_v58  ;;  %v5762_v24 = vpop.f32.mrb[50].mxu1  ;;  %v5764_v28 = vpop.eup %4442  ;;  %p4630_p13 = pneg %p4629_p12 }
 0x1f4   : > { %v1639_v33 = vpop.xlane.xlu1 %1638  ;;  %8247 = vst [vmem:[#allocation72_spill] sm:$0xff] %v5762_v24  ;;  %8248 = vst [vmem:[#allocation111_spill] sm:$0xff] %v5764_v28  ;;  %v5766_v49 = vpop.f32.mrb[51].mxu1 }
 0x1f5   : > { %v1828_v63 = vmul.f32 1.442695, %v1736_v30  ;;  %v1737_v57 = vsub.f32 %v8246_v61, %v1639_v33  ;;  %8249 = vst [vmem:[#allocation112_spill] sm:$0xff] %v5766_v49  ;;  %v5769_v56 = vpop.f32.mrb[52].mxu1  ;;  %p4637_p3 = pnand %p4636_p2, %p4630_p13 }
 0x1f6   : > { %8250 = vst [vmem:[#allocation113_spill] sm:$0xff] %v5769_v56  ;;  %v5771_v58 = vpop.f32.mrb[53].mxu1 }
 0x1f7   : > { %4450 = vpow2.f32 %v1828_v63  ;;  %v1830_v55 = vmul.f32 1.442695, %v1737_v57  ;;  %1946 = vadd.xlane.f32.xlu1 %v5764_v28  ;;  %8251 = vst [vmem:[#allocation114_spill] sm:$0xff] %v5771_v58  ;;  %v5775_v30 = vpop.f32.mrb[54].mxu1  ;;  %v8256_v63 = vld [vmem:[#allocation74_spill] sm:$0xff] }
 0x1f8   : > { %8253 = vst [vmem:[#allocation116_spill] sm:$0xff] %v5775_v30  ;;  %v5780_v24 = vpop.f32.mrb[55].mxu1 }
 0x1f9   : > { %v5773_v18 = vpop.eup %4444  ;;  %4452 = vpow2.f32 %v1830_v55  ;;  %8255 = vst [vmem:[#allocation118_spill] sm:$0xff] %v5780_v24  ;;  %v5784_v28 = vpop.f32.mrb[56].mxu1  ;;  %v8259_v55 = vld [vmem:[#allocation76_spill] sm:$0xff] }
 0x1fa   : > { %8252 = vst [vmem:[#allocation115_spill] sm:$0xff] %v5773_v18  ;;  %v5777_v61 = vpop.eup %4446  ;;  %1952 = vadd.xlane.f32.xlu0 %v5773_v18  ;;  %v1641_v33 = vpop.xlane.xlu0 %1640  ;;  %8257 = vst [vmem:[#allocation74_spill] sm:$0xff] %v5784_v28 }
 0x1fb   : > { %8254 = vst [vmem:[#allocation117_spill] sm:$0xff] %v5777_v61  ;;  %1950 = vadd.xlane.f32.xlu1 %v5777_v61  ;;  %v1738_v57 = vsub.f32 %v8256_v63, %v1641_v33  ;;  %v5786_v58 = vpop.f32.mrb[57].mxu1  ;;  %v5791_v13 = vpop.eup %4448 }
 0x1fc   : > { %v1643_v56 = vpop.xlane.xlu1 %1642  ;;  %8258 = vst [vmem:[#allocation119_spill] sm:$0xff] %v5786_v58  ;;  %v5789_v30 = vpop.f32.mrb[58].mxu1  ;;  %8261 = vst [vmem:[#allocation120_spill] sm:$0xff] %v5791_v13 }
 0x1fd   : > { %v1832_v49 = vmul.f32 1.442695, %v1738_v57  ;;  %v1739_v45 = vsub.f32 %v8259_v55, %v1643_v56  ;;  %8260 = vst [vmem:[#allocation76_spill] sm:$0xff] %v5789_v30  ;;  %v5793_v18 = vpop.f32.mrb[59].mxu1 }
 0x1fe   : > { %8262 = vst [vmem:[#allocation121_spill] sm:$0xff] %v5793_v18  ;;  %v5796_v61 = vpop.f32.mrb[60].mxu1 }
 0x1ff   : > { %4454 = vpow2.f32 %v1832_v49  ;;  %v1834_v24 = vmul.f32 1.442695, %v1739_v45  ;;  %1954 = vadd.xlane.f32.xlu1 %v5791_v13  ;;  %8263 = vst [vmem:[#allocation122_spill] sm:$0xff] %v5796_v61  ;;  %v5798_v33 = vpop.f32.mrb[61].mxu1 }
 0x200   : > { %8264 = vst [vmem:[#allocation123_spill] sm:$0xff] %v5798_v33  ;;  %v5802_v57 = vpop.f32.mrb[62].mxu1 }
 0x201   : > { %v5800_v63 = vpop.eup %4450  ;;  %4456 = vpow2.f32 %v1834_v24  ;;  %8266 = vst [vmem:[#allocation125_spill] sm:$0xff] %v5802_v57  ;;  %v5805_v55 = vpop.f32.mrb[63].mxu1 }
 0x202   : > { %8265 = vst [vmem:[#allocation124_spill] sm:$0xff] %v5800_v63  ;;  %1956 = vadd.xlane.f32.xlu0 %v5800_v63  ;;  %v1645_v56 = vpop.xlane.xlu0 %1644  ;;  %8267 = vst [vmem:[#allocation126_spill] sm:$0xff] %v5805_v55  ;;  %v5810_v45 = vpop.f32.mrb[64].mxu1 }
 0x203   : > { %v5807_v30 = vpop.eup %4452  ;;  %v1740_v49 = vsub.f32 %v5371_v52, %v1645_v56  ;;  %8269 = vst [vmem:[#allocation128_spill] sm:$0xff] %v5810_v45  ;;  %v5813_v33 = vpop.f32.mrb[65].mxu1 }
 0x204   : > { %8268 = vst [vmem:[#allocation127_spill] sm:$0xff] %v5807_v30  ;;  %v1647_v18 = vpop.xlane.xlu1 %1646  ;;  %1958 = vadd.xlane.f32.xlu1 %v5807_v30  ;;  %8270 = vst [vmem:[#allocation129_spill] sm:$0xff] %v5813_v33  ;;  %v5816_v57 = vpop.f32.mrb[66].mxu1 }
 0x205   : > { %v1836_v61 = vmul.f32 1.442695, %v1740_v49  ;;  %v1741_v24 = vsub.f32 %v5376_v1, %v1647_v18  ;;  %8271 = vst [vmem:[#allocation130_spill] sm:$0xff] %v5816_v57  ;;  %v5818_v63 = vpop.f32.mrb[67].mxu1 }
 0x206   : > { %8272 = vst [vmem:[#allocation131_spill] sm:$0xff] %v5818_v63  ;;  %v5820_v58 = vpop.f32.mrb[68].mxu1 }
 0x207   : > { %4458 = vpow2.f32 %v1836_v61  ;;  %v1838_v55 = vmul.f32 1.442695, %v1741_v24  ;;  %8273 = vst [vmem:[#allocation132_spill] sm:$0xff] %v5820_v58  ;;  %v5822_v13 = vpop.f32.mrb[69].mxu1 }
 0x208   : > { %8274 = vst [vmem:[#allocation133_spill] sm:$0xff] %v5822_v13  ;;  %v5826_v56 = vpop.f32.mrb[70].mxu1 }
 0x209   : > { %v5824_v52 = vpop.eup %4454  ;;  %4460 = vpow2.f32 %v1838_v55  ;;  %8276 = vst [vmem:[#allocation135_spill] sm:$0xff] %v5826_v56  ;;  %v5829_v33 = vpop.f32.mrb[71].mxu1  ;;  %v8281_v55 = vld [vmem:[#allocation81_spill] sm:$0xff] }
 0x20a   : > { %8275 = vst [vmem:[#allocation134_spill] sm:$0xff] %v5824_v52  ;;  %1960 = vadd.xlane.f32.xlu0 %v5824_v52  ;;  %v1649_v49 = vpop.xlane.xlu0 %1648  ;;  %8277 = vst [vmem:[#allocation136_spill] sm:$0xff] %v5829_v33  ;;  %v5834_v61 = vpop.f32.mrb[72].mxu1 }
 0x20b   : > { %v5831_v1 = vpop.eup %4456  ;;  %v1742_v18 = vsub.f32 %v5390_v4, %v1649_v49  ;;  %8279 = vst [vmem:[#allocation138_spill] sm:$0xff] %v5834_v61  ;;  %v5837_v13 = vpop.f32.mrb[73].mxu1 }
 0x20c   : > { %8278 = vst [vmem:[#allocation137_spill] sm:$0xff] %v5831_v1  ;;  %v1651_v24 = vpop.xlane.xlu1 %1650  ;;  %1962 = vadd.xlane.f32.xlu1 %v5831_v1  ;;  %8280 = vst [vmem:[#allocation139_spill] sm:$0xff] %v5837_v13  ;;  %v5840_v56 = vpop.f32.mrb[74].mxu1 }
 0x20d   : > { %v1840_v58 = vmul.f32 1.442695, %v1742_v18  ;;  %v1743_v63 = vsub.f32 %v8281_v55, %v1651_v24  ;;  %8282 = vst [vmem:[#allocation81_spill] sm:$0xff] %v5840_v56  ;;  %v5842_v57 = vpop.f32.mrb[75].mxu1 }
 0x20e   : > { %8283 = vst [vmem:[#allocation140_spill] sm:$0xff] %v5842_v57  ;;  %v5844_v45 = vpop.f32.mrb[76].mxu1 }
 0x20f   : > { %4462 = vpow2.f32 %v1840_v58  ;;  %v1842_v33 = vmul.f32 1.442695, %v1743_v63  ;;  %8284 = vst [vmem:[#allocation141_spill] sm:$0xff] %v5844_v45  ;;  %v5846_v52 = vpop.f32.mrb[77].mxu1 }
 0x210   : > { %8285 = vst [vmem:[#allocation142_spill] sm:$0xff] %v5846_v52  ;;  %v5850_v49 = vpop.f32.mrb[78].mxu1 }
 0x211   : > { %v5848_v4 = vpop.eup %4458  ;;  %4464 = vpow2.f32 %v1842_v33  ;;  %8287 = vst [vmem:[#allocation144_spill] sm:$0xff] %v5850_v49  ;;  %v5853_v13 = vpop.f32.mrb[79].mxu1 }
 0x212   : > { %8286 = vst [vmem:[#allocation143_spill] sm:$0xff] %v5848_v4  ;;  %1964 = vadd.xlane.f32.xlu0 %v5848_v4  ;;  %v1653_v18 = vpop.xlane.xlu0 %1652  ;;  %8288 = vst [vmem:[#allocation145_spill] sm:$0xff] %v5853_v13  ;;  %v5858_v58 = vpop.f32.mrb[80].mxu1 }
 0x213   : > { %v5855_v24 = vpop.eup %4460  ;;  %v1744_v55 = vsub.f32 %v5409_v6, %v1653_v18  ;;  %8290 = vst [vmem:[#allocation147_spill] sm:$0xff] %v5858_v58  ;;  %v5861_v52 = vpop.f32.mrb[81].mxu1 }
 0x214   : > { %8289 = vst [vmem:[#allocation146_spill] sm:$0xff] %v5855_v24  ;;  %v1655_v63 = vpop.xlane.xlu1 %1654  ;;  %1966 = vadd.xlane.f32.xlu1 %v5855_v24  ;;  %8291 = vst [vmem:[#allocation148_spill] sm:$0xff] %v5861_v52  ;;  %v5864_v49 = vpop.f32.mrb[82].mxu1 }
 0x215   : > { %v1844_v45 = vmul.f32 1.442695, %v1744_v55  ;;  %v1745_v33 = vsub.f32 %v5415_v0, %v1655_v63  ;;  %8292 = vst [vmem:[#allocation149_spill] sm:$0xff] %v5864_v49  ;;  %v5866_v57 = vpop.f32.mrb[83].mxu1 }
 0x216   : > { %8293 = vst [vmem:[#allocation150_spill] sm:$0xff] %v5866_v57  ;;  %v5868_v56 = vpop.f32.mrb[84].mxu1 }
 0x217   : > { %4466 = vpow2.f32 %v1844_v45  ;;  %v1846_v13 = vmul.f32 1.442695, %v1745_v33  ;;  %8294 = vst [vmem:[#allocation151_spill] sm:$0xff] %v5868_v56  ;;  %v5870_v61 = vpop.f32.mrb[85].mxu1 }
 0x218   : > { %8295 = vst [vmem:[#allocation152_spill] sm:$0xff] %v5870_v61  ;;  %v5874_v18 = vpop.f32.mrb[86].mxu1 }
 0x219   : > { %v5872_v6 = vpop.eup %4462  ;;  %4468 = vpow2.f32 %v1846_v13  ;;  %8297 = vst [vmem:[#allocation154_spill] sm:$0xff] %v5874_v18  ;;  %v5877_v52 = vpop.f32.mrb[87].mxu1 }
 0x21a   : > { %8296 = vst [vmem:[#allocation153_spill] sm:$0xff] %v5872_v6  ;;  %1968 = vadd.xlane.f32.xlu0 %v5872_v6  ;;  %v1657_v55 = vpop.xlane.xlu0 %1656  ;;  %8298 = vst [vmem:[#allocation155_spill] sm:$0xff] %v5877_v52  ;;  %v5882_v45 = vpop.f32.mrb[88].mxu1 }
 0x21b   : > { %v5879_v0 = vpop.eup %4464  ;;  %v1746_v63 = vsub.f32 %v5430_v11, %v1657_v55  ;;  %8300 = vst [vmem:[#allocation157_spill] sm:$0xff] %v5882_v45  ;;  %v5885_v61 = vpop.f32.mrb[89].mxu1 }
 0x21c   : > { %8299 = vst [vmem:[#allocation156_spill] sm:$0xff] %v5879_v0  ;;  %v1659_v33 = vpop.xlane.xlu1 %1658  ;;  %1970 = vadd.xlane.f32.xlu1 %v5879_v0  ;;  %8301 = vst [vmem:[#allocation158_spill] sm:$0xff] %v5885_v61  ;;  %v5888_v18 = vpop.f32.mrb[90].mxu1 }
 0x21d   : > { %v1848_v56 = vmul.f32 1.442695, %v1746_v63  ;;  %v1747_v13 = vsub.f32 %v5438_v12, %v1659_v33  ;;  %8302 = vst [vmem:[#allocation159_spill] sm:$0xff] %v5888_v18  ;;  %v5890_v57 = vpop.f32.mrb[91].mxu1 }
 0x21e   : > { %8303 = vst [vmem:[#allocation160_spill] sm:$0xff] %v5890_v57  ;;  %v5892_v58 = vpop.f32.mrb[92].mxu1 }
 0x21f   : > { %4470 = vpow2.f32 %v1848_v56  ;;  %v1850_v52 = vmul.f32 1.442695, %v1747_v13  ;;  %v1901_v49 = vpop.xlane.xlu0 %1900  ;;  %8304 = vst [vmem:[#allocation161_spill] sm:$0xff] %v5892_v58  ;;  %v5894_v11 = vpop.f32.mrb[93].mxu1 }
 0x220   : > { %8305 = vst [vmem:[#allocation162_spill] sm:$0xff] %v5894_v11  ;;  %v5898_v45 = vpop.f32.mrb[94].mxu1 }
 0x221   : > { %v5896_v55 = vpop.eup %4466  ;;  %4472 = vpow2.f32 %v1850_v52  ;;  %8307 = vst [vmem:[#allocation164_spill] sm:$0xff] %v5898_v45  ;;  %v5901_v63 = vpop.f32.mrb[95].mxu1 }
 0x222   : > { %8306 = vst [vmem:[#allocation163_spill] sm:$0xff] %v5896_v55  ;;  %1972 = vadd.xlane.f32.xlu0 %v5896_v55  ;;  %8308 = vst [vmem:[#allocation165_spill] sm:$0xff] %v5901_v63  ;;  %v5905_v18 = vpop.f32.mrb[96].mxu1 }
 0x223   : > { %v5903_v12 = vpop.eup %4468  ;;  %v1997_v33 = vpop.xlane.xlu0 %1996  ;;  %8310 = vst [vmem:[#allocation167_spill] sm:$0xff] %v5905_v18 }
 0x224   : > { %8309 = vst [vmem:[#allocation166_spill] sm:$0xff] %v5903_v12  ;;  %1974 = vadd.xlane.f32.xlu1 %v5903_v12  ;;  %v5908_v56 = vpop.f32.mrb[97].mxu1  ;;  %4474 = vrcp.f32 %v1997_v33 }
 0x225   : > { %8311 = vst [vmem:[#allocation168_spill] sm:$0xff] %v5908_v56  ;;  %v5910_v13 = vpop.f32.mrb[98].mxu1  ;;  %4476 = vrcp.f32 %v1901_v49 }
 0x226   : > { %8312 = vst [vmem:[#allocation169_spill] sm:$0xff] %v5910_v13  ;;  %v5912_v11 = vpop.f32.mrb[99].mxu1 }
 0x227   : > { %8313 = vst [vmem:[#allocation170_spill] sm:$0xff] %v5912_v11  ;;  %v5914_v52 = vpop.xlane.xlu0 %1660  ;;  %v5916_v45 = vpop.f32.mrb[100].mxu1 }
 0x228   : > { %8314 = vst [vmem:[#allocation171_spill] sm:$0xff] %v5916_v45  ;;  %v1903_v61 = vpop.xlane.xlu1 %1902  ;;  %v5918_v58 = vpop.f32.mrb[101].mxu1 }
 0x229   : > { %8315 = vst [vmem:[#allocation172_spill] sm:$0xff] %v5918_v58  ;;  %v5920_v63 = vpop.eup %4470  ;;  %v5922_v57 = vpop.f32.mrb[102].mxu1 }
 0x22a   : > { %8316 = vst [vmem:[#allocation173_spill] sm:$0xff] %v5920_v63  ;;  %8317 = vst [vmem:[#allocation174_spill] sm:$0xff] %v5922_v57  ;;  %1976 = vadd.xlane.f32.xlu0 %v5920_v63  ;;  %v5925_v18 = vpop.f32.mrb[103].mxu1 }
 0x22b   : > { %8318 = vst [vmem:[#allocation175_spill] sm:$0xff] %v5925_v18  ;;  %v5927_v56 = vpop.eup %4472  ;;  %v5929_v13 = vpop.xlane.xlu0 %1904 }
 0x22c   : > { %8319 = vst [vmem:[#allocation176_spill] sm:$0xff] %v5927_v56  ;;  %v5931_v11 = vpop.f32.mrb[104].mxu1  ;;  %v1999_v12 = vpop.xlane.xlu1 %1998  ;;  %1978 = vadd.xlane.f32.xlu1 %v5927_v56 }
 0x22d   : > { %8320 = vst [vmem:[#allocation177_spill] sm:$0xff] %v5931_v11  ;;  %v5934_v45 = vpop.f32.mrb[105].mxu1  ;;  %4478 = vrcp.f32 %v1999_v12 }
 0x22e   : > { %8321 = vst [vmem:[#allocation178_spill] sm:$0xff] %v5934_v45  ;;  %v5936_v58 = vpop.f32.mrb[106].mxu1  ;;  %v4475_v49 = vpop.eup %4474  ;;  %4480 = vrcp.f32 %v1903_v61 }
 0x22f   : > { %8322 = vst [vmem:[#allocation179_spill] sm:$0xff] %v5936_v58  ;;  %v5938_v55 = vpop.f32.mrb[107].mxu1  ;;  %v5940_v57 = vpop.xlane.xlu0 %2000 }
 0x230   : > { %8323 = vst [vmem:[#allocation180_spill] sm:$0xff] %v5938_v55  ;;  %v5942_v63 = vpop.f32.mrb[108].mxu1  ;;  %v5944_v18 = vpop.xlane.xlu1 %1662 }
 0x231   : > { %8324 = vst [vmem:[#allocation181_spill] sm:$0xff] %v5942_v63  ;;  %v5946_v0 = vpop.f32.mrb[109].mxu1  ;;  %v4477_v1 = vpop.eup %4476 }
 0x232   : > { %8325 = vst [vmem:[#allocation182_spill] sm:$0xff] %v5946_v0  ;;  %v5948_v11 = vpop.f32.mrb[110].mxu1 }
 0x233   : > { %8326 = vst [vmem:[#allocation183_spill] sm:$0xff] %v5948_v11  ;;  %v5950_v6 = vpop.f32.mrb[111].mxu1  ;;  %v5952_v56 = vpop.xlane.xlu0 %1664 }
 0x234   : > { %8327 = vst [vmem:[#allocation184_spill] sm:$0xff] %v5950_v6  ;;  %v5954_v45 = vpop.f32.mrb[112].mxu1  ;;  %v5956_v33 = vpop.xlane.xlu1 %1906 }
 0x235   : > { %8328 = vst [vmem:[#allocation185_spill] sm:$0xff] %v5954_v45  ;;  %v5958_v58 = vpop.f32.mrb[113].mxu1 }
 0x236   : > { %8329 = vst [vmem:[#allocation186_spill] sm:$0xff] %v5958_v58  ;;  %v5960_v55 = vpop.f32.mrb[114].mxu1 }
 0x237   : > { %8330 = vst [vmem:[#allocation187_spill] sm:$0xff] %v5960_v55  ;;  %v5962_v63 = vpop.f32.mrb[115].mxu1  ;;  %v5964_v24 = vpop.xlane.xlu0 %1908  ;;  %v5979_v55 = vmul.f32 %v4475_v49, %v5458_v7 }
 0x238   : > { %8331 = vst [vmem:[#allocation188_spill] sm:$0xff] %v5962_v63  ;;  %v5966_v0 = vpop.f32.mrb[116].mxu1  ;;  %v5968_v11 = vpop.xlane.xlu1 %2002 }
 0x239   : > { %8332 = vst [vmem:[#allocation189_spill] sm:$0xff] %v5966_v0  ;;  %v5970_v6 = vpop.f32.mrb[117].mxu1  ;;  %8336 = vst [vmem:[#allocation193_spill] sm:$0xff] %v5979_v55 }
 0x23a   : > { %8333 = vst [vmem:[#allocation190_spill] sm:$0xff] %v5970_v6  ;;  %v5972_v4 = vpop.f32.mrb[118].mxu1 }
 0x23b   : > { %8334 = vst [vmem:[#allocation191_spill] sm:$0xff] %v5972_v4  ;;  %v5974_v45 = vpop.f32.mrb[119].mxu1  ;;  %v5976_v30 = vpop.xlane.xlu0 %2004  ;;  %v2092_v4 = vmul.f32 %v4477_v1, %v5451_v42 }
 0x23c   : > { %8335 = vst [vmem:[#allocation192_spill] sm:$0xff] %v5974_v45  ;;  %v5981_v58 = vpop.f32.mrb[120].mxu1  ;;  %v5983_v63 = vpop.xlane.xlu1 %1666 }
 0x23d   : > { %8337 = vst [vmem:[#allocation194_spill] sm:$0xff] %v5981_v58  ;;  %v5985_v0 = vpop.f32.mrb[121].mxu1  ;;  %2398 = vperm.xlu1 %4135, %v5979_v55   ;;  %v8057_v58 = vmov 1  }
 0x23e   : > { %8338 = vst [vmem:[#allocation195_spill] sm:$0xff] %v5985_v0  ;;  %v5988_v28 = vpop.f32.mrb[122].mxu1 }
 0x23f   : > { %8339 = vst [vmem:[#allocation196_spill] sm:$0xff] %v5988_v28  ;;  %v5991_v6 = vpop.f32.mrb[123].mxu1  ;;  %v5993_v45 = vpop.xlane.xlu0 %1668  ;;  %v8061_v28 = vmov 2  }
 0x240   : > { %8340 = vst [vmem:[#allocation197_spill] sm:$0xff] %v5991_v6  ;;  %v5995_v8 = vpop.f32.mrb[124].mxu1  ;;  %v5997_v7 = vpop.xlane.xlu1 %1910  ;;  %2158 = vperm.xlu0 %4134, %v2092_v4  }
 0x241   : > { %8341 = vst [vmem:[#allocation198_spill] sm:$0xff] %v5995_v8  ;;  %v5999_v49 = vpop.f32.mrb[125].mxu1  ;;  %4136 = vset.pattern.permute.xlu1 %v8057_v58 }
 0x242   : > { %8342 = vst [vmem:[#allocation199_spill] sm:$0xff] %v5999_v49  ;;  %v6002_v0 = vpop.f32.mrb[126].mxu1  ;;  %2541 = vperm.xlu1 %4136, %v2092_v4  }
 0x243   : > { %8343 = vst [vmem:[#allocation200_spill] sm:$0xff] %v6002_v0  ;;  %v6004_v42 = vpop.f32.mrb[127].mxu1  ;;  %v6011_v12 = vpop.xlane.xlu0 %1912 }
 0x244   : > { %8344 = vst [vmem:[#allocation201_spill] sm:$0xff] %v6004_v42  ;;  %v6006_v1 = vpop.xlane.xlu1 %2006  ;;  %4137 = vset.pattern.permute.xlu0 %v8057_v58  ;;  %v6009_v8 = vpop.f32.mrb[128].mxu1 }
 0x245   : > { %2733 = vperm.xlu0 %4137, %v5979_v55   ;;  %v6014_v49 = vpop.f32.mrb[129].mxu1  ;;  %v6021_v0 = vpop.f32.mrb[96].mxu0 }
 0x246   : > { %4139 = vset.pattern.permute.xlu1 %v8061_v28  ;;  %v4479_v58 = vpop.eup %4478  ;;  %v6023_v42 = vpop.f32.mrb[97].mxu0 }
 0x247   : > { %3117 = vperm.xlu1 %4139, %v5979_v55   ;;  %v6025_v6 = vpop.xlane.xlu0 %2008  ;;  %v4481_v31 = vpop.eup %4480  ;;  %v6031_v55 = vmul.f32 %v4479_v58, %v5486_v17 }
 0x248   : > { %v6018_v61 = vpop.xlane.xlu1 %1670  ;;  %v6057_v40 = vpop.f32.mrb[98].mxu0 }
 0x249   : > { %4138 = vset.pattern.permute.xlu0 %v8061_v28  ;;  %8345 = vst [vmem:[#allocation202_spill] sm:$0xff] %v6031_v55  ;;  %v2093_v28 = vmul.f32 %v4481_v31, %v5475_v59  ;;  %v8351_v31 = vmov 2   ;;  %8352 = vst [vmem:[#allocation207_spill] sm:$0xff] %v6057_v40  ;;  %v6064_v22 = vpop.f32.mrb[99].mxu0 }
 0x24a   : > { %2925 = vperm.xlu0 %4138, %v2092_v4  }
 0x24b   : > { %4140 = vset.pattern.permute.xlu1 %v8065_v26  ;;  %v6039_v29 = vpop.xlane.xlu0 %1672  ;;  %v6041_v26 = vpop.f32.mrb[130].mxu1 }
 0x24c   : > { %v6028_v3 = vpop.xlane.xlu1 %1914  ;;  %3309 = vperm.xlu1 %4140, %v2092_v4   ;;  %8346 = vst [vmem:[#allocation203_spill] sm:$0xff] %v6039_v29  ;;  %v6053_v58 = vpop.f32.mrb[131].mxu1 }
 0x24e   : > { %4142 = vset.pattern.permute.xlu0 %v8114_v44 }
 0x24f   : > { %2403 = vperm.xlu0 %4142, %v6031_v55   ;;  %v6048_v17 = vpop.xlane.xlu0 %1916 }
 0x250   : > { %v6036_v43 = vpop.xlane.xlu1 %2010  ;;  %4141 = vset.pattern.permute.xlu1 %v8114_v44  ;;  %8349 = vst [vmem:[#allocation205_spill] sm:$0xff] %v6048_v17 }
 0x251   : > { %2163 = vperm.xlu1 %4141, %v2093_v28  }
 0x253   : > { %4143 = vset.pattern.permute.xlu0 %v8347_v37  ;;  %v6061_v35 = vpop.xlane.xlu0 %2012 }
 0x254   : > { %v6044_v4 = vpop.xlane.xlu1 %1674  ;;  %2545 = vperm.xlu0 %4143, %v2093_v28   ;;  %8354 = vst [vmem:[#allocation209_spill] sm:$0xff] %v6061_v35 }
 0x255   : > { %8348 = vst [vmem:[#allocation204_spill] sm:$0xff] %v6044_v4  ;;  %4144 = vset.pattern.permute.xlu1 %v8347_v37 }
 0x256   : > { %2737 = vperm.xlu1 %4144, %v6031_v55  }
 0x258   : > { %v6050_v59 = vpop.xlane.xlu1 %1918  ;;  %4146 = vset.pattern.permute.xlu0 %v8351_v31 }
 0x259   : > { %8350 = vst [vmem:[#allocation206_spill] sm:$0xff] %v6050_v59  ;;  %3121 = vperm.xlu0 %4146, %v6031_v55   ;;  %v6070_v55 = vpop.xlane.xlu0 %1920 }
 0x25a   : > { %4145 = vset.pattern.permute.xlu1 %v8351_v31  ;;  %8357 = vst [vmem:[#allocation211_spill] sm:$0xff] %v6070_v55 }
 0x25b   : > { %2929 = vperm.xlu1 %4145, %v2093_v28  }
 0x25c   : > { %v6059_v4 = vpop.xlane.xlu1 %2014 }
 0x25d   : > { %8353 = vst [vmem:[#allocation208_spill] sm:$0xff] %v6059_v4  ;;  %4147 = vset.pattern.permute.xlu0 %v8355_v20  ;;  %v6074_v2 = vpop.xlane.xlu0 %2016  ;;  %v1748_v4 = vsub.f32 %v5464_v62, %v5914_v52 }
 0x25e   : > { %3313 = vperm.xlu0 %4147, %v2093_v28   ;;  %8359 = vst [vmem:[#allocation213_spill] sm:$0xff] %v6074_v2  ;;  %v1749_v28 = vsub.f32 %v5495_v54, %v5944_v18 }
 0x25f   : > { %4148 = vset.pattern.permute.xlu1 %v8114_v44  ;;  %v1852_v29 = vmul.f32 1.442695, %v1748_v4 }
 0x260   : > { %v6067_v59 = vpop.xlane.xlu1 %1922 }
 0x261   : > { %8356 = vst [vmem:[#allocation210_spill] sm:$0xff] %v6067_v59  ;;  %v6082_v40 = vpop.xlane.xlu0 %1924  ;;  %v1854_v59 = vmul.f32 1.442695, %v1749_v28  ;;  %4482 = vpow2.f32 %v1852_v29 }
 0x262   : > { %4150 = vset.pattern.permute.xlu0 %v8347_v37  ;;  %8361 = vst [vmem:[#allocation215_spill] sm:$0xff] %v6082_v40 }
 0x263   : > { %4484 = vpow2.f32 %v1854_v59 }
 0x264   : > { %v6072_v17 = vpop.xlane.xlu1 %2018  ;;  %4486 = vrcp.f32 %v5929_v13 }
 0x265   : > { %8358 = vst [vmem:[#allocation212_spill] sm:$0xff] %v6072_v17  ;;  %v6086_v55 = vpop.xlane.xlu0 %2020  ;;  %4488 = vrcp.f32 %v5940_v57 }
 0x266   : > { %8363 = vst [vmem:[#allocation217_spill] sm:$0xff] %v6086_v55  ;;  %4490 = vrcp.f32 %v5968_v11 }
 0x267   : > { %4492 = vrcp.f32 %v5956_v33 }
 0x268   : > { %v6078_v35 = vpop.xlane.xlu1 %1926 }
 0x269   : > { %8360 = vst [vmem:[#allocation214_spill] sm:$0xff] %v6078_v35  ;;  %v6090_v2 = vpop.xlane.xlu0 %1928 }
 0x26a   : > { %8365 = vst [vmem:[#allocation219_spill] sm:$0xff] %v6090_v2 }
 0x26b   : > { %v6092_v62 = vpop.eup %4482 }
 0x26c   : > { %v6084_v14 = vpop.xlane.xlu1 %2022  ;;  %8366 = vst [vmem:[#allocation220_spill] sm:$0xff] %v6092_v62 }
 0x26d   : > { %8362 = vst [vmem:[#allocation216_spill] sm:$0xff] %v6084_v14  ;;  %v6097_v54 = vpop.eup %4484  ;;  %v6101_v29 = vpop.xlane.xlu0 %2024  ;;  %v8401_v14 = vld [vmem:[#allocation7_spill] sm:$0xff] }
 0x26e   : > { %8368 = vst [vmem:[#allocation222_spill] sm:$0xff] %v6097_v54  ;;  %8369 = vst [vmem:[#allocation223_spill] sm:$0xff] %v6101_v29  ;;  %v4487_v28 = vpop.eup %4486 }
 0x26f   : > { %v2094_v13 = vmul.f32 %v4487_v28, %v5482_v16 }
 0x270   : > { %v6088_v17 = vpop.xlane.xlu1 %1930 }
 0x271   : > { %8364 = vst [vmem:[#allocation218_spill] sm:$0xff] %v6088_v17  ;;  %v6106_v4 = vpop.xlane.xlu0 %1932  ;;  %v6117_v17 = vpop.f32.mrb[132].mxu1 }
 0x272   : > { %8371 = vst [vmem:[#allocation225_spill] sm:$0xff] %v6106_v4 }
 0x274   : > { %v6094_v52 = vpop.xlane.xlu1 %2026 }
 0x275   : > { %8367 = vst [vmem:[#allocation221_spill] sm:$0xff] %v6094_v52  ;;  %v4489_v52 = vpop.eup %4488 }
 0x276   : > { %v6120_v57 = vmul.f32 %v4489_v52, %v5502_v9 }
 0x278   : > { %v6103_v18 = vpop.xlane.xlu1 %1934  ;;  %8375 = vst [vmem:[#allocation229_spill] sm:$0xff] %v6120_v57 }
 0x279   : > { %8370 = vst [vmem:[#allocation224_spill] sm:$0xff] %v6103_v18  ;;  %v4491_v18 = vpop.eup %4490 }
 0x27a   : > { %v6129_v33 = vmul.f32 %v4491_v18, %v5531_v51  ;;  %v4493_v16 = vpop.eup %4492 }
 0x27b   : > { %v2095_v28 = vmul.f32 %v4493_v16, %v5516_v21 }
 0x27c   : > { %v6109_v59 = vpop.xlane.xlu1 %1938  ;;  %8378 = vst [vmem:[#allocation232_spill] sm:$0xff] %v6129_v33 }
 0x27d   : > { %1980 = vadd.xlane.f32.xlu0 %v6092_v62  ;;  %8372 = vst [vmem:[#allocation226_spill] sm:$0xff] %v6109_v59  ;;  %v6111_v62 = vpop.xlane.xlu0 %1936 }
 0x27e   : > { %8373 = vst [vmem:[#allocation227_spill] sm:$0xff] %v6111_v62 }
 0x27f   : > { %1982 = vadd.xlane.f32.xlu1 %v6097_v54 }
 0x280   : > { %v6115_v54 = vpop.xlane.xlu1 %1942 }
 0x281   : > { %8374 = vst [vmem:[#allocation228_spill] sm:$0xff] %v6115_v54  ;;  %v6122_v11 = vpop.xlane.xlu0 %1940  ;;  %v6139_v54 = vpop.f32.mrb[133].mxu1 }
 0x282   : > { %8376 = vst [vmem:[#allocation230_spill] sm:$0xff] %v6122_v11  ;;  %v6143_v51 = vpop.f32.mrb[134].mxu1 }
 0x283   : > { %8381 = vst [vmem:[#allocation235_spill] sm:$0xff] %v6143_v51 }
 0x284   : > { %v6126_v59 = vpop.xlane.xlu1 %1946 }
 0x285   : > { %8377 = vst [vmem:[#allocation231_spill] sm:$0xff] %v6126_v59  ;;  %v6134_v9 = vpop.xlane.xlu0 %1944  ;;  %v6147_v59 = vpop.f32.mrb[135].mxu1 }
 0x286   : > { %8379 = vst [vmem:[#allocation233_spill] sm:$0xff] %v6134_v9  ;;  %8383 = vst [vmem:[#allocation237_spill] sm:$0xff] %v6147_v59 }
 0x288   : > { %v6136_v52 = vpop.xlane.xlu1 %1950 }
 0x289   : > { %8380 = vst [vmem:[#allocation234_spill] sm:$0xff] %v6136_v52  ;;  %v6145_v18 = vpop.xlane.xlu0 %1948 }
 0x28a   : > { %8382 = vst [vmem:[#allocation236_spill] sm:$0xff] %v6145_v18 }
 0x28c   : > { %v6149_v9 = vpop.xlane.xlu1 %1954 }
 0x28d   : > { %8384 = vst [vmem:[#allocation238_spill] sm:$0xff] %v6149_v9  ;;  %v6153_v21 = vpop.xlane.xlu0 %1952 }
 0x28e   : > { %8385 = vst [vmem:[#allocation239_spill] sm:$0xff] %v6153_v21 }
 0x290   : > { %2168 = vperm.xlu1 %4148, %v2094_v13  }
 0x291   : > { %v6155_v16 = vpop.xlane.xlu1 %1958  ;;  %v6159_v52 = vpop.xlane.xlu0 %1956 }
 0x292   : > { %8386 = vst [vmem:[#allocation240_spill] sm:$0xff] %v6155_v16  ;;  %8387 = vst [vmem:[#allocation241_spill] sm:$0xff] %v6159_v52 }
 0x293   : > { %2741 = vperm.xlu0 %4150, %v6120_v57  }
 0x294   : > { %2408 = vperm.xlu1 %4148, %v6120_v57  }
 0x297   : > { %4154 = vset.pattern.permute.xlu0 %v8114_v44  ;;  %v6163_v11 = vpop.xlane.xlu0 %1960 }
 0x298   : > { %2413 = vperm.xlu0 %4154, %v6129_v33   ;;  %4149 = vset.pattern.permute.xlu1 %v8347_v37  ;;  %8389 = vst [vmem:[#allocation243_spill] sm:$0xff] %v6163_v11  ;;  %v8395_v11 = vld [vmem:[#allocation5_spill] sm:$0xff] }
 0x299   : > { %2549 = vperm.xlu1 %4149, %v2094_v13   ;;  %v6161_v18 = vpop.xlane.xlu1 %1962  ;;  %v261_v52 = vsub.s32 2, %v8395_v11  ;;  %v269_v29 = vsub.s32 4, %v8395_v11 }
 0x29a   : > { %8388 = vst [vmem:[#allocation242_spill] sm:$0xff] %v6161_v18 }
 0x29c   : > { %4156 = vset.pattern.permute.xlu0 %v8351_v31 }
 0x29d   : > { %2937 = vperm.xlu0 %4156, %v2095_v28   ;;  %4151 = vset.pattern.permute.xlu1 %v8351_v31 }
 0x29e   : > { %2933 = vperm.xlu1 %4151, %v2094_v13  }
 0x29f   : > { %v6170_v16 = vpop.xlane.xlu0 %1964 }
 0x2a0   : > { %8391 = vst [vmem:[#allocation245_spill] sm:$0xff] %v6170_v16 }
 0x2a1   : > { %3129 = vperm.xlu0 %4156, %v6129_v33   ;;  %v6168_v9 = vpop.xlane.xlu1 %1966 }
 0x2a2   : > { %3125 = vperm.xlu1 %4151, %v6120_v57   ;;  %v1750_v57 = vsub.f32 %v5507_v15, %v5952_v56  ;;  %8390 = vst [vmem:[#allocation244_spill] sm:$0xff] %v6168_v9  ;;  %v257_v56 = vsub.s32 1, %v8395_v11 }
 0x2a4   : > { %v1856_v21 = vmul.f32 1.442695, %v1750_v57  ;;  %v4626_v57 = vld [vmem:[%s7991_s2] sm:$0x1f] }
 0x2a5   : > { %4159 = vset.pattern.permute.xlu0 %v8347_v37  ;;  %v6214_v40 = vrot.slane %v4626_v57, %v269_v29 }
 0x2a6   : > { %4152 = vset.pattern.permute.xlu1 %v8355_v20  ;;  %4494 = vpow2.f32 %v1856_v21  ;;  %v265_v21 = vsub.s32 3, %v8395_v11 }
 0x2a7   : > { %3317 = vperm.xlu1 %4152, %v2094_v13   ;;  %v6175_v13 = vpop.xlane.xlu0 %1968  ;;  %4496 = vrcp.f32 %v5964_v24 }
 0x2a8   : > { %8393 = vst [vmem:[#allocation247_spill] sm:$0xff] %v6175_v13  ;;  %v6202_v16 = vrot.slane %v4626_v57, %v265_v21  ;;  %4498 = vrcp.f32 %v5976_v30 }
 0x2a9   : > { %v6173_v62 = vpop.xlane.xlu1 %1970 }
 0x2aa   : > { %8392 = vst [vmem:[#allocation246_spill] sm:$0xff] %v6173_v62  ;;  %v6190_v62 = vrot.slane %v4626_v57, %v261_v52  ;;  %v8400_v52 = vld [vmem:[#allocation6_spill] sm:$0xff]  ;;  %v1215_v21 = vadd.f32 %v6014_v49, %v6202_v16  ;;  %v975_v59 = vadd.f32 %v5690_v41, %v6202_v16 }
 0x2ab   : > { %4153 = vset.pattern.permute.xlu1 %v8114_v44 }
 0x2ac   : > { %2173 = vperm.xlu1 %4153, %v2095_v28   ;;  %v973_v13 = vadd.f32 %v5685_v38, %v6190_v62  ;;  %v1217_v30 = vadd.f32 %v6041_v26, %v6190_v62  ;;  %v6244_v26 = vpop.f32.mrb[136].mxu1 }
 0x2af   : > { %v6181_v15 = vpop.xlane.xlu0 %1972 }
 0x2b0   : > { %4155 = vset.pattern.permute.xlu1 %v8347_v37  ;;  %8396 = vst [vmem:[#allocation5_spill] sm:$0xff] %v6181_v15 }
 0x2b1   : > { %2553 = vperm.xlu1 %4155, %v2095_v28   ;;  %v6177_v18 = vpop.xlane.xlu1 %1974 }
 0x2b2   : > { %8394 = vst [vmem:[#allocation248_spill] sm:$0xff] %v6177_v18  ;;  %v6195_v18 = vrot.slane %v4626_v57, %v257_v56  ;;  %v8403_v57 = vld [vmem:[#allocation8_spill] sm:$0xff] }
 0x2b4   : > { %v862_v35 = vadd.f32 %v8401_v14, %v6195_v18  ;;  %v1326_v14 = vadd.f32 %v6023_v42, %v6214_v40  ;;  %v977_v42 = vadd.f32 %v5697_v5, %v6190_v62 }
 0x2b5   : > { %2745 = vperm.xlu1 %4155, %v6129_v33  }
 0x2b7   : > { %v6193_v33 = vpop.xlane.xlu0 %1976 }
 0x2b8   : > { %8398 = vst [vmem:[#allocation250_spill] sm:$0xff] %v6193_v33  ;;  %v1213_v33 = vadd.f32 %v6009_v8, %v6190_v62 }
 0x2b9   : > { %v6184_v9 = vpop.xlane.xlu1 %1978  ;;  %4157 = vset.pattern.permute.xlu1 %v8355_v20 }
 0x2ba   : > { %8397 = vst [vmem:[#allocation249_spill] sm:$0xff] %v6184_v9  ;;  %3321 = vperm.xlu1 %4157, %v2095_v28   ;;  %v6200_v9 = vpop.eup %4494  ;;  %v622_v28 = vadd.f32 %v8400_v52, %v6195_v18 }
 0x2bb   : > { %8399 = vst [vmem:[#allocation251_spill] sm:$0xff] %v6200_v9 }
 0x2bd   : > { %v2399_v15 = vpop.permute.xlu1 %2398 }
 0x2be   : > { %4158 = vset.pattern.permute.xlu1 %v8114_v44  ;;  %v2524_v11 = vmul.f32 %v2399_v15, %v862_v35  ;;  %v1751_v35 = vsub.f32 %v5538_v27, %v5983_v63  ;;  %v4497_v15 = vpop.eup %4496  ;;  %v626_v27 = vadd.f32 %v8403_v57, %v6195_v18  ;;  %v8404_v63 = vld [vmem:[#allocation9_spill] sm:$0xff]  ;;  %v6271_v57 = vpop.f32.mrb[137].mxu1 }
 0x2bf   : > { %v2159_v4 = vpop.permute.xlu0 %2158  ;;  %v2096_v5 = vmul.f32 %v4497_v15, %v5529_v19 }
 0x2c0   : > { %1984 = vadd.xlane.f32.xlu0 %v6200_v9  ;;  %v2476_v38 = vmul.f32 %v2159_v4, %v622_v28  ;;  %v866_v28 = vadd.f32 %v8404_v63, %v6195_v18 }
 0x2c1   : > { %v2542_v56 = vpop.permute.xlu1 %2541 }
 0x2c2   : > { %v2796_v2 = vmul.f32 %v2542_v56, %v973_v13 }
 0x2c4   : > { %v2860_v55 = vadd.f32 %v2796_v2, %v2476_v38  ;;  %v2734_v52 = vpop.permute.xlu0 %2733 }
 0x2c5   : > { %v2844_v9 = vmul.f32 %v2734_v52, %v1213_v33 }
 0x2c6   : > { %v3118_v51 = vpop.permute.xlu1 %3117 }
 0x2c7   : > { %v2908_v8 = vadd.f32 %v2844_v9, %v2524_v11  ;;  %v3228_v4 = vmul.f32 %v3118_v51, %v1215_v21  ;;  %v1858_v51 = vmul.f32 1.442695, %v1751_v35  ;;  %v4499_v21 = vpop.eup %4498  ;;  %v1219_v11 = vadd.f32 %v6053_v58, %v6202_v16 }
 0x2c8   : > { %v6249_v19 = vmul.f32 %v4499_v21, %v5546_v34  ;;  %v1329_v58 = vadd.f32 %v6064_v22, %v6214_v40 }
 0x2c9   : > { %v6222_v49 = vadd.f32 %v3228_v4, %v2908_v8  ;;  %v2926_v2 = vpop.permute.xlu0 %2925  ;;  %4500 = vpow2.f32 %v1858_v51 }
 0x2ca   : > { %v3180_v13 = vmul.f32 %v2926_v2, %v975_v59  ;;  %4502 = vrcp.f32 %v6006_v1  ;;  %v979_v2 = vadd.f32 %v5702_v23, %v6202_v16  ;;  %8405 = vst [vmem:[#allocation7_spill] sm:$0xff] %v6249_v19 }
 0x2cb   : > { %8402 = vst [vmem:[#allocation6_spill] sm:$0xff] %v6222_v49  ;;  %v3310_v41 = vpop.permute.xlu1 %3309  ;;  %4504 = vrcp.f32 %v5997_v7 }
 0x2cc   : > { %v3244_v29 = vadd.f32 %v3180_v13, %v2860_v55  ;;  %v3564_v24 = vmul.f32 %v3310_v41, %v1326_v14 }
 0x2ce   : > { %v3628_v33 = vadd.f32 %v3564_v24, %v3244_v29  ;;  %v2404_v9 = vpop.permute.xlu0 %2403  ;;  %v6255_v29 = vpop.f32.mrb[100].mxu0 }
 0x2cf   : > { %v2525_v8 = vmul.f32 %v2404_v9, %v866_v28 }
 0x2d0   : > { %3692 = vst [vmem:[%s6231_s10] sm:$0xff] %v3628_v33  ;;  %v2164_v59 = vpop.permute.xlu1 %2163  ;;  %v6259_v33 = vpop.f32.mrb[101].mxu0 }
 0x2d1   : > { %v2477_v56 = vmul.f32 %v2164_v59, %v626_v27 }
 0x2d3   : > { %v2546_v55 = vpop.permute.xlu0 %2545  ;;  %v6261_v9 = vpop.eup %4500 }
 0x2d4   : > { %v2797_v38 = vmul.f32 %v2546_v55, %v977_v42  ;;  %8407 = vst [vmem:[#allocation9_spill] sm:$0xff] %v6261_v9  ;;  %v4503_v7 = vpop.eup %4502 }
 0x2d5   : > { %v2738_v52 = vpop.permute.xlu1 %2737  ;;  %v6267_v22 = vmul.f32 %v4503_v7, %v5568_v48  ;;  %v4505_v15 = vpop.eup %4504  ;;  %v1752_v48 = vsub.f32 %v5552_v32, %v5993_v45  ;;  %v1753_v7 = vsub.f32 %v5576_v47, %v6018_v61 }
 0x2d6   : > { %v2861_v4 = vadd.f32 %v2797_v38, %v2477_v56  ;;  %v2845_v14 = vmul.f32 %v2738_v52, %v1217_v30  ;;  %2557 = vperm.xlu0 %4159, %v2096_v5   ;;  %v2097_v27 = vmul.f32 %v4505_v15, %v5561_v25  ;;  %v6275_v30 = vpop.f32.mrb[138].mxu1  ;;  %v6294_v56 = vpop.f32.mrb[102].mxu0  ;;  %v8411_v52 = vld [vmem:[#allocation11_spill] sm:$0xff] }
 0x2d7   : > { %8408 = vst [vmem:[#allocation252_spill] sm:$0xff] %v6267_v22  ;;  %v6277_v55 = vpop.f32.mrb[139].mxu1  ;;  %v1860_v25 = vmul.f32 1.442695, %v1752_v48  ;;  %v6296_v32 = vpop.f32.mrb[103].mxu0 }
 0x2d8   : > { %v2909_v13 = vadd.f32 %v2845_v14, %v2525_v8  ;;  %v3122_v35 = vpop.permute.xlu0 %3121 }
 0x2d9   : > { %v3229_v41 = vmul.f32 %v3122_v35, %v1219_v11  ;;  %4506 = vpow2.f32 %v1860_v25  ;;  %v872_v11 = vadd.f32 %v8411_v52, %v6195_v18  ;;  %v1862_v25 = vmul.f32 1.442695, %v1753_v7 }
 0x2da   : > { %v2930_v1 = vpop.permute.xlu1 %2929  ;;  %2749 = vperm.xlu0 %4159, %v6249_v19   ;;  %4508 = vrcp.f32 %v6011_v12  ;;  %v985_v12 = vadd.f32 %v5712_v39, %v6202_v16  ;;  %v6323_v39 = vpop.f32.mrb[140].mxu1 }
 0x2db   : > { %v6257_v24 = vadd.f32 %v3229_v41, %v2909_v13  ;;  %v3181_v23 = vmul.f32 %v2930_v1, %v979_v2  ;;  %v8412_v13 = vld [vmem:[#allocation10_spill] sm:$0xff]  ;;  %4510 = vrcp.f32 %v6025_v6 }
 0x2dc   : > { %v632_v35 = vadd.f32 %v8412_v13, %v6195_v18  ;;  %4512 = vrcp.f32 %v6036_v43  ;;  %v8417_v13 = vld [vmem:[#allocation235_spill] sm:$0xff] }
 0x2dd   : > { %8406 = vst [vmem:[#allocation8_spill] sm:$0xff] %v6257_v24  ;;  %v3245_v34 = vadd.f32 %v3181_v23, %v2861_v4  ;;  %v3314_v51 = vpop.permute.xlu0 %3313  ;;  %v983_v4 = vadd.f32 %v5707_v36, %v6190_v62  ;;  %v1225_v36 = vadd.f32 %v6139_v54, %v6202_v16  ;;  %v1334_v54 = vadd.f32 %v6021_v0, %v6214_v40  ;;  %v8476_v24 = vld [vmem:[#allocation18_spill] sm:$0xff] }
 0x2de   : > { %v3565_v42 = vmul.f32 %v3314_v51, %v1329_v58  ;;  %1986 = vadd.xlane.f32.xlu1 %v6261_v9  ;;  %4161 = vset.pattern.permute.xlu0 %v8355_v20  ;;  %4514 = vrcp.f32 %v6028_v3 }
 0x2df   : > { %3325 = vperm.xlu0 %4161, %v2096_v5   ;;  %4516 = vpow2.f32 %v1862_v25 }
 0x2e0   : > { %v3629_v59 = vadd.f32 %v3565_v42, %v3245_v34 }
 0x2e2   : > { %3693 = vst [vmem:[%s6231_s10 + $0x8] sm:$0xff] %v3629_v59 }
 0x2e3   : > { %4163 = vset.pattern.permute.xlu0 %v8114_v44  ;;  %v6289_v63 = vpop.eup %4506 }
 0x2e4   : > { %2423 = vperm.xlu0 %4163, %v6267_v22   ;;  %8409 = vst [vmem:[#allocation253_spill] sm:$0xff] %v6289_v63  ;;  %v4509_v34 = vpop.eup %4508 }
 0x2e5   : > { %v6319_v6 = vmul.f32 %v4509_v34, %v5566_v46  ;;  %v4511_v15 = vpop.eup %4510  ;;  %v8421_v34 = vld [vmem:[#allocation31_spill] sm:$0xff] }
 0x2e6   : > { %v6330_v47 = vmul.f32 %v4511_v15, %v5582_v10  ;;  %v987_v10 = vadd.f32 %v5716_v60, %v6190_v62 }
 0x2e8   : > { %4165 = vset.pattern.permute.xlu0 %v8351_v31  ;;  %8414 = vst [vmem:[#allocation10_spill] sm:$0xff] %v6330_v47 }
 0x2e9   : > { %2945 = vperm.xlu0 %4165, %v2097_v27  }
 0x2ed   : > { %3137 = vperm.xlu0 %4165, %v6267_v22  }
 0x2ef   : > { %2178 = vperm.xlu1 %4158, %v2096_v5  }
 0x2f1   : > { %4168 = vset.pattern.permute.xlu0 %v8347_v37 }
 0x2f3   : > { %2418 = vperm.xlu1 %4158, %v6249_v19  }
 0x2f7   : > { %4160 = vset.pattern.permute.xlu1 %v8351_v31 }
 0x2f8   : > { %2941 = vperm.xlu1 %4160, %v2096_v5   ;;  %v1223_v5 = vadd.f32 %v6117_v17, %v6190_v62 }
 0x2fc   : > { %3133 = vperm.xlu1 %4160, %v6249_v19  }
 0x300   : > { %4162 = vset.pattern.permute.xlu1 %v8114_v44 }
 0x301   : > { %2183 = vperm.xlu1 %4162, %v2097_v27  }
 0x305   : > { %4164 = vset.pattern.permute.xlu1 %v8347_v37 }
 0x306   : > { %2561 = vperm.xlu1 %4164, %v2097_v27  }
 0x30a   : > { %2753 = vperm.xlu1 %4164, %v6267_v22   ;;  %v6298_v45 = vpop.xlane.xlu0 %1980 }
 0x30c   : > { %v6291_v28 = vpop.xlane.xlu1 %1982  ;;  %1988 = vadd.xlane.f32.xlu0 %v6289_v63  ;;  %v8510_v63 = vld [vmem:[#allocation22_spill] sm:$0xff] }
 0x30d   : > { %8410 = vst [vmem:[#allocation254_spill] sm:$0xff] %v6291_v28 }
 0x30e   : > { %4166 = vset.pattern.permute.xlu1 %v8355_v20 }
 0x30f   : > { %3329 = vperm.xlu1 %4166, %v2097_v27  }
 0x310   : > { %v2169_v38 = vpop.permute.xlu1 %2168 }
 0x311   : > { %v2478_v1 = vmul.f32 %v2169_v38, %v632_v35  ;;  %v1227_v35 = vadd.f32 %v8417_v13, %v6190_v62  ;;  %v8428_v13 = vld [vmem:[#allocation209_spill] sm:$0xff] }
 0x312   : > { %v2742_v21 = vpop.permute.xlu0 %2741 }
 0x313   : > { %4167 = vset.pattern.permute.xlu1 %v8114_v44  ;;  %v2846_v14 = vmul.f32 %v2742_v21, %v1223_v5  ;;  %v4513_v21 = vpop.eup %4512 }
 0x314   : > { %v2409_v8 = vpop.permute.xlu1 %2408  ;;  %v6340_v3 = vmul.f32 %v4513_v21, %v5604_v50  ;;  %v8419_v50 = vld [vmem:[#allocation13_spill] sm:$0xff] }
 0x315   : > { %v2526_v2 = vmul.f32 %v2409_v8, %v872_v11  ;;  %v8416_v11 = vld [vmem:[#allocation12_spill] sm:$0xff] }
 0x316   : > { %8415 = vst [vmem:[#allocation255_spill] sm:$0xff] %v6340_v3  ;;  %v636_v8 = vadd.f32 %v8416_v11, %v6195_v18  ;;  %v8425_v11 = vld [vmem:[#allocation26_spill] sm:$0xff] }
 0x317   : > { %v2910_v17 = vadd.f32 %v2846_v14, %v2526_v2  ;;  %v2414_v61 = vpop.permute.xlu0 %2413  ;;  %v4515_v14 = vpop.eup %4514 }
 0x318   : > { %v2550_v41 = vpop.permute.xlu1 %2549 }
 0x319   : > { %v2798_v58 = vmul.f32 %v2550_v41, %v983_v4  ;;  %v989_v4 = vadd.f32 %v5721_v53, %v6202_v16  ;;  %v6350_v41 = vpop.eup %4516 }
 0x31a   : > { %8418 = vst [vmem:[#allocation12_spill] sm:$0xff] %v6350_v41 }
 0x31b   : > { %v2862_v23 = vadd.f32 %v2798_v58, %v2478_v1  ;;  %v876_v1 = vadd.f32 %v8419_v50, %v6195_v18  ;;  %v8431_v50 = vld [vmem:[#allocation67_spill] sm:$0xff] }
 0x31c   : > { %v2938_v52 = vpop.permute.xlu0 %2937 }
 0x31d   : > { %v2934_v51 = vpop.permute.xlu1 %2933  ;;  %v3183_v58 = vmul.f32 %v2938_v52, %v989_v4 }
 0x31e   : > { %v3182_v42 = vmul.f32 %v2934_v51, %v985_v12  ;;  %v8420_v12 = vld [vmem:[#allocation237_spill] sm:$0xff]  ;;  %v2099_v51 = vmul.f32 %v4515_v14, %v8421_v34  ;;  %v8434_v34 = vld [vmem:[#allocation14_spill] sm:$0xff] }
 0x31f   : > { %v1229_v53 = vadd.f32 %v8420_v12, %v6202_v16 }
 0x320   : > { %v3246_v59 = vadd.f32 %v3182_v42, %v2862_v23  ;;  %v3130_v42 = vpop.permute.xlu0 %3129 }
 0x321   : > { %v3126_v27 = vpop.permute.xlu1 %3125 }
 0x322   : > { %v3230_v48 = vmul.f32 %v3126_v27, %v1225_v36  ;;  %2565 = vperm.xlu0 %4168, %v6319_v6   ;;  %v6358_v36 = vpop.f32.mrb[141].mxu1 }
 0x324   : > { %v6327_v38 = vadd.f32 %v3230_v48, %v2910_v17  ;;  %v6361_v48 = vpop.f32.mrb[142].mxu1 }
 0x326   : > { %8413 = vst [vmem:[#allocation11_spill] sm:$0xff] %v6327_v38  ;;  %v3318_v46 = vpop.permute.xlu1 %3317  ;;  %2757 = vperm.xlu0 %4168, %v6330_v47   ;;  %v8477_v38 = vld [vmem:[#allocation223_spill] sm:$0xff] }
 0x327   : > { %v3566_v43 = vmul.f32 %v3318_v46, %v1334_v54  ;;  %v8422_v54 = vld [vmem:[#allocation207_spill] sm:$0xff]  ;;  %v6365_v46 = vpop.f32.mrb[143].mxu1 }
 0x328   : > { %v1337_v25 = vadd.f32 %v8422_v54, %v6214_v40  ;;  %v8435_v54 = vld [vmem:[#allocation33_spill] sm:$0xff] }
 0x329   : > { %v3630_v5 = vadd.f32 %v3566_v43, %v3246_v59  ;;  %v2527_v59 = vmul.f32 %v2414_v61, %v876_v1  ;;  %v3231_v43 = vmul.f32 %v3130_v42, %v1229_v53  ;;  %v8424_v61 = vld [vmem:[#allocation203_spill] sm:$0xff]  ;;  %v993_v1 = vadd.f32 %v8431_v50, %v6190_v62  ;;  %v6402_v42 = vpop.f32.mrb[144].mxu1 }
 0x32a   : > { %4170 = vset.pattern.permute.xlu0 %v8355_v20 }
 0x32b   : > { %3694 = vst [vmem:[%s6231_s10 + $0x10] sm:$0xff] %v3630_v5  ;;  %v2174_v0 = vpop.permute.xlu1 %2173  ;;  %3333 = vperm.xlu0 %4170, %v6319_v6  }
 0x32c   : > { %v2479_v60 = vmul.f32 %v2174_v0, %v636_v8  ;;  %v1754_v8 = vsub.f32 %v8425_v11, %v8424_v61  ;;  %v6413_v61 = vpop.f32.mrb[104].mxu0 }
 0x32e   : > { %v1864_v4 = vmul.f32 1.442695, %v1754_v8  ;;  %v6415_v8 = vpop.f32.mrb[105].mxu0 }
 0x32f   : > { %4172 = vset.pattern.permute.xlu0 %v8114_v44 }
 0x330   : > { %v2554_v2 = vpop.permute.xlu1 %2553  ;;  %2433 = vperm.xlu0 %4172, %v6340_v3   ;;  %4518 = vpow2.f32 %v1864_v4 }
 0x331   : > { %v2799_v17 = vmul.f32 %v2554_v2, %v987_v10  ;;  %v8427_v2 = vld [vmem:[#allocation205_spill] sm:$0xff] }
 0x332   : > { %4520 = vrcp.f32 %v8427_v2 }
 0x333   : > { %v2863_v23 = vadd.f32 %v2799_v17, %v2479_v60  ;;  %1990 = vadd.xlane.f32.xlu1 %v6350_v41  ;;  %4522 = vrcp.f32 %v8428_v13  ;;  %v8491_v41 = vld [vmem:[#allocation61_spill] sm:$0xff] }
 0x334   : > { %v2746_v7 = vpop.permute.xlu1 %2745  ;;  %4174 = vset.pattern.permute.xlu0 %v8351_v31 }
 0x335   : > { %v2847_v15 = vmul.f32 %v2746_v7, %v1227_v35  ;;  %2953 = vperm.xlu0 %4174, %v2099_v51   ;;  %v3247_v27 = vadd.f32 %v3183_v58, %v2863_v23  ;;  %v8432_v58 = vld [vmem:[#allocation27_spill] sm:$0xff]  ;;  %v8433_v23 = vld [vmem:[#allocation206_spill] sm:$0xff] }
 0x336   : > { %4524 = vrcp.f32 %v8433_v23 }
 0x337   : > { %v2911_v5 = vadd.f32 %v2847_v15, %v2527_v59  ;;  %v1233_v15 = vadd.f32 %v6244_v26, %v6190_v62  ;;  %v8439_v26 = vld [vmem:[#allocation99_spill] sm:$0xff] }
 0x338   : > { %v995_v4 = vadd.f32 %v8439_v26, %v6202_v16 }
 0x339   : > { %v3322_v21 = vpop.permute.xlu1 %3321  ;;  %3145 = vperm.xlu0 %4174, %v6340_v3   ;;  %v6368_v0 = vadd.f32 %v3231_v43, %v2911_v5  ;;  %v8437_v43 = vld [vmem:[#allocation208_spill] sm:$0xff] }
 0x33a   : > { %v3567_v10 = vmul.f32 %v3322_v21, %v1337_v25  ;;  %v6380_v14 = vpop.eup %4518  ;;  %4526 = vrcp.f32 %v8437_v43  ;;  %v8438_v21 = vld [vmem:[#allocation15_spill] sm:$0xff] }
 0x33b   : > { %8423 = vst [vmem:[#allocation235_spill] sm:$0xff] %v6368_v0  ;;  %8426 = vst [vmem:[#allocation13_spill] sm:$0xff] %v6380_v14 }
 0x33c   : > { %v3631_v52 = vadd.f32 %v3567_v10, %v3247_v27  ;;  %v4521_v35 = vpop.eup %4520  ;;  %v882_v10 = vadd.f32 %v8438_v21, %v6195_v18 }
 0x33d   : > { %4177 = vset.pattern.permute.xlu0 %v8347_v37  ;;  %v6396_v12 = vmul.f32 %v4521_v35, %v8432_v58  ;;  %v4523_v53 = vpop.eup %4522  ;;  %v8440_v35 = vld [vmem:[#allocation204_spill] sm:$0xff] }
 0x33e   : > { %3695 = vst [vmem:[%s6231_s10 + $0x18] sm:$0xff] %v3631_v52  ;;  %v6407_v25 = vmul.f32 %v4523_v53, %v8435_v54  ;;  %v8442_v54 = vld [vmem:[#allocation40_spill] sm:$0xff] }
 0x340   : > { %8436 = vst [vmem:[#allocation207_spill] sm:$0xff] %v6407_v25  ;;  %v4525_v53 = vpop.eup %4524 }
 0x341   : > { %v6428_v43 = vmul.f32 %v4525_v53, %v8442_v54  ;;  %v8449_v53 = vld [vmem:[#allocation16_spill] sm:$0xff] }
 0x344   : > { %2188 = vperm.xlu1 %4167, %v6319_v6  }
 0x348   : > { %2428 = vperm.xlu1 %4167, %v6330_v47  }
 0x34c   : > { %4169 = vset.pattern.permute.xlu1 %v8351_v31 }
 0x34d   : > { %2949 = vperm.xlu1 %4169, %v6319_v6   ;;  %v6388_v6 = vpop.xlane.xlu0 %1984 }
 0x34e   : > { %8429 = vst [vmem:[#allocation237_spill] sm:$0xff] %v6388_v6 }
 0x351   : > { %3141 = vperm.xlu1 %4169, %v6330_v47   ;;  %v8480_v47 = vld [vmem:[#allocation55_spill] sm:$0xff] }
 0x355   : > { %4171 = vset.pattern.permute.xlu1 %v8114_v44  ;;  %v2558_v60 = vpop.permute.xlu0 %2557 }
 0x356   : > { %2193 = vperm.xlu1 %4171, %v2099_v51   ;;  %v2800_v59 = vmul.f32 %v2558_v60, %v993_v1  ;;  %v8441_v60 = vld [vmem:[#allocation35_spill] sm:$0xff]  ;;  %v1342_v1 = vadd.f32 %v6259_v33, %v6214_v40  ;;  %v4527_v33 = vpop.eup %4526 }
 0x357   : > { %v1755_v50 = vsub.f32 %v8441_v60, %v8440_v35  ;;  %v6442_v60 = vpop.f32.mrb[145].mxu1 }
 0x358   : > { %1992 = vadd.xlane.f32.xlu0 %v6380_v14  ;;  %v8481_v14 = vld [vmem:[#allocation218_spill] sm:$0xff] }
 0x359   : > { %v2750_v5 = vpop.permute.xlu0 %2749 }
 0x35a   : > { %4173 = vset.pattern.permute.xlu1 %v8347_v37  ;;  %v2848_v2 = vmul.f32 %v2750_v5, %v1233_v15 }
 0x35b   : > { %2569 = vperm.xlu1 %4173, %v2099_v51  }
 0x35e   : > { %v3326_v23 = vpop.permute.xlu0 %3325 }
 0x35f   : > { %2761 = vperm.xlu1 %4173, %v6340_v3   ;;  %v3568_v15 = vmul.f32 %v3326_v23, %v1342_v1  ;;  %v8450_v23 = vld [vmem:[#allocation102_spill] sm:$0xff] }
 0x363   : > { %4175 = vset.pattern.permute.xlu1 %v8355_v20 }
 0x364   : > { %3337 = vperm.xlu1 %4175, %v2099_v51   ;;  %v642_v51 = vadd.f32 %v8434_v34, %v6195_v18 }
 0x368   : > { %4176 = vset.pattern.permute.xlu1 %v8114_v44 }
 0x36b   : > { %v6391_v17 = vpop.xlane.xlu1 %1986 }
 0x36c   : > { %8430 = vst [vmem:[#allocation31_spill] sm:$0xff] %v6391_v17  ;;  %v8513_v17 = vld [vmem:[#allocation233_spill] sm:$0xff] }
 0x36e   : > { %2573 = vperm.xlu0 %4177, %v6396_v12  }
 0x36f   : > { %v2179_v7 = vpop.permute.xlu1 %2178 }
 0x370   : > { %v2480_v27 = vmul.f32 %v2179_v7, %v642_v51  ;;  %v1235_v51 = vadd.f32 %v6271_v57, %v6202_v16  ;;  %v8444_v57 = vld [vmem:[#allocation96_spill] sm:$0xff] }
 0x372   : > { %v2864_v52 = vadd.f32 %v2800_v59, %v2480_v27  ;;  %2765 = vperm.xlu0 %4177, %v6407_v25   ;;  %v1866_v59 = vmul.f32 1.442695, %v1755_v50  ;;  %v8448_v50 = vld [vmem:[#allocation213_spill] sm:$0xff] }
 0x373   : > { %v2419_v11 = vpop.permute.xlu1 %2418 }
 0x374   : > { %v2528_v13 = vmul.f32 %v2419_v11, %v882_v10  ;;  %4528 = vpow2.f32 %v1866_v59  ;;  %v2424_v11 = vpop.permute.xlu0 %2423  ;;  %v1237_v59 = vadd.f32 %v6275_v30, %v6190_v62 }
 0x376   : > { %v2912_v58 = vadd.f32 %v2848_v2, %v2528_v13  ;;  %4179 = vset.pattern.permute.xlu0 %v8355_v20  ;;  %v8447_v13 = vld [vmem:[#allocation69_spill] sm:$0xff] }
 0x377   : > { %v2942_v34 = vpop.permute.xlu1 %2941  ;;  %3341 = vperm.xlu0 %4179, %v6396_v12   ;;  %v997_v35 = vadd.f32 %v8447_v13, %v6190_v62 }
 0x378   : > { %v3184_v7 = vmul.f32 %v2942_v34, %v995_v4  ;;  %v6436_v4 = vmul.f32 %v4527_v33, %v8444_v57  ;;  %v2946_v1 = vpop.permute.xlu0 %2945  ;;  %v999_v34 = vadd.f32 %v8450_v23, %v6202_v16  ;;  %v1239_v57 = vadd.f32 %v6277_v55, %v6202_v16 }
 0x37a   : > { %v3248_v27 = vadd.f32 %v3184_v7, %v2864_v52  ;;  %8445 = vst [vmem:[#allocation26_spill] sm:$0xff] %v6436_v4  ;;  %v8446_v52 = vld [vmem:[#allocation211_spill] sm:$0xff]  ;;  %v6451_v7 = vpop.f32.mrb[146].mxu1 }
 0x37b   : > { %v3134_v5 = vpop.permute.xlu1 %3133  ;;  %4180 = vset.pattern.permute.xlu0 %v8114_v44  ;;  %4530 = vrcp.f32 %v8446_v52  ;;  %v6455_v54 = vpop.f32.mrb[147].mxu1 }
 0x37c   : > { %v3632_v21 = vadd.f32 %v3568_v15, %v3248_v27  ;;  %v3232_v10 = vmul.f32 %v3134_v5, %v1235_v51  ;;  %2203 = vperm.xlu0 %4180, %v6428_v43   ;;  %4532 = vrcp.f32 %v8448_v50  ;;  %v8452_v5 = vld [vmem:[#allocation17_spill] sm:$0xff]  ;;  %v3138_v50 = vpop.permute.xlu0 %3137 }
 0x37d   : > { %v3233_v23 = vmul.f32 %v3138_v50, %v1239_v57 }
 0x37e   : > { %3696 = vst [vmem:[%s6231_s10 + $0x20] sm:$0xff] %v3632_v21  ;;  %v6433_v26 = vadd.f32 %v3232_v10, %v2912_v58  ;;  %v646_v58 = vadd.f32 %v8449_v53, %v6195_v18  ;;  %v6457_v33 = vpop.eup %4528  ;;  %v886_v21 = vadd.f32 %v8452_v5, %v6195_v18  ;;  %v3185_v10 = vmul.f32 %v2946_v1, %v999_v34  ;;  %v8453_v34 = vld [vmem:[#allocation34_spill] sm:$0xff] }
 0x37f   : > { %8451 = vst [vmem:[#allocation205_spill] sm:$0xff] %v6457_v33 }
 0x380   : > { %8443 = vst [vmem:[#allocation203_spill] sm:$0xff] %v6433_v26  ;;  %v2184_v2 = vpop.permute.xlu1 %2183  ;;  %2443 = vperm.xlu0 %4180, %v6436_v4   ;;  %v2529_v30 = vmul.f32 %v2424_v11, %v886_v21  ;;  %v6473_v11 = vpop.f32.mrb[148].mxu1  ;;  %v652_v26 = vadd.f32 %v8476_v24, %v6195_v18 }
 0x381   : > { %v2481_v15 = vmul.f32 %v2184_v2, %v646_v58  ;;  %v1345_v58 = vadd.f32 %v6296_v32, %v6214_v40  ;;  %v8456_v32 = vld [vmem:[#allocation95_spill] sm:$0xff] }
 0x384   : > { %4182 = vset.pattern.permute.xlu0 %v8351_v31 }
 0x385   : > { %v2562_v51 = vpop.permute.xlu1 %2561  ;;  %2961 = vperm.xlu0 %4182, %v6428_v43   ;;  %v4531_v13 = vpop.eup %4530 }
 0x386   : > { %v2801_v27 = vmul.f32 %v2562_v51, %v997_v35  ;;  %v6468_v51 = vmul.f32 %v4531_v13, %v8453_v34  ;;  %v4533_v55 = vpop.eup %4532  ;;  %v8459_v13 = vld [vmem:[#allocation45_spill] sm:$0xff] }
 0x387   : > { %v6478_v21 = vmul.f32 %v4533_v55, %v8456_v32  ;;  %v8466_v32 = vld [vmem:[#allocation51_spill] sm:$0xff] }
 0x388   : > { %v2865_v52 = vadd.f32 %v2801_v27, %v2481_v15  ;;  %1994 = vadd.xlane.f32.xlu1 %v6457_v33  ;;  %v8454_v15 = vld [vmem:[#allocation210_spill] sm:$0xff] }
 0x389   : > { %v2754_v53 = vpop.permute.xlu1 %2753  ;;  %3153 = vperm.xlu0 %4182, %v6436_v4   ;;  %4534 = vrcp.f32 %v8454_v15  ;;  %8457 = vst [vmem:[#allocation67_spill] sm:$0xff] %v6478_v21 }
 0x38a   : > { %v2849_v2 = vmul.f32 %v2754_v53, %v1237_v59  ;;  %v3249_v35 = vadd.f32 %v3185_v10, %v2865_v52  ;;  %v8458_v10 = vld [vmem:[#allocation212_spill] sm:$0xff] }
 0x38b   : > { %4536 = vrcp.f32 %v8458_v10 }
 0x38c   : > { %v2913_v1 = vadd.f32 %v2849_v2, %v2529_v30  ;;  %v8460_v30 = vld [vmem:[#allocation46_spill] sm:$0xff] }
 0x38d   : > { %4185 = vset.pattern.permute.xlu0 %v8347_v37 }
 0x38e   : > { %v3330_v27 = vpop.permute.xlu1 %3329  ;;  %2581 = vperm.xlu0 %4185, %v6468_v51   ;;  %v6475_v59 = vadd.f32 %v3233_v23, %v2913_v1  ;;  %v6503_v23 = vpop.f32.mrb[149].mxu1 }
 0x38f   : > { %v3569_v5 = vmul.f32 %v3330_v27, %v1345_v58  ;;  %v8463_v58 = vld [vmem:[#allocation217_spill] sm:$0xff]  ;;  %v6505_v1 = vpop.f32.mrb[150].mxu1 }
 0x390   : > { %8455 = vst [vmem:[#allocation209_spill] sm:$0xff] %v6475_v59  ;;  %v6507_v34 = vpop.f32.mrb[151].mxu1 }
 0x391   : > { %v3633_v57 = vadd.f32 %v3569_v5, %v3249_v35  ;;  %v8462_v35 = vld [vmem:[#allocation215_spill] sm:$0xff]  ;;  %v8465_v5 = vld [vmem:[#allocation214_spill] sm:$0xff] }
 0x392   : > { %2773 = vperm.xlu0 %4185, %v6478_v21   ;;  %4538 = vrcp.f32 %v8462_v35 }
 0x393   : > { %3697 = vst [vmem:[%s6231_s10 + $0x28] sm:$0xff] %v3633_v57  ;;  %v4535_v52 = vpop.eup %4534  ;;  %4540 = vrcp.f32 %v8463_v58  ;;  %v8468_v57 = vld [vmem:[#allocation216_spill] sm:$0xff] }
 0x394   : > { %v6487_v50 = vmul.f32 %v4535_v52, %v8459_v13  ;;  %4542 = vrcp.f32 %v8465_v5  ;;  %v6523_v52 = vpop.f32.mrb[152].mxu1  ;;  %v6525_v13 = vpop.f32.mrb[106].mxu0 }
 0x395   : > { %v4537_v53 = vpop.eup %4536  ;;  %4544 = vrcp.f32 %v8468_v57  ;;  %v8473_v57 = vld [vmem:[#allocation219_spill] sm:$0xff] }
 0x396   : > { %4187 = vset.pattern.permute.xlu0 %v8355_v20  ;;  %v6493_v2 = vmul.f32 %v4537_v53, %v8460_v30  ;;  %v6528_v53 = vpop.f32.mrb[107].mxu0  ;;  %4546 = vrcp.f32 %v8473_v57  ;;  %v1243_v57 = vadd.f32 %v6323_v39, %v6190_v62  ;;  %v8479_v39 = vld [vmem:[#allocation104_spill] sm:$0xff] }
 0x397   : > { %3349 = vperm.xlu0 %4187, %v6468_v51   ;;  %v6531_v30 = vpop.f32.mrb[108].mxu0  ;;  %4548 = vrcp.f32 %v8477_v38 }
 0x398   : > { %8461 = vst [vmem:[#allocation27_spill] sm:$0xff] %v6493_v2  ;;  %v6535_v35 = vpop.f32.mrb[109].mxu0  ;;  %4550 = vrcp.f32 %v8481_v14 }
 0x399   : > { %2198 = vperm.xlu1 %4176, %v6396_v12   ;;  %v6544_v5 = vpop.xlane.xlu0 %1988 }
 0x39a   : > { %8470 = vst [vmem:[#allocation14_spill] sm:$0xff] %v6544_v5 }
 0x39b   : > { %4188 = vset.pattern.permute.xlu0 %v8114_v44 }
 0x39c   : > { %2213 = vperm.xlu0 %4188, %v6487_v50   ;;  %v4539_v55 = vpop.eup %4538 }
 0x39d   : > { %2438 = vperm.xlu1 %4176, %v6407_v25   ;;  %v4541_v27 = vpop.eup %4540 }
 0x39e   : > { %v6520_v10 = vmul.f32 %v4541_v27, %v8466_v32  ;;  %v4543_v58 = vpop.eup %4542 }
 0x39f   : > { %v4545_v27 = vpop.eup %4544 }
 0x3a0   : > { %2453 = vperm.xlu0 %4188, %v6493_v2   ;;  %8467 = vst [vmem:[#allocation206_spill] sm:$0xff] %v6520_v10 }
 0x3a1   : > { %4178 = vset.pattern.permute.xlu1 %v8351_v31  ;;  %v2566_v59 = vpop.permute.xlu0 %2565 }
 0x3a2   : > { %2957 = vperm.xlu1 %4178, %v6396_v12   ;;  %v8464_v12 = vld [vmem:[#allocation47_spill] sm:$0xff] }
 0x3a3   : > { %v6513_v15 = vmul.f32 %v4539_v55, %v8464_v12  ;;  %v8469_v55 = vld [vmem:[#allocation50_spill] sm:$0xff] }
 0x3a4   : > { %4190 = vset.pattern.permute.xlu0 %v8351_v31  ;;  %v6541_v12 = vmul.f32 %v4543_v58, %v8469_v55  ;;  %v8475_v58 = vld [vmem:[#allocation103_spill] sm:$0xff] }
 0x3a5   : > { %2969 = vperm.xlu0 %4190, %v6487_v50   ;;  %v1003_v55 = vadd.f32 %v8475_v58, %v6190_v62  ;;  %v2758_v58 = vpop.permute.xlu0 %2757 }
 0x3a6   : > { %3149 = vperm.xlu1 %4178, %v6407_v25  }
 0x3a9   : > { %3161 = vperm.xlu0 %4190, %v6493_v2  }
 0x3aa   : > { %4181 = vset.pattern.permute.xlu1 %v8347_v37 }
 0x3ab   : > { %2577 = vperm.xlu1 %4181, %v6428_v43  }
 0x3ad   : > { %4193 = vset.pattern.permute.xlu0 %v8347_v37 }
 0x3ae   : > { %2589 = vperm.xlu0 %4193, %v6513_v15  }
 0x3af   : > { %2769 = vperm.xlu1 %4181, %v6436_v4   ;;  %v6567_v4 = vpop.f32.mrb[153].mxu1 }
 0x3b0   : > { %v6571_v38 = vpop.f32.mrb[154].mxu1 }
 0x3b1   : > { %v6573_v25 = vpop.f32.mrb[155].mxu1 }
 0x3b2   : > { %2781 = vperm.xlu0 %4193, %v6520_v10  }
 0x3b3   : > { %4183 = vset.pattern.permute.xlu1 %v8355_v20 }
 0x3b4   : > { %3345 = vperm.xlu1 %4183, %v6428_v43   ;;  %v8471_v43 = vld [vmem:[#allocation53_spill] sm:$0xff] }
 0x3b5   : > { %v6549_v32 = vmul.f32 %v4545_v27, %v8471_v43  ;;  %v2802_v43 = vmul.f32 %v2566_v59, %v1003_v55  ;;  %v4547_v59 = vpop.eup %4546  ;;  %v2850_v55 = vmul.f32 %v2758_v58, %v1243_v57 }
 0x3b6   : > { %4195 = vset.pattern.permute.xlu0 %v8355_v20  ;;  %v6583_v19 = vmul.f32 %v4547_v59, %v8480_v47  ;;  %v4549_v33 = vpop.eup %4548  ;;  %v8484_v59 = vld [vmem:[#allocation221_spill] sm:$0xff] }
 0x3b7   : > { %3357 = vperm.xlu0 %4195, %v6513_v15   ;;  %8472 = vst [vmem:[#allocation33_spill] sm:$0xff] %v6549_v32  ;;  %4552 = vrcp.f32 %v8484_v59  ;;  %v1247_v59 = vadd.f32 %v6361_v48, %v6190_v62 }
 0x3b8   : > { %4184 = vset.pattern.permute.xlu1 %v8114_v44 }
 0x3b9   : > { %2208 = vperm.xlu1 %4184, %v6468_v51  }
 0x3bb   : > { %4196 = vset.pattern.permute.xlu0 %v8114_v44 }
 0x3bc   : > { %2223 = vperm.xlu0 %4196, %v6541_v12  }
 0x3bd   : > { %2448 = vperm.xlu1 %4184, %v6478_v21  }
 0x3c0   : > { %v6552_v0 = vpop.xlane.xlu1 %1990  ;;  %2463 = vperm.xlu0 %4196, %v6549_v32  }
 0x3c1   : > { %8474 = vst [vmem:[#allocation208_spill] sm:$0xff] %v6552_v0  ;;  %4186 = vset.pattern.permute.xlu1 %v8351_v31  ;;  %v662_v0 = vadd.f32 %v8510_v63, %v6195_v18 }
 0x3c2   : > { %2965 = vperm.xlu1 %4186, %v6468_v51   ;;  %v8478_v51 = vld [vmem:[#allocation19_spill] sm:$0xff] }
 0x3c3   : > { %v892_v24 = vadd.f32 %v8478_v51, %v6195_v18 }
 0x3c4   : > { %v2189_v27 = vpop.permute.xlu1 %2188  ;;  %4198 = vset.pattern.permute.xlu0 %v8351_v31 }
 0x3c5   : > { %v2482_v49 = vmul.f32 %v2189_v27, %v652_v26  ;;  %2977 = vperm.xlu0 %4198, %v6541_v12   ;;  %v1005_v26 = vadd.f32 %v8479_v39, %v6202_v16  ;;  %v8482_v39 = vld [vmem:[#allocation59_spill] sm:$0xff] }
 0x3c6   : > { %3157 = vperm.xlu1 %4186, %v6478_v21   ;;  %v1350_v21 = vadd.f32 %v6255_v29, %v6214_v40  ;;  %v6592_v47 = vmul.f32 %v4549_v33, %v8482_v39  ;;  %v4551_v33 = vpop.eup %4550 }
 0x3c7   : > { %v2866_v3 = vadd.f32 %v2802_v43, %v2482_v49  ;;  %v3334_v49 = vpop.permute.xlu0 %3333  ;;  %v4553_v39 = vpop.eup %4552 }
 0x3c8   : > { %v2429_v22 = vpop.permute.xlu1 %2428  ;;  %v3570_v29 = vmul.f32 %v3334_v49, %v1350_v21  ;;  %8483 = vst [vmem:[#allocation15_spill] sm:$0xff] %v6592_v47  ;;  %v8486_v21 = vld [vmem:[#allocation106_spill] sm:$0xff]  ;;  %v6626_v48 = vmul.f32 %v4553_v39, %v8491_v41 }
 0x3c9   : > { %v2530_v27 = vmul.f32 %v2429_v22, %v892_v24  ;;  %3169 = vperm.xlu0 %4198, %v6549_v32   ;;  %v1245_v22 = vadd.f32 %v6358_v36, %v6202_v16  ;;  %v1007_v49 = vadd.f32 %v8486_v21, %v6190_v62  ;;  %v8490_v21 = vld [vmem:[#allocation21_spill] sm:$0xff] }
 0x3ca   : > { %4189 = vset.pattern.permute.xlu1 %v8347_v37  ;;  %8492 = vst [vmem:[#allocation204_spill] sm:$0xff] %v6626_v48 }
 0x3cb   : > { %v2914_v51 = vadd.f32 %v2850_v55, %v2530_v27  ;;  %2585 = vperm.xlu1 %4189, %v6487_v50   ;;  %v6595_v27 = vpop.f32.mrb[156].mxu1  ;;  %v2434_v36 = vpop.permute.xlu0 %2433 }
 0x3cc   : > { %v2950_v43 = vpop.permute.xlu1 %2949 }
 0x3cd   : > { %v3186_v57 = vmul.f32 %v2950_v43, %v1005_v26  ;;  %4201 = vset.pattern.permute.xlu0 %v8347_v37 }
 0x3ce   : > { %2597 = vperm.xlu0 %4201, %v6583_v19  }
 0x3cf   : > { %v3250_v58 = vadd.f32 %v3186_v57, %v2866_v3  ;;  %2777 = vperm.xlu1 %4189, %v6493_v2   ;;  %v2954_v43 = vpop.permute.xlu0 %2953  ;;  %v8488_v57 = vld [vmem:[#allocation108_spill] sm:$0xff] }
 0x3d0   : > { %v3142_v24 = vpop.permute.xlu1 %3141 }
 0x3d1   : > { %v3634_v14 = vadd.f32 %v3570_v29, %v3250_v58  ;;  %v3234_v55 = vmul.f32 %v3142_v24, %v1245_v22  ;;  %v8487_v22 = vld [vmem:[#allocation20_spill] sm:$0xff]  ;;  %v1009_v29 = vadd.f32 %v8488_v57, %v6202_v16  ;;  %v8489_v58 = vld [vmem:[#allocation97_spill] sm:$0xff] }
 0x3d2   : > { %2789 = vperm.xlu0 %4201, %v6592_v47   ;;  %v6614_v24 = vmul.f32 %v4551_v33, %v8489_v58 }
 0x3d3   : > { %3698 = vst [vmem:[%s6231_s10 + $0x30] sm:$0xff] %v3634_v14  ;;  %v6599_v26 = vadd.f32 %v3234_v55, %v2914_v51  ;;  %4191 = vset.pattern.permute.xlu1 %v8355_v20  ;;  %v656_v51 = vadd.f32 %v8487_v22, %v6195_v18  ;;  %v896_v22 = vadd.f32 %v8490_v21, %v6195_v18  ;;  %v3146_v33 = vpop.permute.xlu0 %3145  ;;  %v8497_v21 = vld [vmem:[#allocation57_spill] sm:$0xff] }
 0x3d4   : > { %3353 = vperm.xlu1 %4191, %v6487_v50   ;;  %v3187_v57 = vmul.f32 %v2954_v43, %v1009_v29  ;;  %v1353_v43 = vadd.f32 %v6294_v56, %v6214_v40  ;;  %v6639_v56 = vpop.f32.mrb[157].mxu1 }
 0x3d5   : > { %8485 = vst [vmem:[#allocation99_spill] sm:$0xff] %v6599_v26  ;;  %v2194_v3 = vpop.permute.xlu1 %2193  ;;  %v1249_v26 = vadd.f32 %v6365_v46, %v6202_v16 }
 0x3d6   : > { %4203 = vset.pattern.permute.xlu0 %v8355_v20  ;;  %v2483_v14 = vmul.f32 %v2194_v3, %v656_v51  ;;  %v8493_v3 = vld [vmem:[#allocation225_spill] sm:$0xff] }
 0x3d7   : > { %3365 = vperm.xlu0 %4203, %v6583_v19   ;;  %4554 = vrcp.f32 %v8493_v3  ;;  %v3235_v46 = vmul.f32 %v3146_v33, %v1249_v26  ;;  %v6658_v33 = vpop.f32.mrb[110].mxu0 }
 0x3d8   : > { %4192 = vset.pattern.permute.xlu1 %v8114_v44 }
 0x3d9   : > { %2218 = vperm.xlu1 %4192, %v6513_v15  }
 0x3da   : > { %v2570_v50 = vpop.permute.xlu1 %2569 }
 0x3db   : > { %v2803_v55 = vmul.f32 %v2570_v50, %v1007_v49  ;;  %4204 = vset.pattern.permute.xlu0 %v8114_v44  ;;  %v2531_v49 = vmul.f32 %v2434_v36, %v896_v22  ;;  %v6641_v36 = vpop.f32.mrb[158].mxu1 }
 0x3dc   : > { %2233 = vperm.xlu0 %4204, %v6614_v24   ;;  %v6644_v26 = vpop.f32.mrb[159].mxu1 }
 0x3dd   : > { %v2867_v2 = vadd.f32 %v2803_v55, %v2483_v14  ;;  %2458 = vperm.xlu1 %4192, %v6520_v10  }
 0x3de   : > { %v2762_v58 = vpop.permute.xlu1 %2761 }
 0x3df   : > { %v2851_v51 = vmul.f32 %v2762_v58, %v1247_v59  ;;  %v3251_v50 = vadd.f32 %v3187_v57, %v2867_v2  ;;  %v6661_v58 = vpop.f32.mrb[111].mxu0 }
 0x3e0   : > { %2473 = vperm.xlu0 %4204, %v6626_v48  }
 0x3e1   : > { %v2915_v29 = vadd.f32 %v2851_v51, %v2531_v49  ;;  %4194 = vset.pattern.permute.xlu1 %v8351_v31  ;;  %v4555_v59 = vpop.eup %4554  ;;  %v6666_v49 = vpop.f32.mrb[112].mxu0 }
 0x3e2   : > { %2973 = vperm.xlu1 %4194, %v6513_v15   ;;  %v8495_v15 = vld [vmem:[#allocation224_spill] sm:$0xff]  ;;  %v6653_v22 = vmul.f32 %v4555_v59, %v8497_v21  ;;  %8498 = vst [vmem:[#allocation96_spill] sm:$0xff] %v6666_v49  ;;  %v6669_v51 = vpop.f32.mrb[113].mxu0  ;;  %v8501_v59 = vld [vmem:[#allocation226_spill] sm:$0xff] }
 0x3e3   : > { %v3338_v14 = vpop.permute.xlu1 %3337  ;;  %v6634_v41 = vadd.f32 %v3235_v46, %v2915_v29  ;;  %4556 = vrcp.f32 %v8495_v15  ;;  %v8500_v29 = vld [vmem:[#allocation98_spill] sm:$0xff]  ;;  %v8502_v15 = vld [vmem:[#allocation63_spill] sm:$0xff] }
 0x3e4   : > { %v3571_v39 = vmul.f32 %v3338_v14, %v1353_v43  ;;  %4206 = vset.pattern.permute.xlu0 %v8351_v31  ;;  %v8499_v43 = vld [vmem:[#allocation227_spill] sm:$0xff] }
 0x3e5   : > { %8494 = vst [vmem:[#allocation35_spill] sm:$0xff] %v6634_v41  ;;  %2985 = vperm.xlu0 %4206, %v6614_v24   ;;  %v6647_v55 = vpop.xlane.xlu0 %1992  ;;  %4558 = vrcp.f32 %v8499_v43  ;;  %v8505_v41 = vld [vmem:[#allocation228_spill] sm:$0xff] }
 0x3e6   : > { %v3635_v2 = vadd.f32 %v3571_v39, %v3251_v50  ;;  %3165 = vperm.xlu1 %4194, %v6520_v10   ;;  %8496 = vst [vmem:[#allocation40_spill] sm:$0xff] %v6647_v55  ;;  %4560 = vrcp.f32 %v8501_v59  ;;  %v8504_v59 = vld [vmem:[#allocation101_spill] sm:$0xff]  ;;  %v6735_v55 = vpop.f32.mrb[114].mxu0 }
 0x3e7   : > { %8509 = vst [vmem:[#allocation69_spill] sm:$0xff] %v6735_v55  ;;  %v8514_v55 = vld [vmem:[#allocation23_spill] sm:$0xff] }
 0x3e8   : > { %3699 = vst [vmem:[%s6231_s10 + $0x38] sm:$0xff] %v3635_v2 }
 0x3e9   : > { %3177 = vperm.xlu0 %4206, %v6626_v48  }
 0x3ea   : > { %4197 = vset.pattern.permute.xlu1 %v8347_v37 }
 0x3eb   : > { %2593 = vperm.xlu1 %4197, %v6541_v12  }
 0x3ed   : > { %4209 = vset.pattern.permute.xlu0 %v8347_v37  ;;  %v6656_v57 = vpop.permute.xlu0 %2573  ;;  %v4557_v50 = vpop.eup %4556 }
 0x3ee   : > { %2605 = vperm.xlu0 %4209, %v6653_v22   ;;  %v6678_v14 = vmul.f32 %v4557_v50, %v8500_v29  ;;  %v8503_v29 = vld [vmem:[#allocation230_spill] sm:$0xff] }
 0x3ef   : > { %2785 = vperm.xlu1 %4197, %v6549_v32   ;;  %v4559_v2 = vpop.eup %4558  ;;  %4562 = vrcp.f32 %v8503_v29 }
 0x3f0   : > { %v6693_v21 = vmul.f32 %v4559_v2, %v8502_v15  ;;  %v4561_v43 = vpop.eup %4560  ;;  %4564 = vrcp.f32 %v8505_v41 }
 0x3f1   : > { %v6664_v3 = vpop.permute.xlu0 %2765  ;;  %v6709_v15 = vmul.f32 %v4561_v43, %v8504_v59  ;;  %v8506_v43 = vld [vmem:[#allocation65_spill] sm:$0xff]  ;;  %4566 = vrcp.f32 %v8513_v17  ;;  %v8516_v17 = vld [vmem:[#allocation107_spill] sm:$0xff] }
 0x3f2   : > { %4211 = vset.pattern.permute.xlu0 %v8355_v20 }
 0x3f3   : > { %4199 = vset.pattern.permute.xlu1 %v8355_v20  ;;  %3373 = vperm.xlu0 %4211, %v6653_v22  }
 0x3f4   : > { %3361 = vperm.xlu1 %4199, %v6541_v12  }
 0x3f6   : > { %v6675_v46 = vpop.permute.xlu0 %3341 }
 0x3f7   : > { %4212 = vset.pattern.permute.xlu0 %v8114_v44 }
 0x3f8   : > { %4200 = vset.pattern.permute.xlu1 %v8114_v44  ;;  %2243 = vperm.xlu0 %4212, %v6678_v14  }
 0x3f9   : > { %2228 = vperm.xlu1 %4200, %v6583_v19   ;;  %v4563_v29 = vpop.eup %4562 }
 0x3fa   : > { %v6725_v59 = vmul.f32 %v4563_v29, %v8506_v43  ;;  %v4565_v63 = vpop.eup %4564 }
 0x3fb   : > { %v6684_v39 = vpop.permute.xlu0 %2203 }
 0x3fc   : > { %4214 = vset.pattern.permute.xlu0 %v8351_v31 }
 0x3fd   : > { %2468 = vperm.xlu1 %4200, %v6592_v47   ;;  %2993 = vperm.xlu0 %4214, %v6678_v14  }
 0x3ff   : > { %v6690_v12 = vpop.permute.xlu0 %2443 }
 0x401   : > { %4202 = vset.pattern.permute.xlu1 %v8351_v31  ;;  %4217 = vset.pattern.permute.xlu0 %v8347_v37 }
 0x402   : > { %2981 = vperm.xlu1 %4202, %v6583_v19   ;;  %2613 = vperm.xlu0 %4217, %v6693_v21  }
 0x404   : > { %v6699_v50 = vpop.permute.xlu0 %2961 }
 0x406   : > { %3173 = vperm.xlu1 %4202, %v6592_v47   ;;  %4219 = vset.pattern.permute.xlu0 %v8355_v20 }
 0x407   : > { %3381 = vperm.xlu0 %4219, %v6693_v21  }
 0x408   : > { %v6705_v2 = vpop.permute.xlu0 %3153 }
 0x40a   : > { %4205 = vset.pattern.permute.xlu1 %v8347_v37 }
 0x40b   : > { %2601 = vperm.xlu1 %4205, %v6614_v24   ;;  %4220 = vset.pattern.permute.xlu0 %v8114_v44 }
 0x40c   : > { %2253 = vperm.xlu0 %4220, %v6709_v15  }
 0x40d   : > { %v6714_v19 = vpop.permute.xlu0 %2581 }
 0x40f   : > { %2793 = vperm.xlu1 %4205, %v6626_v48   ;;  %v8508_v48 = vld [vmem:[#allocation109_spill] sm:$0xff] }
 0x410   : > { %4222 = vset.pattern.permute.xlu0 %v8351_v31  ;;  %v1013_v10 = vadd.f32 %v8508_v48, %v6190_v62 }
 0x411   : > { %3001 = vperm.xlu0 %4222, %v6709_v15   ;;  %v6720_v32 = vpop.permute.xlu0 %2773 }
 0x412   : > { %v2804_v48 = vmul.f32 %v6656_v57, %v1013_v10 }
 0x413   : > { %4207 = vset.pattern.permute.xlu1 %v8355_v20 }
 0x414   : > { %3369 = vperm.xlu1 %4207, %v6614_v24   ;;  %v6740_v24 = vpop.f32.mrb[115].mxu0 }
 0x415   : > { %v6727_v47 = vpop.xlane.xlu1 %1994  ;;  %4225 = vset.pattern.permute.xlu0 %v8347_v37  ;;  %v6743_v43 = vpop.f32.mrb[116].mxu0 }
 0x416   : > { %8507 = vst [vmem:[#allocation211_spill] sm:$0xff] %v6727_v47  ;;  %2621 = vperm.xlu0 %4225, %v6725_v59   ;;  %v6733_v41 = vpop.permute.xlu0 %3349  ;;  %8511 = vst [vmem:[#allocation213_spill] sm:$0xff] %v6743_v43  ;;  %v1253_v47 = vadd.f32 %v6402_v42, %v6190_v62  ;;  %v6749_v5 = vpop.f32.mrb[117].mxu0  ;;  %v902_v43 = vadd.f32 %v8514_v55, %v6195_v18 }
 0x417   : > { %8512 = vst [vmem:[#allocation16_spill] sm:$0xff] %v6749_v5  ;;  %v6763_v5 = vmul.f32 %v4565_v63, %v8516_v17  ;;  %v8520_v17 = vld [vmem:[#allocation100_spill] sm:$0xff] }
 0x418   : > { %4208 = vset.pattern.permute.xlu1 %v8114_v44  ;;  %v2852_v57 = vmul.f32 %v6664_v3, %v1253_v47  ;;  %v1255_v47 = vadd.f32 %v6442_v60, %v6202_v16 }
 0x419   : > { %v2199_v29 = vpop.permute.xlu1 %2198  ;;  %2238 = vperm.xlu1 %4208, %v6653_v22  }
 0x41a   : > { %v2484_v9 = vmul.f32 %v2199_v29, %v662_v0  ;;  %4227 = vset.pattern.permute.xlu0 %v8355_v20  ;;  %v8515_v0 = vld [vmem:[#allocation110_spill] sm:$0xff] }
 0x41b   : > { %3389 = vperm.xlu0 %4227, %v6725_v59   ;;  %v6753_v6 = vpop.permute.xlu0 %2213  ;;  %v1015_v42 = vadd.f32 %v8515_v0, %v6202_v16 }
 0x41c   : > { %v2868_v28 = vadd.f32 %v2804_v48, %v2484_v9  ;;  %v1358_v9 = vadd.f32 %v6415_v8, %v6214_v40  ;;  %v4567_v8 = vpop.eup %4566 }
 0x41d   : > { %v2439_v10 = vpop.permute.xlu1 %2438  ;;  %4210 = vset.pattern.permute.xlu1 %v8351_v31 }
 0x41e   : > { %v2532_v29 = vmul.f32 %v2439_v10, %v902_v43  ;;  %2989 = vperm.xlu1 %4210, %v6653_v22   ;;  %v3572_v22 = vmul.f32 %v6675_v46, %v1358_v9  ;;  %v8517_v10 = vld [vmem:[#allocation231_spill] sm:$0xff]  ;;  %v6791_v9 = vmul.f32 %v4567_v8, %v8520_v17  ;;  %v8523_v8 = vld [vmem:[#allocation25_spill] sm:$0xff] }
 0x41f   : > { %4228 = vset.pattern.permute.xlu0 %v8114_v44  ;;  %v6766_v49 = vpop.permute.xlu0 %2453  ;;  %4568 = vrcp.f32 %v8517_v10 }
 0x420   : > { %v2916_v55 = vadd.f32 %v2852_v57, %v2532_v29  ;;  %2263 = vperm.xlu0 %4228, %v6763_v5  }
 0x421   : > { %v2958_v48 = vpop.permute.xlu1 %2957 }
 0x422   : > { %v3188_v3 = vmul.f32 %v2958_v48, %v1015_v42  ;;  %4213 = vset.pattern.permute.xlu1 %v8347_v37  ;;  %v8518_v42 = vld [vmem:[#allocation72_spill] sm:$0xff] }
 0x423   : > { %2609 = vperm.xlu1 %4213, %v6678_v14   ;;  %v1017_v29 = vadd.f32 %v8518_v42, %v6190_v62  ;;  %v8521_v48 = vld [vmem:[#allocation24_spill] sm:$0xff] }
 0x424   : > { %v3252_v43 = vadd.f32 %v3188_v3, %v2868_v28  ;;  %4230 = vset.pattern.permute.xlu0 %v8351_v31  ;;  %v6777_v63 = vpop.permute.xlu0 %2969  ;;  %v666_v3 = vadd.f32 %v8521_v48, %v6195_v18 }
 0x425   : > { %v3150_v0 = vpop.permute.xlu1 %3149  ;;  %3009 = vperm.xlu0 %4230, %v6763_v5  }
 0x426   : > { %v3636_v60 = vadd.f32 %v3572_v22, %v3252_v43  ;;  %v3236_v57 = vmul.f32 %v3150_v0, %v1255_v47  ;;  %v8522_v47 = vld [vmem:[#allocation112_spill] sm:$0xff]  ;;  %v906_v0 = vadd.f32 %v8523_v8, %v6195_v18 }
 0x427   : > { %4215 = vset.pattern.permute.xlu1 %v8355_v20  ;;  %v1019_v22 = vadd.f32 %v8522_v47, %v6202_v16 }
 0x428   : > { %3700 = vst [vmem:[%s6231_s10 + $0x40] sm:$0xff] %v3636_v60  ;;  %v6785_v46 = vadd.f32 %v3236_v57, %v2916_v55  ;;  %3377 = vperm.xlu1 %4215, %v6678_v14   ;;  %v6788_v28 = vpop.permute.xlu0 %3161  ;;  %v2485_v55 = vmul.f32 %v6684_v39, %v666_v3  ;;  %v1257_v14 = vadd.f32 %v6451_v7, %v6190_v62 }
 0x429   : > { %4233 = vset.pattern.permute.xlu0 %v8347_v37  ;;  %v3189_v60 = vmul.f32 %v6699_v50, %v1019_v22  ;;  %v1259_v57 = vadd.f32 %v6455_v54, %v6202_v16  ;;  %v4569_v7 = vpop.eup %4568  ;;  %v2533_v48 = vmul.f32 %v6690_v12, %v906_v0  ;;  %v1361_v54 = vadd.f32 %v6528_v53, %v6214_v40  ;;  %v8527_v53 = vld [vmem:[#allocation113_spill] sm:$0xff] }
 0x42a   : > { %8519 = vst [vmem:[#allocation102_spill] sm:$0xff] %v6785_v46  ;;  %v2578_v43 = vpop.permute.xlu1 %2577  ;;  %2629 = vperm.xlu0 %4233, %v6791_v9  }
 0x42b   : > { %v2805_v10 = vmul.f32 %v2578_v43, %v1017_v29  ;;  %v8524_v29 = vld [vmem:[#allocation236_spill] sm:$0xff]  ;;  %v3237_v47 = vmul.f32 %v6705_v2, %v1259_v57  ;;  %v1023_v2 = vadd.f32 %v8527_v53, %v6190_v62  ;;  %v8532_v53 = vld [vmem:[#allocation114_spill] sm:$0xff] }
 0x42c   : > { %4216 = vset.pattern.permute.xlu1 %v8114_v44  ;;  %4570 = vrcp.f32 %v8524_v29 }
 0x42d   : > { %v2869_v42 = vadd.f32 %v2805_v10, %v2485_v55  ;;  %2248 = vperm.xlu1 %4216, %v6693_v21   ;;  %v6809_v17 = vpop.permute.xlu0 %2589  ;;  %v8525_v55 = vld [vmem:[#allocation111_spill] sm:$0xff]  ;;  %v2806_v29 = vmul.f32 %v6714_v19, %v1023_v2  ;;  %v1025_v2 = vadd.f32 %v8532_v53, %v6202_v16 }
 0x42e   : > { %v2770_v39 = vpop.permute.xlu1 %2769  ;;  %4235 = vset.pattern.permute.xlu0 %v8355_v20  ;;  %v6823_v10 = vmul.f32 %v4569_v7, %v8525_v55  ;;  %v8529_v7 = vld [vmem:[#allocation234_spill] sm:$0xff] }
 0x42f   : > { %v2853_v3 = vmul.f32 %v2770_v39, %v1257_v14  ;;  %3397 = vperm.xlu0 %4235, %v6791_v9   ;;  %v3253_v50 = vadd.f32 %v3189_v60, %v2869_v42  ;;  %4572 = vrcp.f32 %v8529_v7  ;;  %v1265_v7 = vadd.f32 %v6503_v23, %v6202_v16 }
 0x431   : > { %v2917_v22 = vadd.f32 %v2853_v3, %v2533_v48  ;;  %4218 = vset.pattern.permute.xlu1 %v8351_v31  ;;  %v6819_v43 = vpop.permute.xlu0 %2781  ;;  %v1263_v48 = vadd.f32 %v6473_v11, %v6190_v62 }
 0x432   : > { %2997 = vperm.xlu1 %4218, %v6693_v21   ;;  %v8528_v21 = vld [vmem:[#allocation28_spill] sm:$0xff] }
 0x433   : > { %v3346_v12 = vpop.permute.xlu1 %3345  ;;  %4236 = vset.pattern.permute.xlu0 %v8114_v44  ;;  %v6826_v14 = vadd.f32 %v3237_v47, %v2917_v22  ;;  %v672_v57 = vadd.f32 %v8528_v21, %v6195_v18  ;;  %v2854_v19 = vmul.f32 %v6720_v32, %v1263_v48 }
 0x434   : > { %v3573_v8 = vmul.f32 %v3346_v12, %v1361_v54  ;;  %2273 = vperm.xlu0 %4236, %v6823_v10   ;;  %v8531_v12 = vld [vmem:[#allocation105_spill] sm:$0xff] }
 0x435   : > { %8526 = vst [vmem:[#allocation17_spill] sm:$0xff] %v6826_v14 }
 0x436   : > { %v3637_v0 = vadd.f32 %v3573_v8, %v3253_v50  ;;  %4221 = vset.pattern.permute.xlu1 %v8347_v37  ;;  %v6832_v60 = vpop.permute.xlu0 %3357  ;;  %v4571_v39 = vpop.eup %4570  ;;  %v8530_v50 = vld [vmem:[#allocation29_spill] sm:$0xff] }
 0x437   : > { %2617 = vperm.xlu1 %4221, %v6709_v15   ;;  %v912_v54 = vadd.f32 %v8530_v50, %v6195_v18  ;;  %v6851_v8 = vmul.f32 %v4571_v39, %v8531_v12 }
 0x438   : > { %3701 = vst [vmem:[%s6231_s10 + $0x48] sm:$0xff] %v3637_v0  ;;  %v2209_v42 = vpop.permute.xlu1 %2208  ;;  %4238 = vset.pattern.permute.xlu0 %v8351_v31 }
 0x439   : > { %v2486_v3 = vmul.f32 %v2209_v42, %v672_v57  ;;  %3017 = vperm.xlu0 %4238, %v6823_v10   ;;  %v6860_v57 = vpop.f32.mrb[118].mxu0 }
 0x43a   : > { %v6865_v42 = vpop.f32.mrb[119].mxu0 }
 0x43b   : > { %v2870_v47 = vadd.f32 %v2806_v29, %v2486_v3  ;;  %4223 = vset.pattern.permute.xlu1 %v8355_v20  ;;  %v6847_v22 = vpop.permute.xlu0 %2223  ;;  %v6868_v39 = vpop.f32.mrb[120].mxu0 }
 0x43c   : > { %v2449_v55 = vpop.permute.xlu1 %2448  ;;  %3385 = vperm.xlu1 %4223, %v6709_v15   ;;  %v1366_v15 = vadd.f32 %v6413_v61, %v6214_v40  ;;  %v6873_v48 = vpop.f32.mrb[121].mxu0  ;;  %v8533_v61 = vld [vmem:[#allocation239_spill] sm:$0xff] }
 0x43d   : > { %v2534_v11 = vmul.f32 %v2449_v55, %v912_v54  ;;  %4241 = vset.pattern.permute.xlu0 %v8347_v37  ;;  %v4573_v3 = vpop.eup %4572  ;;  %4574 = vrcp.f32 %v8533_v61  ;;  %v8536_v61 = vld [vmem:[#allocation238_spill] sm:$0xff] }
 0x43e   : > { %2637 = vperm.xlu0 %4241, %v6851_v8   ;;  %v3574_v50 = vmul.f32 %v6733_v41, %v1366_v15  ;;  %4576 = vrcp.f32 %v8536_v61  ;;  %v8538_v15 = vld [vmem:[#allocation30_spill] sm:$0xff] }
 0x43f   : > { %v2918_v0 = vadd.f32 %v2854_v19, %v2534_v11  ;;  %v6858_v21 = vpop.permute.xlu0 %2463  ;;  %v8534_v11 = vld [vmem:[#allocation117_spill] sm:$0xff] }
 0x440   : > { %4224 = vset.pattern.permute.xlu1 %v8114_v44  ;;  %v6883_v53 = vmul.f32 %v4573_v3, %v8534_v11 }
 0x441   : > { %v2966_v32 = vpop.permute.xlu1 %2965  ;;  %2258 = vperm.xlu1 %4224, %v6725_v59  }
 0x442   : > { %v3190_v29 = vmul.f32 %v2966_v32, %v1025_v2  ;;  %4243 = vset.pattern.permute.xlu0 %v8355_v20  ;;  %v8535_v2 = vld [vmem:[#allocation116_spill] sm:$0xff] }
 0x443   : > { %3405 = vperm.xlu0 %4243, %v6851_v8   ;;  %v1027_v32 = vadd.f32 %v8535_v2, %v6190_v62  ;;  %v1269_v2 = vadd.f32 %v6507_v34, %v6202_v16 }
 0x444   : > { %v3254_v54 = vadd.f32 %v3190_v29, %v2870_v47  ;;  %v6878_v55 = vpop.permute.xlu0 %2977 }
 0x445   : > { %v3158_v12 = vpop.permute.xlu1 %3157  ;;  %4226 = vset.pattern.permute.xlu1 %v8351_v31  ;;  %v3239_v34 = vmul.f32 %v6788_v28, %v1269_v2 }
 0x446   : > { %v3638_v23 = vadd.f32 %v3574_v50, %v3254_v54  ;;  %v3238_v19 = vmul.f32 %v3158_v12, %v1265_v7  ;;  %3005 = vperm.xlu1 %4226, %v6725_v59   ;;  %v676_v59 = vadd.f32 %v8538_v15, %v6195_v18  ;;  %v8539_v7 = vld [vmem:[#allocation118_spill] sm:$0xff]  ;;  %v1267_v54 = vadd.f32 %v6505_v1, %v6190_v62 }
 0x447   : > { %4244 = vset.pattern.permute.xlu0 %v8114_v44  ;;  %v1029_v29 = vadd.f32 %v8539_v7, %v6202_v16  ;;  %v4575_v12 = vpop.eup %4574  ;;  %v1369_v7 = vadd.f32 %v6525_v13, %v6214_v40 }
 0x448   : > { %3702 = vst [vmem:[%s6231_s10 + $0x50] sm:$0xff] %v3638_v23  ;;  %v6890_v41 = vadd.f32 %v3238_v19, %v2918_v0  ;;  %2283 = vperm.xlu0 %4244, %v6883_v53   ;;  %v6893_v47 = vpop.permute.xlu0 %3169  ;;  %v2487_v50 = vmul.f32 %v6753_v6, %v676_v59  ;;  %v8540_v23 = vld [vmem:[#allocation32_spill] sm:$0xff] }
 0x449   : > { %v916_v19 = vadd.f32 %v8540_v23, %v6195_v18  ;;  %v3191_v11 = vmul.f32 %v6777_v63, %v1029_v29  ;;  %v8541_v63 = vld [vmem:[#allocation115_spill] sm:$0xff]  ;;  %v8545_v23 = vld [vmem:[#allocation120_spill] sm:$0xff] }
 0x44a   : > { %8537 = vst [vmem:[#allocation34_spill] sm:$0xff] %v6890_v41  ;;  %v2586_v3 = vpop.permute.xlu1 %2585  ;;  %4229 = vset.pattern.permute.xlu1 %v8347_v37  ;;  %v6919_v29 = vmul.f32 %v4575_v12, %v8541_v63  ;;  %v8544_v12 = vld [vmem:[#allocation74_spill] sm:$0xff]  ;;  %v1273_v63 = vadd.f32 %v6523_v52, %v6190_v62 }
 0x44b   : > { %v2807_v0 = vmul.f32 %v2586_v3, %v1027_v32  ;;  %2625 = vperm.xlu1 %4229, %v6763_v5   ;;  %v2535_v32 = vmul.f32 %v6766_v49, %v916_v19  ;;  %v4577_v49 = vpop.eup %4576  ;;  %v1033_v28 = vadd.f32 %v8544_v12, %v6190_v62  ;;  %v8549_v12 = vld [vmem:[#allocation119_spill] sm:$0xff] }
 0x44c   : > { %4246 = vset.pattern.permute.xlu0 %v8351_v31  ;;  %v6934_v19 = vmul.f32 %v4577_v49, %v8545_v23 }
 0x44d   : > { %v2871_v61 = vadd.f32 %v2807_v0, %v2487_v50  ;;  %3025 = vperm.xlu0 %4246, %v6883_v53   ;;  %v6911_v6 = vpop.permute.xlu0 %2597 }
 0x44e   : > { %v2778_v1 = vpop.permute.xlu1 %2777 }
 0x44f   : > { %v2855_v15 = vmul.f32 %v2778_v1, %v1267_v54  ;;  %4231 = vset.pattern.permute.xlu1 %v8355_v20  ;;  %v3255_v59 = vadd.f32 %v3191_v11, %v2871_v61  ;;  %v8542_v54 = vld [vmem:[#allocation241_spill] sm:$0xff]  ;;  %v8546_v61 = vld [vmem:[#allocation36_spill] sm:$0xff] }
 0x450   : > { %3393 = vperm.xlu1 %4231, %v6763_v5   ;;  %4578 = vrcp.f32 %v8542_v54  ;;  %v682_v1 = vadd.f32 %v8546_v61, %v6195_v18 }
 0x451   : > { %v2919_v3 = vadd.f32 %v2855_v15, %v2535_v32  ;;  %4249 = vset.pattern.permute.xlu0 %v8347_v37  ;;  %v6923_v50 = vpop.permute.xlu0 %2789  ;;  %v8547_v32 = vld [vmem:[#allocation240_spill] sm:$0xff] }
 0x452   : > { %2645 = vperm.xlu0 %4249, %v6919_v29   ;;  %4580 = vrcp.f32 %v8547_v32  ;;  %v8551_v32 = vld [vmem:[#allocation243_spill] sm:$0xff] }
 0x453   : > { %v3354_v0 = vpop.permute.xlu1 %3353  ;;  %v6927_v13 = vadd.f32 %v3239_v34, %v2919_v3  ;;  %4582 = vrcp.f32 %v8551_v32 }
 0x454   : > { %v3575_v5 = vmul.f32 %v3354_v0, %v1369_v7  ;;  %4232 = vset.pattern.permute.xlu1 %v8114_v44  ;;  %v2808_v7 = vmul.f32 %v6809_v17, %v1033_v28  ;;  %v2856_v17 = vmul.f32 %v6819_v43, %v1273_v63  ;;  %v1035_v28 = vadd.f32 %v8549_v12, %v6202_v16  ;;  %v8554_v12 = vld [vmem:[#allocation76_spill] sm:$0xff] }
 0x455   : > { %8543 = vst [vmem:[#allocation210_spill] sm:$0xff] %v6927_v13  ;;  %2268 = vperm.xlu1 %4232, %v6791_v9  }
 0x456   : > { %v3639_v11 = vadd.f32 %v3575_v5, %v3255_v59  ;;  %4251 = vset.pattern.permute.xlu0 %v8114_v44  ;;  %v6937_v2 = vpop.permute.xlu0 %3365  ;;  %v8548_v59 = vld [vmem:[#allocation37_spill] sm:$0xff] }
 0x457   : > { %2293 = vperm.xlu0 %4251, %v6934_v19   ;;  %v922_v3 = vadd.f32 %v8548_v59, %v6195_v18 }
 0x458   : > { %3703 = vst [vmem:[%s6231_s10 + $0x58] sm:$0xff] %v3639_v11  ;;  %v2219_v15 = vpop.permute.xlu1 %2218  ;;  %v8550_v11 = vld [vmem:[#allocation124_spill] sm:$0xff] }
 0x459   : > { %v2488_v34 = vmul.f32 %v2219_v15, %v682_v1  ;;  %4234 = vset.pattern.permute.xlu1 %v8351_v31  ;;  %v1374_v1 = vadd.f32 %v6535_v35, %v6214_v40 }
 0x45a   : > { %3013 = vperm.xlu1 %4234, %v6791_v9   ;;  %v4579_v0 = vpop.eup %4578 }
 0x45b   : > { %v2872_v49 = vadd.f32 %v2808_v7, %v2488_v34  ;;  %4253 = vset.pattern.permute.xlu0 %v8351_v31  ;;  %v6952_v54 = vpop.permute.xlu0 %2233  ;;  %v6963_v61 = vmul.f32 %v4579_v0, %v8550_v11  ;;  %v1275_v7 = vadd.f32 %v6567_v4, %v6202_v16  ;;  %v3576_v34 = vmul.f32 %v6832_v60, %v1374_v1  ;;  %v8557_v1 = vld [vmem:[#allocation121_spill] sm:$0xff] }
 0x45c   : > { %v2459_v5 = vpop.permute.xlu1 %2458  ;;  %3033 = vperm.xlu0 %4253, %v6934_v19   ;;  %v4581_v43 = vpop.eup %4580  ;;  %v1037_v60 = vadd.f32 %v8554_v12, %v6190_v62 }
 0x45d   : > { %v2536_v52 = vmul.f32 %v2459_v5, %v922_v3  ;;  %v8552_v3 = vld [vmem:[#allocation127_spill] sm:$0xff] }
 0x45e   : > { %4237 = vset.pattern.permute.xlu1 %v8347_v37  ;;  %v6978_v0 = vmul.f32 %v4581_v43, %v8552_v3  ;;  %v1039_v43 = vadd.f32 %v8557_v1, %v6202_v16 }
 0x45f   : > { %v2920_v9 = vadd.f32 %v2856_v17, %v2536_v52  ;;  %2633 = vperm.xlu1 %4237, %v6823_v10   ;;  %v6960_v23 = vpop.permute.xlu0 %2473  ;;  %v8553_v17 = vld [vmem:[#allocation242_spill] sm:$0xff] }
 0x460   : > { %4255 = vset.pattern.permute.xlu0 %v8347_v37  ;;  %4584 = vrcp.f32 %v8553_v17  ;;  %v3193_v3 = vmul.f32 %v6878_v55, %v1039_v43 }
 0x461   : > { %v2974_v15 = vpop.permute.xlu1 %2973  ;;  %2653 = vperm.xlu0 %4255, %v6963_v61  }
 0x462   : > { %v3192_v63 = vmul.f32 %v2974_v15, %v1035_v28  ;;  %v8556_v28 = vld [vmem:[#allocation38_spill] sm:$0xff]  ;;  %v4583_v15 = vpop.eup %4582 }
 0x463   : > { %4239 = vset.pattern.permute.xlu1 %v8355_v20  ;;  %v686_v11 = vadd.f32 %v8556_v28, %v6195_v18 }
 0x464   : > { %v3256_v59 = vadd.f32 %v3192_v63, %v2872_v49  ;;  %3401 = vperm.xlu1 %4239, %v6823_v10   ;;  %v6975_v35 = vpop.permute.xlu0 %2985 }
 0x465   : > { %v3166_v5 = vpop.permute.xlu1 %3165  ;;  %4257 = vset.pattern.permute.xlu0 %v8114_v44 }
 0x466   : > { %v3640_v52 = vadd.f32 %v3576_v34, %v3256_v59  ;;  %v3240_v4 = vmul.f32 %v3166_v5, %v1275_v7  ;;  %2303 = vperm.xlu0 %4257, %v6978_v0   ;;  %v2489_v7 = vmul.f32 %v6847_v22, %v686_v11  ;;  %v8558_v34 = vld [vmem:[#allocation39_spill] sm:$0xff]  ;;  %v1279_v5 = vadd.f32 %v6573_v25, %v6202_v16  ;;  %v8560_v11 = vld [vmem:[#allocation245_spill] sm:$0xff] }
 0x467   : > { %v926_v59 = vadd.f32 %v8558_v34, %v6195_v18  ;;  %4586 = vrcp.f32 %v8560_v11  ;;  %v1377_v25 = vadd.f32 %v6661_v58, %v6214_v40  ;;  %v8563_v58 = vld [vmem:[#allocation122_spill] sm:$0xff]  ;;  %v7034_v34 = vpop.f32.mrb[122].mxu0 }
 0x468   : > { %3704 = vst [vmem:[%s6231_s10 + $0x60] sm:$0xff] %v3640_v52  ;;  %v6986_v49 = vadd.f32 %v3240_v4, %v2920_v9  ;;  %4240 = vset.pattern.permute.xlu1 %v8114_v44  ;;  %v6989_v10 = vpop.permute.xlu0 %3177  ;;  %v1277_v9 = vadd.f32 %v6571_v38, %v6190_v62  ;;  %v8559_v38 = vld [vmem:[#allocation134_spill] sm:$0xff]  ;;  %v3241_v1 = vmul.f32 %v6893_v47, %v1279_v5  ;;  %v8565_v5 = vld [vmem:[#allocation41_spill] sm:$0xff] }
 0x469   : > { %2278 = vperm.xlu1 %4240, %v6851_v8   ;;  %v7011_v4 = vmul.f32 %v4583_v15, %v8559_v38  ;;  %v2537_v12 = vmul.f32 %v6858_v21, %v926_v59  ;;  %v1043_v47 = vadd.f32 %v8563_v58, %v6190_v62  ;;  %v8566_v11 = vld [vmem:[#allocation42_spill] sm:$0xff] }
 0x46a   : > { %8555 = vst [vmem:[#allocation95_spill] sm:$0xff] %v6986_v49  ;;  %v2594_v32 = vpop.permute.xlu1 %2593  ;;  %4259 = vset.pattern.permute.xlu0 %v8351_v31  ;;  %v4585_v28 = vpop.eup %4584 }
 0x46b   : > { %v2809_v63 = vmul.f32 %v2594_v32, %v1037_v60  ;;  %3041 = vperm.xlu0 %4259, %v6978_v0   ;;  %v8561_v32 = vld [vmem:[#allocation137_spill] sm:$0xff] }
 0x46c   : > { %v7025_v15 = vmul.f32 %v4585_v28, %v8561_v32 }
 0x46d   : > { %v2873_v17 = vadd.f32 %v2809_v63, %v2489_v7  ;;  %4242 = vset.pattern.permute.xlu1 %v8351_v31  ;;  %v7007_v52 = vpop.permute.xlu0 %2605  ;;  %v8564_v63 = vld [vmem:[#allocation244_spill] sm:$0xff] }
 0x46e   : > { %v2786_v22 = vpop.permute.xlu1 %2785  ;;  %3021 = vperm.xlu1 %4242, %v6851_v8   ;;  %4588 = vrcp.f32 %v8564_v63  ;;  %v8569_v63 = vld [vmem:[#allocation247_spill] sm:$0xff] }
 0x46f   : > { %v2857_v60 = vmul.f32 %v2786_v22, %v1277_v9  ;;  %4261 = vset.pattern.permute.xlu0 %v8347_v37  ;;  %v3257_v55 = vadd.f32 %v3193_v3, %v2873_v17  ;;  %v7036_v3 = vpop.f32.mrb[123].mxu0  ;;  %v692_v17 = vadd.f32 %v8565_v5, %v6195_v18  ;;  %4590 = vrcp.f32 %v8569_v63 }
 0x470   : > { %2661 = vperm.xlu0 %4261, %v7011_v4  }
 0x471   : > { %v2921_v8 = vadd.f32 %v2857_v60, %v2537_v12  ;;  %v2810_v12 = vmul.f32 %v6911_v6, %v1043_v47  ;;  %v1283_v60 = vadd.f32 %v6595_v27, %v6190_v62  ;;  %v8567_v27 = vld [vmem:[#allocation143_spill] sm:$0xff] }
 0x472   : > { %4245 = vset.pattern.permute.xlu1 %v8347_v37  ;;  %v7021_v43 = vpop.permute.xlu0 %3373 }
 0x473   : > { %v3362_v21 = vpop.permute.xlu1 %3361  ;;  %2641 = vperm.xlu1 %4245, %v6883_v53   ;;  %v7027_v7 = vadd.f32 %v3241_v1, %v2921_v8 }
 0x474   : > { %v3577_v9 = vmul.f32 %v3362_v21, %v1377_v25  ;;  %4263 = vset.pattern.permute.xlu0 %v8114_v44  ;;  %v932_v25 = vadd.f32 %v8566_v11, %v6195_v18 }
 0x475   : > { %8562 = vst [vmem:[#allocation212_spill] sm:$0xff] %v7027_v7  ;;  %2313 = vperm.xlu0 %4263, %v7025_v15   ;;  %v8629_v7 = vld [vmem:[#allocation211_spill] sm:$0xff] }
 0x476   : > { %v3641_v59 = vadd.f32 %v3577_v9, %v3257_v55  ;;  %v4587_v55 = vpop.eup %4586  ;;  %v8568_v9 = vld [vmem:[#allocation123_spill] sm:$0xff] }
 0x477   : > { %4247 = vset.pattern.permute.xlu1 %v8355_v20  ;;  %v7041_v22 = vpop.permute.xlu0 %2243  ;;  %v7058_v32 = vmul.f32 %v4587_v55, %v8567_v27  ;;  %v1045_v58 = vadd.f32 %v8568_v9, %v6202_v16  ;;  %v8571_v55 = vld [vmem:[#allocation246_spill] sm:$0xff] }
 0x478   : > { %3705 = vst [vmem:[%s6231_s10 + $0x68] sm:$0xff] %v3641_v59  ;;  %v2229_v38 = vpop.permute.xlu1 %2228  ;;  %3409 = vperm.xlu1 %4247, %v6883_v53   ;;  %v2858_v53 = vmul.f32 %v6923_v50, %v1283_v60  ;;  %v4589_v47 = vpop.eup %4588  ;;  %v1382_v50 = vadd.f32 %v6531_v30, %v6214_v40  ;;  %v8570_v60 = vld [vmem:[#allocation146_spill] sm:$0xff]  ;;  %4592 = vrcp.f32 %v8571_v55 }
 0x479   : > { %v2490_v28 = vmul.f32 %v2229_v38, %v692_v17  ;;  %4265 = vset.pattern.permute.xlu0 %v8351_v31  ;;  %v1285_v38 = vadd.f32 %v6639_v56, %v6202_v16 }
 0x47a   : > { %3049 = vperm.xlu0 %4265, %v7025_v15   ;;  %v3578_v30 = vmul.f32 %v6937_v2, %v1382_v50  ;;  %v4591_v2 = vpop.eup %4590 }
 0x47b   : > { %v2874_v1 = vadd.f32 %v2810_v12, %v2490_v28  ;;  %v7074_v28 = vmul.f32 %v4589_v47, %v8570_v60  ;;  %v8575_v47 = vld [vmem:[#allocation126_spill] sm:$0xff]  ;;  %v8576_v60 = vld [vmem:[#allocation153_spill] sm:$0xff] }
 0x47c   : > { %v2469_v8 = vpop.permute.xlu1 %2468  ;;  %4248 = vset.pattern.permute.xlu1 %v8114_v44  ;;  %v7053_v21 = vpop.permute.xlu0 %2993  ;;  %v1049_v63 = vadd.f32 %v8575_v47, %v6202_v16  ;;  %v7103_v55 = vmul.f32 %v4591_v2, %v8576_v60 }
 0x47d   : > { %v2538_v6 = vmul.f32 %v2469_v8, %v932_v25  ;;  %2288 = vperm.xlu1 %4248, %v6919_v29  }
 0x47e   : > { %4267 = vset.pattern.permute.xlu0 %v8347_v37 }
 0x47f   : > { %v2922_v59 = vadd.f32 %v2858_v53, %v2538_v6  ;;  %2669 = vperm.xlu0 %4267, %v7058_v32   ;;  %v8572_v6 = vld [vmem:[#allocation125_spill] sm:$0xff] }
 0x480   : > { %v1047_v27 = vadd.f32 %v8572_v6, %v6190_v62 }
 0x481   : > { %v2982_v5 = vpop.permute.xlu1 %2981  ;;  %4250 = vset.pattern.permute.xlu1 %v8351_v31  ;;  %v7068_v17 = vpop.permute.xlu0 %2613 }
 0x482   : > { %v3194_v12 = vmul.f32 %v2982_v5, %v1045_v58  ;;  %3029 = vperm.xlu1 %4250, %v6919_v29  }
 0x483   : > { %4269 = vset.pattern.permute.xlu0 %v8114_v44 }
 0x484   : > { %v3258_v11 = vadd.f32 %v3194_v12, %v2874_v1  ;;  %2323 = vperm.xlu0 %4269, %v7074_v28   ;;  %v8574_v1 = vld [vmem:[#allocation43_spill] sm:$0xff] }
 0x485   : > { %v3174_v25 = vpop.permute.xlu1 %3173  ;;  %v696_v58 = vadd.f32 %v8574_v1, %v6195_v18 }
 0x486   : > { %v3642_v8 = vadd.f32 %v3578_v30, %v3258_v11  ;;  %v3242_v53 = vmul.f32 %v3174_v25, %v1285_v38  ;;  %4252 = vset.pattern.permute.xlu1 %v8347_v37  ;;  %v7081_v56 = vpop.permute.xlu0 %3381  ;;  %v1287_v38 = vadd.f32 %v6641_v36, %v6190_v62  ;;  %v8577_v30 = vld [vmem:[#allocation44_spill] sm:$0xff]  ;;  %v3195_v25 = vmul.f32 %v6975_v35, %v1049_v63  ;;  %v4593_v36 = vpop.eup %4592 }
 0x487   : > { %2649 = vperm.xlu1 %4252, %v6934_v19   ;;  %v2491_v5 = vmul.f32 %v6952_v54, %v696_v58  ;;  %v936_v11 = vadd.f32 %v8577_v30, %v6195_v18  ;;  %v1289_v54 = vadd.f32 %v6644_v26, %v6202_v16  ;;  %v1385_v58 = vadd.f32 %v6658_v33, %v6214_v40  ;;  %v8579_v63 = vld [vmem:[#allocation156_spill] sm:$0xff] }
 0x488   : > { %3706 = vst [vmem:[%s6231_s10 + $0x70] sm:$0xff] %v3642_v8  ;;  %v7087_v9 = vadd.f32 %v3242_v53, %v2922_v59  ;;  %4271 = vset.pattern.permute.xlu0 %v8351_v31  ;;  %v8578_v53 = vld [vmem:[#allocation5_spill] sm:$0xff] }
 0x489   : > { %3057 = vperm.xlu0 %4271, %v7074_v28   ;;  %4594 = vrcp.f32 %v8578_v53  ;;  %v3243_v26 = vmul.f32 %v6989_v10, %v1289_v54 }
 0x48a   : > { %8573 = vst [vmem:[#allocation45_spill] sm:$0xff] %v7087_v9  ;;  %v2602_v50 = vpop.permute.xlu1 %2601 }
 0x48b   : > { %v2811_v12 = vmul.f32 %v2602_v50, %v1047_v27  ;;  %4254 = vset.pattern.permute.xlu1 %v8114_v44  ;;  %v7099_v59 = vpop.permute.xlu0 %2253  ;;  %v2539_v27 = vmul.f32 %v6960_v23, %v936_v11  ;;  %v7122_v50 = vmul.f32 %v4593_v36, %v8579_v63  ;;  %v8580_v23 = vld [vmem:[#allocation248_spill] sm:$0xff]  ;;  %v8586_v63 = vld [vmem:[#allocation250_spill] sm:$0xff] }
 0x48c   : > { %2298 = vperm.xlu1 %4254, %v6963_v61   ;;  %4596 = vrcp.f32 %v8580_v23  ;;  %v8583_v11 = vld [vmem:[#allocation48_spill] sm:$0xff] }
 0x48d   : > { %v2875_v8 = vadd.f32 %v2811_v12, %v2491_v5  ;;  %4273 = vset.pattern.permute.xlu0 %v8347_v37  ;;  %v8582_v12 = vld [vmem:[#allocation128_spill] sm:$0xff]  ;;  %4598 = vrcp.f32 %v8586_v63 }
 0x48e   : > { %v2794_v6 = vpop.permute.xlu1 %2793  ;;  %2677 = vperm.xlu0 %4273, %v7103_v55   ;;  %v1053_v10 = vadd.f32 %v8582_v12, %v6190_v62 }
 0x48f   : > { %v2859_v2 = vmul.f32 %v2794_v6, %v1287_v38  ;;  %v3259_v1 = vadd.f32 %v3195_v25, %v2875_v8  ;;  %v702_v25 = vadd.f32 %v8583_v11, %v6195_v18  ;;  %v8584_v6 = vld [vmem:[#allocation129_spill] sm:$0xff]  ;;  %v8588_v11 = vld [vmem:[#allocation166_spill] sm:$0xff] }
 0x490   : > { %4256 = vset.pattern.permute.xlu1 %v8351_v31  ;;  %v7117_v35 = vpop.permute.xlu0 %3001  ;;  %v2812_v36 = vmul.f32 %v7007_v52, %v1053_v10 }
 0x491   : > { %v2923_v47 = vadd.f32 %v2859_v2, %v2539_v27  ;;  %3037 = vperm.xlu1 %4256, %v6963_v61   ;;  %v1055_v27 = vadd.f32 %v8584_v6, %v6202_v16  ;;  %v8591_v6 = vld [vmem:[#allocation249_spill] sm:$0xff] }
 0x492   : > { %4275 = vset.pattern.permute.xlu0 %v8114_v44  ;;  %4600 = vrcp.f32 %v8591_v6 }
 0x493   : > { %v3370_v5 = vpop.permute.xlu1 %3369  ;;  %2333 = vperm.xlu0 %4275, %v7122_v50   ;;  %v7127_v33 = vadd.f32 %v3243_v26, %v2923_v47  ;;  %v4595_v54 = vpop.eup %4594  ;;  %v1390_v47 = vadd.f32 %v6669_v51, %v6214_v40  ;;  %4602 = vrcp.f32 %v6298_v45  ;;  %v8597_v45 = vld [vmem:[#allocation96_spill] sm:$0xff] }
 0x494   : > { %v3579_v38 = vmul.f32 %v3370_v5, %v1385_v58  ;;  %v8585_v58 = vld [vmem:[#allocation163_spill] sm:$0xff] }
 0x495   : > { %8581 = vst [vmem:[#allocation46_spill] sm:$0xff] %v7127_v33  ;;  %4258 = vset.pattern.permute.xlu1 %v8347_v37  ;;  %v7132_v60 = vpop.permute.xlu0 %2621  ;;  %v7148_v26 = vmul.f32 %v4595_v54, %v8585_v58  ;;  %v8589_v54 = vld [vmem:[#allocation49_spill] sm:$0xff] }
 0x496   : > { %v3643_v30 = vadd.f32 %v3579_v38, %v3259_v1  ;;  %2657 = vperm.xlu1 %4258, %v6978_v0   ;;  %v4597_v52 = vpop.eup %4596  ;;  %v8587_v38 = vld [vmem:[#allocation130_spill] sm:$0xff] }
 0x497   : > { %4277 = vset.pattern.permute.xlu0 %v8351_v31  ;;  %v1057_v12 = vadd.f32 %v8587_v38, %v6190_v62 }
 0x498   : > { %3707 = vst [vmem:[%s6231_s10 + $0x78] sm:$0xff] %v3643_v30  ;;  %v2239_v8 = vpop.permute.xlu1 %2238  ;;  %3065 = vperm.xlu0 %4277, %v7122_v50   ;;  %v3580_v30 = vmul.f32 %v7021_v43, %v1390_v47  ;;  %v1393_v47 = vadd.f32 %v6740_v24, %v6214_v40  ;;  %v8592_v24 = vld [vmem:[#allocation132_spill] sm:$0xff] }
 0x499   : > { %v2492_v53 = vmul.f32 %v2239_v8, %v702_v25  ;;  %v7163_v25 = vmul.f32 %v4597_v52, %v8588_v11  ;;  %v706_v8 = vadd.f32 %v8589_v54, %v6195_v18  ;;  %v8593_v11 = vld [vmem:[#allocation173_spill] sm:$0xff] }
 0x49a   : > { %4260 = vset.pattern.permute.xlu1 %v8114_v44  ;;  %v7144_v2 = vpop.permute.xlu0 %3389 }
 0x49b   : > { %v2876_v1 = vadd.f32 %v2812_v36, %v2492_v53  ;;  %2308 = vperm.xlu1 %4260, %v7011_v4   ;;  %v8590_v36 = vld [vmem:[#allocation131_spill] sm:$0xff]  ;;  %v2493_v43 = vmul.f32 %v7041_v22, %v706_v8  ;;  %v8594_v8 = vld [vmem:[#allocation52_spill] sm:$0xff] }
 0x49c   : > { %4279 = vset.pattern.permute.xlu0 %v8347_v37  ;;  %v1059_v53 = vadd.f32 %v8590_v36, %v6202_v16  ;;  %v712_v36 = vadd.f32 %v8594_v8, %v6195_v18 }
 0x49d   : > { %v2990_v23 = vpop.permute.xlu1 %2989  ;;  %2685 = vperm.xlu0 %4279, %v7148_v26  }
 0x49e   : > { %v3196_v5 = vmul.f32 %v2990_v23, %v1055_v27  ;;  %v3197_v63 = vmul.f32 %v7053_v21, %v1059_v53 }
 0x49f   : > { %4262 = vset.pattern.permute.xlu1 %v8351_v31  ;;  %v7158_v10 = vpop.permute.xlu0 %2263 }
 0x4a0   : > { %v3260_v51 = vadd.f32 %v3196_v5, %v2876_v1  ;;  %3045 = vperm.xlu1 %4262, %v7011_v4   ;;  %v4599_v5 = vpop.eup %4598 }
 0x4a1   : > { %4281 = vset.pattern.permute.xlu0 %v8114_v44  ;;  %v7190_v54 = vmul.f32 %v4599_v5, %v8593_v11  ;;  %v4601_v53 = vpop.eup %4600 }
 0x4a2   : > { %v3644_v27 = vadd.f32 %v3580_v30, %v3260_v51  ;;  %v2610_v58 = vpop.permute.xlu1 %2609  ;;  %2343 = vperm.xlu0 %4281, %v7163_v25   ;;  %v1063_v30 = vadd.f32 %v8592_v24, %v6190_v62  ;;  %v8599_v24 = vld [vmem:[#allocation135_spill] sm:$0xff] }
 0x4a3   : > { %v2813_v1 = vmul.f32 %v2610_v58, %v1057_v12 }
 0x4a4   : > { %3708 = vst [vmem:[%s6231_s10 + $0x80] sm:$0xff] %v3644_v27  ;;  %4264 = vset.pattern.permute.xlu1 %v8347_v37  ;;  %v7177_v52 = vpop.permute.xlu0 %3009  ;;  %v2814_v27 = vmul.f32 %v7068_v17, %v1063_v30  ;;  %v8598_v17 = vld [vmem:[#allocation254_spill] sm:$0xff]  ;;  %v1067_v30 = vadd.f32 %v8599_v24, %v6190_v62 }
 0x4a5   : > { %v2877_v23 = vadd.f32 %v2813_v1, %v2493_v43  ;;  %2665 = vperm.xlu1 %4264, %v7025_v15   ;;  %v8595_v43 = vld [vmem:[#allocation133_spill] sm:$0xff]  ;;  %4604 = vrcp.f32 %v8598_v17 }
 0x4a6   : > { %4283 = vset.pattern.permute.xlu0 %v8351_v31  ;;  %v1065_v1 = vadd.f32 %v8595_v43, %v6202_v16 }
 0x4a7   : > { %v3378_v38 = vpop.permute.xlu1 %3377  ;;  %v3261_v22 = vadd.f32 %v3197_v63, %v2877_v23  ;;  %3073 = vperm.xlu0 %4283, %v7163_v25   ;;  %v8596_v23 = vld [vmem:[#allocation176_spill] sm:$0xff] }
 0x4a8   : > { %v3581_v12 = vmul.f32 %v3378_v38, %v1393_v47  ;;  %v7206_v5 = vmul.f32 %v4601_v53, %v8596_v23  ;;  %v1398_v38 = vadd.f32 %v8597_v45, %v6214_v40 }
 0x4a9   : > { %4266 = vset.pattern.permute.xlu1 %v8114_v44  ;;  %v7186_v51 = vpop.permute.xlu0 %2629 }
 0x4aa   : > { %v3645_v21 = vadd.f32 %v3581_v12, %v3261_v22  ;;  %2318 = vperm.xlu1 %4266, %v7058_v32   ;;  %v3582_v11 = vmul.f32 %v7081_v56, %v1398_v38  ;;  %v8602_v56 = vld [vmem:[#allocation69_spill] sm:$0xff] }
 0x4ab   : > { %4285 = vset.pattern.permute.xlu0 %v8347_v37 }
 0x4ac   : > { %3709 = vst [vmem:[%s6231_s10 + $0x88] sm:$0xff] %v3645_v21  ;;  %v2249_v6 = vpop.permute.xlu1 %2248  ;;  %2693 = vperm.xlu0 %4285, %v7190_v54  }
 0x4ad   : > { %v2494_v58 = vmul.f32 %v2249_v6, %v712_v36  ;;  %v8600_v36 = vld [vmem:[#allocation54_spill] sm:$0xff]  ;;  %v8601_v6 = vld [vmem:[#allocation136_spill] sm:$0xff] }
 0x4ae   : > { %4268 = vset.pattern.permute.xlu1 %v8351_v31  ;;  %v7202_v47 = vpop.permute.xlu0 %3397  ;;  %v716_v53 = vadd.f32 %v8600_v36, %v6195_v18 }
 0x4af   : > { %v2878_v63 = vadd.f32 %v2814_v27, %v2494_v58  ;;  %3053 = vperm.xlu1 %4268, %v7058_v32   ;;  %v1069_v27 = vadd.f32 %v8601_v6, %v6202_v16  ;;  %v4603_v58 = vpop.eup %4602 }
 0x4b0   : > { %4287 = vset.pattern.permute.xlu0 %v8114_v44  ;;  %v2495_v23 = vmul.f32 %v7099_v59, %v716_v53  ;;  %v4605_v59 = vpop.eup %4604  ;;  %v8605_v53 = vld [vmem:[#allocation138_spill] sm:$0xff] }
 0x4b1   : > { %v2998_v22 = vpop.permute.xlu1 %2997  ;;  %2353 = vperm.xlu0 %4287, %v7206_v5   ;;  %v3199_v17 = vmul.f32 %v7117_v35, %v1069_v27  ;;  %v1073_v35 = vadd.f32 %v8605_v53, %v6190_v62 }
 0x4b2   : > { %v3198_v12 = vmul.f32 %v2998_v22, %v1065_v1 }
 0x4b3   : > { %4270 = vset.pattern.permute.xlu1 %v8347_v37  ;;  %v7216_v21 = vpop.permute.xlu0 %2273 }
 0x4b4   : > { %v3262_v8 = vadd.f32 %v3198_v12, %v2878_v63  ;;  %2673 = vperm.xlu1 %4270, %v7074_v28   ;;  %v1401_v63 = vadd.f32 %v8602_v56, %v6214_v40  ;;  %v8603_v12 = vld [vmem:[#allocation220_spill] sm:$0xff] }
 0x4b5   : > { %4289 = vset.pattern.permute.xlu0 %v8351_v31  ;;  %v7236_v24 = vmul.f32 %v4603_v58, %v8603_v12  ;;  %v8606_v58 = vld [vmem:[#allocation222_spill] sm:$0xff] }
 0x4b6   : > { %v3646_v43 = vadd.f32 %v3582_v11, %v3262_v8  ;;  %v2618_v1 = vpop.permute.xlu1 %2617  ;;  %3081 = vperm.xlu0 %4289, %v7206_v5  }
 0x4b7   : > { %v2815_v45 = vmul.f32 %v2618_v1, %v1067_v30  ;;  %v8604_v30 = vld [vmem:[#allocation237_spill] sm:$0xff]  ;;  %v8607_v1 = vld [vmem:[#allocation56_spill] sm:$0xff] }
 0x4b8   : > { %3710 = vst [vmem:[%s6231_s10 + $0x90] sm:$0xff] %v3646_v43  ;;  %4272 = vset.pattern.permute.xlu1 %v8114_v44  ;;  %v7231_v38 = vpop.permute.xlu0 %3017  ;;  %4606 = vrcp.f32 %v8604_v30  ;;  %v7248_v43 = vmul.f32 %v4605_v59, %v8606_v58 }
 0x4b9   : > { %v2879_v22 = vadd.f32 %v2815_v45, %v2495_v23  ;;  %2328 = vperm.xlu1 %4272, %v7103_v55   ;;  %v722_v23 = vadd.f32 %v8607_v1, %v6195_v18  ;;  %v8608_v45 = vld [vmem:[#allocation31_spill] sm:$0xff] }
 0x4ba   : > { %4291 = vset.pattern.permute.xlu0 %v8347_v37  ;;  %4608 = vrcp.f32 %v8608_v45  ;;  %v8612_v45 = vld [vmem:[#allocation251_spill] sm:$0xff] }
 0x4bb   : > { %v3386_v11 = vpop.permute.xlu1 %3385  ;;  %v3263_v8 = vadd.f32 %v3199_v17, %v2879_v22  ;;  %2701 = vperm.xlu0 %4291, %v7236_v24   ;;  %v8609_v22 = vld [vmem:[#allocation139_spill] sm:$0xff] }
 0x4bc   : > { %v3583_v36 = vmul.f32 %v3386_v11, %v1401_v63  ;;  %v2816_v63 = vmul.f32 %v7132_v60, %v1073_v35  ;;  %v1075_v12 = vadd.f32 %v8609_v22, %v6202_v16  ;;  %v8610_v11 = vld [vmem:[#allocation16_spill] sm:$0xff]  ;;  %v8611_v35 = vld [vmem:[#allocation81_spill] sm:$0xff] }
 0x4bd   : > { %4274 = vset.pattern.permute.xlu1 %v8351_v31  ;;  %v7244_v6 = vpop.permute.xlu0 %2637  ;;  %v8614_v22 = vld [vmem:[#allocation140_spill] sm:$0xff] }
 0x4be   : > { %v3647_v27 = vadd.f32 %v3583_v36, %v3263_v8  ;;  %3061 = vperm.xlu1 %4274, %v7103_v55   ;;  %v1406_v8 = vadd.f32 %v8610_v11, %v6214_v40 }
 0x4bf   : > { %4293 = vset.pattern.permute.xlu0 %v8114_v44 }
 0x4c0   : > { %3711 = vst [vmem:[%s6231_s10 + $0x98] sm:$0xff] %v3647_v27  ;;  %v2259_v56 = vpop.permute.xlu1 %2258  ;;  %2363 = vperm.xlu0 %4293, %v7248_v43   ;;  %v1077_v27 = vadd.f32 %v8611_v35, %v6190_v62  ;;  %v3584_v1 = vmul.f32 %v7144_v2, %v1406_v8  ;;  %v1409_v8 = vadd.f32 %v6865_v42, %v6214_v40 }
 0x4c1   : > { %v2496_v17 = vmul.f32 %v2259_v56, %v722_v23 }
 0x4c2   : > { %4276 = vset.pattern.permute.xlu1 %v8347_v37  ;;  %v7260_v59 = vpop.permute.xlu0 %3405  ;;  %v4607_v36 = vpop.eup %4606 }
 0x4c3   : > { %v2880_v30 = vadd.f32 %v2816_v63, %v2496_v17  ;;  %2681 = vperm.xlu1 %4276, %v7122_v50   ;;  %v7275_v56 = vmul.f32 %v4607_v36, %v8612_v45  ;;  %v8613_v63 = vld [vmem:[#allocation58_spill] sm:$0xff] }
 0x4c4   : > { %4295 = vset.pattern.permute.xlu0 %v8351_v31  ;;  %v726_v17 = vadd.f32 %v8613_v63, %v6195_v18  ;;  %v4609_v11 = vpop.eup %4608  ;;  %v8618_v63 = vld [vmem:[#allocation141_spill] sm:$0xff] }
 0x4c5   : > { %v3006_v53 = vpop.permute.xlu1 %3005  ;;  %3089 = vperm.xlu0 %4295, %v7248_v43  }
 0x4c6   : > { %v3200_v60 = vmul.f32 %v3006_v53, %v1075_v12  ;;  %v1079_v12 = vadd.f32 %v8614_v22, %v6202_v16  ;;  %v8615_v53 = vld [vmem:[#allocation14_spill] sm:$0xff]  ;;  %v2497_v2 = vmul.f32 %v7158_v10, %v726_v17  ;;  %v1083_v17 = vadd.f32 %v8618_v63, %v6190_v62  ;;  %v8623_v63 = vld [vmem:[#allocation40_spill] sm:$0xff] }
 0x4c7   : > { %4278 = vset.pattern.permute.xlu1 %v8114_v44  ;;  %v7270_v58 = vpop.permute.xlu0 %2283  ;;  %4610 = vrcp.f32 %v8615_v53 }
 0x4c8   : > { %v3264_v23 = vadd.f32 %v3200_v60, %v2880_v30  ;;  %2338 = vperm.xlu1 %4278, %v7148_v26   ;;  %v3201_v60 = vmul.f32 %v7177_v52, %v1079_v12  ;;  %v8619_v12 = vld [vmem:[#allocation60_spill] sm:$0xff] }
 0x4c9   : > { %4297 = vset.pattern.permute.xlu0 %v8347_v37 }
 0x4ca   : > { %v3648_v35 = vadd.f32 %v3584_v1, %v3264_v23  ;;  %v2626_v33 = vpop.permute.xlu1 %2625  ;;  %2709 = vperm.xlu0 %4297, %v7275_v56   ;;  %v8616_v1 = vld [vmem:[#allocation9_spill] sm:$0xff] }
 0x4cb   : > { %v2817_v30 = vmul.f32 %v2626_v33, %v1077_v27  ;;  %v7294_v23 = vmul.f32 %v4609_v11, %v8616_v1  ;;  %v8617_v33 = vld [vmem:[#allocation208_spill] sm:$0xff]  ;;  %v732_v11 = vadd.f32 %v8619_v12, %v6195_v18 }
 0x4cc   : > { %3712 = vst [vmem:[%s6231_s10 + $0xa0] sm:$0xff] %v3648_v35  ;;  %4280 = vset.pattern.permute.xlu1 %v8351_v31  ;;  %v7289_v36 = vpop.permute.xlu0 %3025  ;;  %4612 = vrcp.f32 %v8617_v33  ;;  %v8621_v33 = vld [vmem:[#allocation253_spill] sm:$0xff]  ;;  %v8624_v12 = vld [vmem:[#allocation144_spill] sm:$0xff] }
 0x4cd   : > { %v2881_v45 = vadd.f32 %v2817_v30, %v2497_v2  ;;  %3069 = vperm.xlu1 %4280, %v7148_v26   ;;  %v2818_v2 = vmul.f32 %v7186_v51, %v1083_v17  ;;  %4614 = vrcp.f32 %v8623_v63 }
 0x4ce   : > { %4299 = vset.pattern.permute.xlu0 %v8114_v44  ;;  %4616 = vrcp.f32 %v8629_v7 }
 0x4cf   : > { %v3394_v10 = vpop.permute.xlu1 %3393  ;;  %v3265_v42 = vadd.f32 %v3201_v60, %v2881_v45  ;;  %2373 = vperm.xlu0 %4299, %v7294_v23  }
 0x4d0   : > { %v3585_v27 = vmul.f32 %v3394_v10, %v1409_v8  ;;  %v8620_v8 = vld [vmem:[#allocation142_spill] sm:$0xff] }
 0x4d1   : > { %4282 = vset.pattern.permute.xlu1 %v8347_v37  ;;  %v7302_v52 = vpop.permute.xlu0 %2645  ;;  %v4611_v53 = vpop.eup %4610  ;;  %v1085_v60 = vadd.f32 %v8620_v8, %v6202_v16 }
 0x4d2   : > { %v3649_v22 = vadd.f32 %v3585_v27, %v3265_v42  ;;  %2689 = vperm.xlu1 %4282, %v7163_v25   ;;  %v7318_v10 = vmul.f32 %v4611_v53, %v8621_v33  ;;  %v8622_v42 = vld [vmem:[#allocation213_spill] sm:$0xff]  ;;  %v8626_v33 = vld [vmem:[#allocation62_spill] sm:$0xff] }
 0x4d3   : > { %4301 = vset.pattern.permute.xlu0 %v8351_v31  ;;  %v1414_v27 = vadd.f32 %v8622_v42, %v6214_v40  ;;  %v736_v42 = vadd.f32 %v8626_v33, %v6195_v18 }
 0x4d4   : > { %3713 = vst [vmem:[%s6231_s10 + $0xa8] sm:$0xff] %v3649_v22  ;;  %v2269_v35 = vpop.permute.xlu1 %2268  ;;  %3097 = vperm.xlu0 %4301, %v7294_v23  }
 0x4d5   : > { %v2498_v30 = vmul.f32 %v2269_v35, %v732_v11  ;;  %v1087_v11 = vadd.f32 %v8624_v12, %v6190_v62  ;;  %v3586_v53 = vmul.f32 %v7202_v47, %v1414_v27  ;;  %v2499_v27 = vmul.f32 %v7216_v21, %v736_v42  ;;  %v8631_v42 = vld [vmem:[#allocation147_spill] sm:$0xff] }
 0x4d6   : > { %4284 = vset.pattern.permute.xlu1 %v8114_v44  ;;  %v7314_v45 = vpop.permute.xlu0 %2293  ;;  %v4613_v51 = vpop.eup %4612 }
 0x4d7   : > { %v2882_v1 = vadd.f32 %v2818_v2, %v2498_v30  ;;  %2348 = vperm.xlu1 %4284, %v7190_v54   ;;  %v8625_v30 = vld [vmem:[#allocation12_spill] sm:$0xff]  ;;  %v4615_v7 = vpop.eup %4614 }
 0x4d8   : > { %4303 = vset.pattern.permute.xlu0 %v8347_v37  ;;  %v7333_v8 = vmul.f32 %v4613_v51, %v8625_v30 }
 0x4d9   : > { %v3014_v17 = vpop.permute.xlu1 %3013  ;;  %2717 = vperm.xlu0 %4303, %v7318_v10  }
 0x4da   : > { %v3202_v22 = vmul.f32 %v3014_v17, %v1085_v60  ;;  %v8627_v60 = vld [vmem:[#allocation145_spill] sm:$0xff] }
 0x4db   : > { %4286 = vset.pattern.permute.xlu1 %v8351_v31  ;;  %v7328_v35 = vpop.permute.xlu0 %3033  ;;  %v1089_v63 = vadd.f32 %v8627_v60, %v6202_v16  ;;  %v8628_v17 = vld [vmem:[#allocation157_spill] sm:$0xff] }
 0x4dc   : > { %v3266_v2 = vadd.f32 %v3202_v22, %v2882_v1  ;;  %3077 = vperm.xlu1 %4286, %v7190_v54   ;;  %v1113_v12 = vadd.f32 %v8628_v17, %v6190_v62  ;;  %v1417_v22 = vadd.f32 %v6860_v57, %v6214_v40  ;;  %v8630_v57 = vld [vmem:[#allocation73_spill] sm:$0xff] }
 0x4dd   : > { %4305 = vset.pattern.permute.xlu0 %v8114_v44  ;;  %v3203_v33 = vmul.f32 %v7231_v38, %v1089_v63  ;;  %v1093_v38 = vadd.f32 %v8631_v42, %v6190_v62 }
 0x4de   : > { %v3650_v47 = vadd.f32 %v3586_v53, %v3266_v2  ;;  %v2634_v1 = vpop.permute.xlu1 %2633  ;;  %2383 = vperm.xlu0 %4305, %v7333_v8  }
 0x4df   : > { %v2819_v51 = vmul.f32 %v2634_v1, %v1087_v11  ;;  %v766_v11 = vadd.f32 %v8630_v57, %v6195_v18  ;;  %v8632_v1 = vld [vmem:[#allocation13_spill] sm:$0xff] }
 0x4e0   : > { %3714 = vst [vmem:[%s6231_s10 + $0xb0] sm:$0xff] %v3650_v47  ;;  %4288 = vset.pattern.permute.xlu1 %v8347_v37  ;;  %v2654_v30 = vpop.permute.xlu0 %2653 }
 0x4e1   : > { %v2883_v60 = vadd.f32 %v2819_v51, %v2499_v27  ;;  %v7350_v17 = vmul.f32 %v2654_v30, %v1113_v12  ;;  %2697 = vperm.xlu1 %4288, %v7206_v5   ;;  %v7364_v27 = vmul.f32 %v4615_v7, %v8632_v1  ;;  %v8633_v51 = vld [vmem:[#allocation64_spill] sm:$0xff]  ;;  %v8636_v1 = vld [vmem:[#allocation205_spill] sm:$0xff] }
 0x4e2   : > { %4307 = vset.pattern.permute.xlu0 %v8351_v31  ;;  %v742_v30 = vadd.f32 %v8633_v51, %v6195_v18 }
 0x4e3   : > { %v3402_v53 = vpop.permute.xlu1 %3401  ;;  %v3267_v21 = vadd.f32 %v3203_v33, %v2883_v60  ;;  %3105 = vperm.xlu0 %4307, %v7333_v8   ;;  %v8634_v33 = vld [vmem:[#allocation160_spill] sm:$0xff]  ;;  %v4617_v60 = vpop.eup %4616 }
 0x4e4   : > { %v3587_v2 = vmul.f32 %v3402_v53, %v1417_v22  ;;  %v1119_v22 = vadd.f32 %v8634_v33, %v6202_v16  ;;  %v7381_v51 = vmul.f32 %v4617_v60, %v8636_v1  ;;  %v8640_v1 = vld [vmem:[#allocation150_spill] sm:$0xff] }
 0x4e5   : > { %4290 = vset.pattern.permute.xlu1 %v8114_v44  ;;  %v2304_v63 = vpop.permute.xlu0 %2303 }
 0x4e6   : > { %v3651_v12 = vadd.f32 %v3587_v2, %v3267_v21  ;;  %v7360_v47 = vmul.f32 %v2304_v63, %v766_v11  ;;  %2358 = vperm.xlu1 %4290, %v7236_v24   ;;  %v2820_v21 = vmul.f32 %v7244_v6, %v1093_v38  ;;  %v8635_v11 = vld [vmem:[#allocation148_spill] sm:$0xff]  ;;  %v1422_v6 = vadd.f32 %v6873_v48, %v6214_v40  ;;  %v8639_v48 = vld [vmem:[#allocation66_spill] sm:$0xff] }
 0x4e7   : > { %4309 = vset.pattern.permute.xlu0 %v8347_v37  ;;  %v1095_v7 = vadd.f32 %v8635_v11, %v6202_v16 }
 0x4e8   : > { %3715 = vst [vmem:[%s6231_s10 + $0xb8] sm:$0xff] %v3651_v12  ;;  %v2279_v53 = vpop.permute.xlu1 %2278  ;;  %2725 = vperm.xlu0 %4309, %v7364_v27   ;;  %v8637_v12 = vld [vmem:[#allocation161_spill] sm:$0xff] }
 0x4e9   : > { %v2500_v57 = vmul.f32 %v2279_v53, %v742_v30  ;;  %v1123_v33 = vadd.f32 %v8637_v12, %v6190_v62 }
 0x4ea   : > { %4292 = vset.pattern.permute.xlu1 %v8351_v31  ;;  %v3042_v2 = vpop.permute.xlu0 %3041 }
 0x4eb   : > { %v2884_v42 = vadd.f32 %v2820_v21, %v2500_v57  ;;  %v7377_v63 = vmul.f32 %v3042_v2, %v1119_v22  ;;  %3085 = vperm.xlu1 %4292, %v7236_v24   ;;  %v8638_v22 = vld [vmem:[#allocation149_spill] sm:$0xff]  ;;  %v3588_v21 = vmul.f32 %v7260_v59, %v1422_v6  ;;  %v746_v2 = vadd.f32 %v8639_v48, %v6195_v18 }
 0x4ec   : > { %4311 = vset.pattern.permute.xlu0 %v8114_v44  ;;  %v1097_v53 = vadd.f32 %v8638_v22, %v6190_v62  ;;  %v8641_v22 = vld [vmem:[#allocation77_spill] sm:$0xff] }
 0x4ed   : > { %v3022_v38 = vpop.permute.xlu1 %3021  ;;  %2393 = vperm.xlu0 %4311, %v7381_v51   ;;  %v776_v59 = vadd.f32 %v8641_v22, %v6195_v18 }
 0x4ee   : > { %v3204_v30 = vmul.f32 %v3022_v38, %v1095_v7  ;;  %v1099_v7 = vadd.f32 %v8640_v1, %v6202_v16 }
 0x4ef   : > { %4294 = vset.pattern.permute.xlu1 %v8347_v37  ;;  %v2662_v60 = vpop.permute.xlu0 %2661 }
 0x4f0   : > { %v3268_v57 = vadd.f32 %v3204_v30, %v2884_v42  ;;  %v7393_v11 = vmul.f32 %v2662_v60, %v1123_v33  ;;  %2705 = vperm.xlu1 %4294, %v7248_v43   ;;  %v2501_v42 = vmul.f32 %v7270_v58, %v746_v2  ;;  %v1425_v30 = vadd.f32 %v7036_v3, %v6214_v40  ;;  %v8643_v3 = vld [vmem:[#allocation151_spill] sm:$0xff] }
 0x4f1   : > { %4313 = vset.pattern.permute.xlu0 %v8351_v31  ;;  %v3205_v60 = vmul.f32 %v7289_v36, %v1099_v7  ;;  %v7420_v7 = vpop.f32.mrb[124].mxu0 }
 0x4f2   : > { %v3652_v12 = vadd.f32 %v3588_v21, %v3268_v57  ;;  %v2642_v38 = vpop.permute.xlu1 %2641  ;;  %3113 = vperm.xlu0 %4313, %v7381_v51   ;;  %v8642_v57 = vld [vmem:[#allocation165_spill] sm:$0xff] }
 0x4f3   : > { %v2821_v33 = vmul.f32 %v2642_v38, %v1097_v53  ;;  %v1129_v1 = vadd.f32 %v8642_v57, %v6202_v16  ;;  %v8646_v57 = vld [vmem:[#allocation152_spill] sm:$0xff] }
 0x4f4   : > { %3716 = vst [vmem:[%s6231_s10 + $0xc0] sm:$0xff] %v3652_v12  ;;  %4296 = vset.pattern.permute.xlu1 %v8114_v44  ;;  %v2314_v6 = vpop.permute.xlu0 %2313  ;;  %v1103_v12 = vadd.f32 %v8643_v3, %v6190_v62 }
 0x4f5   : > { %v2885_v48 = vadd.f32 %v2821_v33, %v2501_v42  ;;  %v7410_v21 = vmul.f32 %v2314_v6, %v776_v59  ;;  %2368 = vperm.xlu1 %4296, %v7275_v56   ;;  %v7425_v59 = vpop.f32.mrb[125].mxu0  ;;  %v8644_v42 = vld [vmem:[#allocation68_spill] sm:$0xff] }
 0x4f6   : > { %4314 = vset.pattern.permute.xlu0 %v8355_v20  ;;  %v752_v33 = vadd.f32 %v8644_v42, %v6195_v18  ;;  %v7441_v3 = vpop.f32.mrb[126].mxu0 }
 0x4f7   : > { %v3410_v58 = vpop.permute.xlu1 %3409  ;;  %v3269_v53 = vadd.f32 %v3205_v60, %v2885_v48  ;;  %3413 = vperm.xlu0 %4314, %v6919_v29   ;;  %v8645_v29 = vld [vmem:[#allocation167_spill] sm:$0xff]  ;;  %v2822_v60 = vmul.f32 %v7302_v52, %v1103_v12 }
 0x4f8   : > { %v3589_v2 = vmul.f32 %v3410_v58, %v1425_v30  ;;  %v1133_v6 = vadd.f32 %v8645_v29, %v6190_v62  ;;  %v8647_v12 = vld [vmem:[#allocation79_spill] sm:$0xff]  ;;  %v8648_v29 = vld [vmem:[#allocation154_spill] sm:$0xff] }
 0x4f9   : > { %4298 = vset.pattern.permute.xlu1 %v8351_v31  ;;  %v3050_v36 = vpop.permute.xlu0 %3049 }
 0x4fa   : > { %v3653_v38 = vadd.f32 %v3589_v2, %v3269_v53  ;;  %v7422_v22 = vmul.f32 %v3050_v36, %v1129_v1  ;;  %3093 = vperm.xlu1 %4298, %v7275_v56   ;;  %v1105_v1 = vadd.f32 %v8646_v57, %v6202_v16 }
 0x4fb   : > { %3421 = vperm.xlu0 %4314, %v6963_v61   ;;  %v7443_v61 = vpop.f32.mrb[127].mxu0 }
 0x4fc   : > { %3717 = vst [vmem:[%s6231_s10 + $0xc8] sm:$0xff] %v3653_v38  ;;  %v2289_v30 = vpop.permute.xlu1 %2288  ;;  %v7445_v52 = vpop.f32.mrb[128].mxu0  ;;  %v786_v38 = vadd.f32 %v8647_v12, %v6195_v18 }
 0x4fd   : > { %v2502_v48 = vmul.f32 %v2289_v30, %v752_v33  ;;  %v7449_v33 = vpop.f32.mrb[129].mxu0 }
 0x4fe   : > { %4300 = vset.pattern.permute.xlu1 %v8347_v37  ;;  %v2670_v58 = vpop.permute.xlu0 %2669 }
 0x4ff   : > { %v2886_v53 = vadd.f32 %v2822_v60, %v2502_v48  ;;  %v7437_v2 = vmul.f32 %v2670_v58, %v1133_v6  ;;  %2713 = vperm.xlu1 %4300, %v7294_v23   ;;  %3429 = vperm.xlu0 %4314, %v7011_v4   ;;  %v1107_v6 = vadd.f32 %v8648_v29, %v6190_v62  ;;  %v8649_v48 = vld [vmem:[#allocation70_spill] sm:$0xff] }
 0x500   : > { %v756_v57 = vadd.f32 %v8649_v48, %v6195_v18 }
 0x501   : > { %v3030_v36 = vpop.permute.xlu1 %3029 }
 0x502   : > { %v3206_v42 = vmul.f32 %v3030_v36, %v1105_v1  ;;  %v8650_v1 = vld [vmem:[#allocation155_spill] sm:$0xff]  ;;  %v8651_v36 = vld [vmem:[#allocation170_spill] sm:$0xff]  ;;  %v2503_v13 = vmul.f32 %v7314_v45, %v756_v57 }
 0x503   : > { %4302 = vset.pattern.permute.xlu1 %v8114_v44  ;;  %3437 = vperm.xlu0 %4314, %v7058_v32   ;;  %v2324_v4 = vpop.permute.xlu0 %2323  ;;  %v1109_v58 = vadd.f32 %v8650_v1, %v6202_v16  ;;  %v1139_v12 = vadd.f32 %v8651_v36, %v6202_v16  ;;  %v8652_v45 = vld [vmem:[#allocation71_spill] sm:$0xff] }
 0x504   : > { %v7455_v30 = vadd.f32 %v3206_v42, %v2886_v53  ;;  %v7457_v60 = vmul.f32 %v2324_v4, %v786_v38  ;;  %2378 = vperm.xlu1 %4302, %v7318_v10   ;;  %v7468_v53 = vpop.f32.mrb[130].mxu0 }
 0x505   : > { %v7471_v42 = vpop.f32.mrb[131].mxu0  ;;  %v3207_v4 = vmul.f32 %v7328_v35, %v1109_v58  ;;  %v8654_v35 = vld [vmem:[#allocation158_spill] sm:$0xff] }
 0x506   : > { %v2650_v29 = vpop.permute.xlu1 %2649  ;;  %v7477_v36 = vpop.f32.mrb[132].mxu0  ;;  %v1115_v58 = vadd.f32 %v8654_v35, %v6202_v16  ;;  %v8657_v35 = vld [vmem:[#allocation159_spill] sm:$0xff] }
 0x507   : > { %v2823_v32 = vmul.f32 %v2650_v29, %v1107_v6  ;;  %3445 = vperm.xlu0 %4314, %v7103_v55   ;;  %v762_v6 = vadd.f32 %v8652_v45, %v6195_v18  ;;  %v8653_v55 = vld [vmem:[#allocation171_spill] sm:$0xff]  ;;  %v7483_v29 = vpop.f32.mrb[133].mxu0 }
 0x508   : > { %4304 = vset.pattern.permute.xlu1 %v8351_v31  ;;  %v3058_v38 = vpop.permute.xlu0 %3057  ;;  %v1143_v57 = vadd.f32 %v8653_v55, %v6190_v62  ;;  %v7496_v45 = vpop.f32.mrb[134].mxu0 }
 0x509   : > { %v2887_v48 = vadd.f32 %v2823_v32, %v2503_v13  ;;  %v7474_v1 = vmul.f32 %v3058_v38, %v1139_v12  ;;  %3101 = vperm.xlu1 %4304, %v7318_v10   ;;  %8655 = vst [vmem:[#allocation215_spill] sm:$0xff] %v7496_v45 }
 0x50b   : > { %v2299_v14 = vpop.permute.xlu1 %2298  ;;  %3453 = vperm.xlu0 %4314, %v7148_v26   ;;  %v7486_v9 = vadd.f32 %v3207_v4, %v2887_v48  ;;  %v7498_v4 = vpop.f32.mrb[135].mxu0 }
 0x50c   : > { %v2504_v13 = vmul.f32 %v2299_v14, %v762_v6  ;;  %v8656_v14 = vld [vmem:[#allocation82_spill] sm:$0xff]  ;;  %v7502_v55 = vpop.f32.mrb[136].mxu0 }
 0x50d   : > { %4306 = vset.pattern.permute.xlu1 %v8347_v37  ;;  %v2678_v12 = vpop.permute.xlu0 %2677  ;;  %v796_v48 = vadd.f32 %v8656_v14, %v6195_v18 }
 0x50e   : > { %v2888_v32 = vadd.f32 %v7350_v17, %v2504_v13  ;;  %v7492_v38 = vmul.f32 %v2678_v12, %v1143_v57  ;;  %2721 = vperm.xlu1 %4306, %v7333_v8   ;;  %v1117_v17 = vadd.f32 %v8657_v35, %v6190_v62  ;;  %v7507_v13 = vpop.f32.mrb[137].mxu0 }
 0x50f   : > { %3461 = vperm.xlu0 %4314, %v7190_v54   ;;  %v7519_v35 = vpop.f32.mrb[138].mxu0 }
 0x510   : > { %v3038_v26 = vpop.permute.xlu1 %3037  ;;  %8659 = vst [vmem:[#allocation217_spill] sm:$0xff] %v7519_v35 }
 0x511   : > { %v3208_v6 = vmul.f32 %v3038_v26, %v1115_v58  ;;  %v8658_v58 = vld [vmem:[#allocation175_spill] sm:$0xff] }
 0x512   : > { %4308 = vset.pattern.permute.xlu1 %v8114_v44  ;;  %v2334_v57 = vpop.permute.xlu0 %2333  ;;  %v1149_v26 = vadd.f32 %v8658_v58, %v6202_v16 }
 0x513   : > { %v7509_v54 = vadd.f32 %v3208_v6, %v2888_v32  ;;  %v7511_v12 = vmul.f32 %v2334_v57, %v796_v48  ;;  %2388 = vperm.xlu1 %4308, %v7364_v27   ;;  %3469 = vperm.xlu0 %4314, %v7236_v24   ;;  %v7525_v6 = vpop.f32.mrb[139].mxu0  ;;  %v8661_v24 = vld [vmem:[#allocation75_spill] sm:$0xff] }
 0x514   : > { %8660 = vst [vmem:[#allocation47_spill] sm:$0xff] %v7525_v6  ;;  %v772_v57 = vadd.f32 %v8661_v24, %v6195_v18 }
 0x515   : > { %v2658_v14 = vpop.permute.xlu1 %2657 }
 0x516   : > { %v2825_v49 = vmul.f32 %v2658_v14, %v1117_v17  ;;  %v8662_v17 = vld [vmem:[#allocation177_spill] sm:$0xff] }
 0x517   : > { %4310 = vset.pattern.permute.xlu1 %v8351_v31  ;;  %3477 = vperm.xlu0 %4314, %v7275_v56   ;;  %v3066_v44 = vpop.permute.xlu0 %3065  ;;  %v1153_v58 = vadd.f32 %v8662_v17, %v6190_v62  ;;  %v7531_v31 = vpop.f32.mrb[140].mxu0 }
 0x518   : > { %v2889_v32 = vadd.f32 %v2825_v49, %v7360_v47  ;;  %v7522_v48 = vmul.f32 %v3066_v44, %v1149_v26  ;;  %3109 = vperm.xlu1 %4310, %v7364_v27   ;;  %v7533_v14 = vpop.f32.mrb[141].mxu0  ;;  %v8663_v47 = vld [vmem:[#allocation162_spill] sm:$0xff] }
 0x519   : > { %v1125_v26 = vadd.f32 %v8663_v47, %v6202_v16 }
 0x51a   : > { %v2309_v56 = vpop.permute.xlu1 %2308  ;;  %v7536_v35 = vadd.f32 %v7377_v63, %v2889_v32  ;;  %v7547_v63 = vpop.f32.mrb[142].mxu0  ;;  %v8665_v32 = vld [vmem:[#allocation84_spill] sm:$0xff] }
 0x51b   : > { %v2506_v49 = vmul.f32 %v2309_v56, %v772_v57  ;;  %3485 = vperm.xlu0 %4314, %v7318_v10   ;;  %8664 = vst [vmem:[#allocation214_spill] sm:$0xff] %v7547_v63  ;;  %v806_v10 = vadd.f32 %v8665_v32, %v6195_v18  ;;  %v7551_v56 = vpop.f32.mrb[143].mxu0  ;;  %v8669_v32 = vld [vmem:[#allocation193_spill] sm:$0xff] }
 0x51c   : > { %4312 = vset.pattern.permute.xlu1 %v8347_v37  ;;  %v2686_v44 = vpop.permute.xlu0 %2685  ;;  %8666 = vst [vmem:[#allocation51_spill] sm:$0xff] %v7551_v56  ;;  %v8667_v37 = vld [vmem:[#allocation164_spill] sm:$0xff] }
 0x51d   : > { %v2890_v24 = vadd.f32 %v7393_v11, %v2506_v49  ;;  %v7543_v17 = vmul.f32 %v2686_v44, %v1153_v58  ;;  %2729 = vperm.xlu1 %4312, %v7381_v51   ;;  %v1127_v47 = vadd.f32 %v8667_v37, %v6190_v62  ;;  %v7556_v58 = vpop.f32.mrb[144].mxu0 }
 0x51f   : > { %v3046_v6 = vpop.permute.xlu1 %3045  ;;  %3493 = vperm.xlu0 %4314, %v7364_v27   ;;  %v7563_v27 = vpop.f32.mrb[145].mxu0 }
 0x520   : > { %v3210_v57 = vmul.f32 %v3046_v6, %v1125_v26  ;;  %v8668_v6 = vld [vmem:[#allocation180_spill] sm:$0xff] }
 0x521   : > { %4315 = vset.pattern.permute.xlu1 %v8355_v20  ;;  %v2344_v11 = vpop.permute.xlu0 %2343  ;;  %v1159_v26 = vadd.f32 %v8668_v6, %v6202_v16  ;;  %v8673_v6 = vld [vmem:[#allocation181_spill] sm:$0xff] }
 0x522   : > { %v7558_v49 = vadd.f32 %v3210_v57, %v2890_v24  ;;  %v7560_v44 = vmul.f32 %v2344_v11, %v806_v10  ;;  %3417 = vperm.xlu1 %4315, %v6934_v19   ;;  %v8670_v10 = vld [vmem:[#allocation229_spill] sm:$0xff]  ;;  %v7573_v57 = vpop.f32.mrb[146].mxu0  ;;  %v8672_v19 = vld [vmem:[#allocation78_spill] sm:$0xff]  ;;  %v1163_v41 = vadd.f32 %v8673_v6, %v6190_v62 }
 0x523   : > { %3501 = vperm.xlu0 %4314, %v8669_v32   ;;  %8671 = vst [vmem:[#allocation216_spill] sm:$0xff] %v7573_v57  ;;  %v782_v11 = vadd.f32 %v8672_v19, %v6195_v18  ;;  %v7579_v32 = vpop.f32.mrb[147].mxu0 }
 0x524   : > { %v2666_v63 = vpop.permute.xlu1 %2665  ;;  %8674 = vst [vmem:[#allocation50_spill] sm:$0xff] %v7579_v32 }
 0x525   : > { %v2827_v37 = vmul.f32 %v2666_v63, %v1127_v47  ;;  %v7581_v47 = vpop.f32.mrb[148].mxu0 }
 0x526   : > { %3425 = vperm.xlu1 %4315, %v6978_v0   ;;  %v3074_v20 = vpop.permute.xlu0 %3073 }
 0x527   : > { %v2891_v56 = vadd.f32 %v2827_v37, %v7410_v21  ;;  %v7570_v24 = vmul.f32 %v3074_v20, %v1159_v26  ;;  %3509 = vperm.xlu0 %4314, %v8670_v10   ;;  %v7587_v26 = vpop.f32.mrb[149].mxu0  ;;  %v8675_v37 = vld [vmem:[#allocation168_spill] sm:$0xff]  ;;  %v8676_v10 = vld [vmem:[#allocation7_spill] sm:$0xff] }
 0x528   : > { %v1135_v20 = vadd.f32 %v8675_v37, %v6202_v16  ;;  %v8680_v37 = vld [vmem:[#allocation169_spill] sm:$0xff] }
 0x529   : > { %v2319_v63 = vpop.permute.xlu1 %2318  ;;  %v7584_v0 = vadd.f32 %v7422_v22, %v2891_v56  ;;  %v8677_v22 = vld [vmem:[#allocation86_spill] sm:$0xff]  ;;  %v1137_v45 = vadd.f32 %v8680_v37, %v6190_v62 }
 0x52a   : > { %v2508_v21 = vmul.f32 %v2319_v63, %v782_v11  ;;  %3433 = vperm.xlu1 %4315, %v7025_v15   ;;  %v816_v56 = vadd.f32 %v8677_v22, %v6195_v18  ;;  %v8678_v15 = vld [vmem:[#allocation10_spill] sm:$0xff]  ;;  %v7599_v63 = vpop.f32.mrb[150].mxu0  ;;  %v8684_v22 = vld [vmem:[#allocation207_spill] sm:$0xff] }
 0x52b   : > { %3517 = vperm.xlu0 %4314, %v8676_v10   ;;  %v2694_v19 = vpop.permute.xlu0 %2693  ;;  %8679 = vst [vmem:[#allocation53_spill] sm:$0xff] %v7599_v63  ;;  %v7603_v46 = vpop.f32.mrb[151].mxu0 }
 0x52c   : > { %v2892_v6 = vadd.f32 %v7437_v2, %v2508_v21  ;;  %v7593_v57 = vmul.f32 %v2694_v19, %v1163_v41  ;;  %8681 = vst [vmem:[#allocation219_spill] sm:$0xff] %v7603_v46  ;;  %v7609_v21 = vpop.f32.mrb[152].mxu0 }
 0x52d   : > { %8682 = vst [vmem:[#allocation103_spill] sm:$0xff] %v7609_v21 }
 0x52e   : > { %v3054_v32 = vpop.permute.xlu1 %3053  ;;  %3441 = vperm.xlu1 %4315, %v7074_v28   ;;  %v8683_v28 = vld [vmem:[#allocation184_spill] sm:$0xff] }
 0x52f   : > { %v3212_v11 = vmul.f32 %v3054_v32, %v1135_v20  ;;  %3525 = vperm.xlu0 %4314, %v8678_v15   ;;  %v1169_v19 = vadd.f32 %v8683_v28, %v6202_v16  ;;  %v7614_v32 = vpop.f32.mrb[153].mxu0 }
 0x530   : > { %v2354_v10 = vpop.permute.xlu0 %2353  ;;  %v7626_v46 = vpop.f32.mrb[154].mxu0 }
 0x531   : > { %v7605_v2 = vadd.f32 %v3212_v11, %v2892_v6  ;;  %v7607_v41 = vmul.f32 %v2354_v10, %v816_v56  ;;  %v8685_v56 = vld [vmem:[#allocation80_spill] sm:$0xff]  ;;  %v8686_v10 = vld [vmem:[#allocation185_spill] sm:$0xff]  ;;  %8688 = vst [vmem:[#allocation18_spill] sm:$0xff] %v7626_v46 }
 0x532   : > { %3449 = vperm.xlu1 %4315, %v7122_v50   ;;  %v792_v11 = vadd.f32 %v8685_v56, %v6195_v18  ;;  %v1173_v28 = vadd.f32 %v8686_v10, %v6190_v62  ;;  %v8687_v50 = vld [vmem:[#allocation67_spill] sm:$0xff] }
 0x533   : > { %v2674_v20 = vpop.permute.xlu1 %2673  ;;  %3533 = vperm.xlu0 %4314, %v8684_v22  }
 0x534   : > { %v2829_v15 = vmul.f32 %v2674_v20, %v1137_v45  ;;  %v7631_v20 = vpop.f32.mrb[155].mxu0 }
 0x535   : > { %v3082_v37 = vpop.permute.xlu0 %3081  ;;  %8689 = vst [vmem:[#allocation223_spill] sm:$0xff] %v7631_v20 }
 0x536   : > { %v2893_v63 = vadd.f32 %v2829_v15, %v7457_v60  ;;  %v7618_v6 = vmul.f32 %v3082_v37, %v1169_v19  ;;  %3457 = vperm.xlu1 %4315, %v7163_v25   ;;  %v7633_v19 = vpop.f32.mrb[156].mxu0  ;;  %v8691_v25 = vld [vmem:[#allocation172_spill] sm:$0xff] }
 0x537   : > { %3541 = vperm.xlu0 %4314, %v8687_v50   ;;  %8690 = vst [vmem:[#allocation19_spill] sm:$0xff] %v7633_v19  ;;  %v1145_v22 = vadd.f32 %v8691_v25, %v6202_v16  ;;  %v7638_v37 = vpop.f32.mrb[157].mxu0  ;;  %v8693_v50 = vld [vmem:[#allocation206_spill] sm:$0xff] }
 0x538   : > { %v2329_v21 = vpop.permute.xlu1 %2328  ;;  %v7629_v45 = vadd.f32 %v7474_v1, %v2893_v63  ;;  %8692 = vst [vmem:[#allocation104_spill] sm:$0xff] %v7638_v37  ;;  %v8694_v63 = vld [vmem:[#allocation88_spill] sm:$0xff]  ;;  %v8695_v25 = vld [vmem:[#allocation174_spill] sm:$0xff] }
 0x539   : > { %v2510_v60 = vmul.f32 %v2329_v21, %v792_v11  ;;  %v826_v21 = vadd.f32 %v8694_v63, %v6195_v18  ;;  %v1147_v46 = vadd.f32 %v8695_v25, %v6190_v62  ;;  %v8698_v63 = vld [vmem:[#allocation83_spill] sm:$0xff] }
 0x53a   : > { %3465 = vperm.xlu1 %4315, %v7206_v5   ;;  %v2702_v15 = vpop.permute.xlu0 %2701  ;;  %v8696_v5 = vld [vmem:[#allocation15_spill] sm:$0xff]  ;;  %v802_v25 = vadd.f32 %v8698_v63, %v6195_v18 }
 0x53b   : > { %v2894_v56 = vadd.f32 %v7492_v38, %v2510_v60  ;;  %v7641_v10 = vmul.f32 %v2702_v15, %v1173_v28  ;;  %3549 = vperm.xlu0 %4314, %v8693_v50   ;;  %v8697_v28 = vld [vmem:[#allocation188_spill] sm:$0xff]  ;;  %v8703_v63 = vld [vmem:[#allocation179_spill] sm:$0xff] }
 0x53c   : > { %v1179_v60 = vadd.f32 %v8697_v28, %v6202_v16 }
 0x53d   : > { %v3062_v1 = vpop.permute.xlu1 %3061 }
 0x53e   : > { %v3214_v11 = vmul.f32 %v3062_v1, %v1145_v22  ;;  %3473 = vperm.xlu1 %4315, %v7248_v43  }
 0x53f   : > { %3557 = vperm.xlu0 %4314, %v8696_v5   ;;  %v2364_v20 = vpop.permute.xlu0 %2363 }
 0x540   : > { %v7650_v19 = vadd.f32 %v3214_v11, %v2894_v56  ;;  %v7652_v38 = vmul.f32 %v2364_v20, %v826_v21  ;;  %v8699_v56 = vld [vmem:[#allocation189_spill] sm:$0xff] }
 0x541   : > { %v1183_v11 = vadd.f32 %v8699_v56, %v6190_v62 }
 0x542   : > { %v2682_v15 = vpop.permute.xlu1 %2681  ;;  %3481 = vperm.xlu1 %4315, %v7294_v23  }
 0x543   : > { %v2831_v50 = vmul.f32 %v2682_v15, %v1147_v46  ;;  %v8701_v46 = vld [vmem:[#allocation178_spill] sm:$0xff] }
 0x544   : > { %v3090_v22 = vpop.permute.xlu0 %3089  ;;  %v1155_v23 = vadd.f32 %v8701_v46, %v6202_v16  ;;  %v8706_v46 = vld [vmem:[#allocation232_spill] sm:$0xff] }
 0x545   : > { %v2895_v43 = vadd.f32 %v2831_v50, %v7511_v12  ;;  %v7658_v1 = vmul.f32 %v3090_v22, %v1179_v60  ;;  %v8702_v50 = vld [vmem:[#allocation90_spill] sm:$0xff] }
 0x546   : > { %3489 = vperm.xlu1 %4315, %v7333_v8   ;;  %v836_v22 = vadd.f32 %v8702_v50, %v6195_v18  ;;  %v8707_v50 = vld [vmem:[#allocation85_spill] sm:$0xff] }
 0x547   : > { %v2339_v20 = vpop.permute.xlu1 %2338  ;;  %v7666_v21 = vadd.f32 %v7522_v48, %v2895_v43  ;;  %v1157_v48 = vadd.f32 %v8703_v63, %v6190_v62  ;;  %v8704_v43 = vld [vmem:[#allocation202_spill] sm:$0xff]  ;;  %v812_v63 = vadd.f32 %v8707_v50, %v6195_v18  ;;  %v8713_v50 = vld [vmem:[#allocation183_spill] sm:$0xff] }
 0x548   : > { %v2512_v5 = vmul.f32 %v2339_v20, %v802_v25 }
 0x549   : > { %8700 = vst [vmem:[#allocation55_spill] sm:$0xff] %v7666_v21  ;;  %v2710_v28 = vpop.permute.xlu0 %2709 }
 0x54a   : > { %v2896_v12 = vadd.f32 %v7543_v17, %v2512_v5  ;;  %v7671_v60 = vmul.f32 %v2710_v28, %v1183_v11  ;;  %3497 = vperm.xlu1 %4315, %v7381_v51   ;;  %v8705_v17 = vld [vmem:[#allocation192_spill] sm:$0xff] }
 0x54b   : > { %v1189_v11 = vadd.f32 %v8705_v17, %v6202_v16 }
 0x54c   : > { %v3070_v15 = vpop.permute.xlu1 %3069 }
 0x54d   : > { %v3216_v8 = vmul.f32 %v3070_v15, %v1155_v23 }
 0x54e   : > { %3505 = vperm.xlu1 %4315, %v8704_v43   ;;  %v2374_v25 = vpop.permute.xlu0 %2373 }
 0x54f   : > { %v7679_v56 = vadd.f32 %v3216_v8, %v2896_v12  ;;  %v7681_v20 = vmul.f32 %v2374_v25, %v836_v22  ;;  %v8708_v12 = vld [vmem:[#allocation252_spill] sm:$0xff]  ;;  %v8710_v25 = vld [vmem:[#allocation182_spill] sm:$0xff] }
 0x551   : > { %v2690_v5 = vpop.permute.xlu1 %2689 }
 0x552   : > { %v2833_v51 = vmul.f32 %v2690_v5, %v1157_v48  ;;  %3513 = vperm.xlu1 %4315, %v8706_v46   ;;  %v1165_v48 = vadd.f32 %v8710_v25, %v6202_v16  ;;  %v8715_v25 = vld [vmem:[#allocation197_spill] sm:$0xff] }
 0x553   : > { %v3098_v28 = vpop.permute.xlu0 %3097 }
 0x554   : > { %v2897_v23 = vadd.f32 %v2833_v51, %v7560_v44  ;;  %v7687_v15 = vmul.f32 %v3098_v28, %v1189_v11  ;;  %v8711_v44 = vld [vmem:[#allocation255_spill] sm:$0xff]  ;;  %v8712_v51 = vld [vmem:[#allocation92_spill] sm:$0xff] }
 0x555   : > { %v846_v46 = vadd.f32 %v8712_v51, %v6195_v18  ;;  %v8717_v51 = vld [vmem:[#allocation87_spill] sm:$0xff] }
 0x556   : > { %v2349_v43 = vpop.permute.xlu1 %2348  ;;  %3521 = vperm.xlu1 %4315, %v8708_v12   ;;  %v7693_v22 = vadd.f32 %v7570_v24, %v2897_v23  ;;  %v1167_v12 = vadd.f32 %v8713_v50, %v6190_v62 }
 0x557   : > { %v2514_v8 = vmul.f32 %v2349_v43, %v812_v63  ;;  %v8714_v43 = vld [vmem:[#allocation26_spill] sm:$0xff] }
 0x558   : > { %8709 = vst [vmem:[#allocation218_spill] sm:$0xff] %v7693_v22  ;;  %v7697_v17 = vpop.permute.xlu0 %2717  ;;  %v8716_v22 = vld [vmem:[#allocation27_spill] sm:$0xff] }
 0x559   : > { %v2898_v5 = vadd.f32 %v7593_v57, %v2514_v8  ;;  %v1199_v57 = vadd.f32 %v8715_v25, %v6202_v16 }
 0x55a   : > { %3529 = vperm.xlu1 %4315, %v8711_v44  }
 0x55b   : > { %v3078_v11 = vpop.permute.xlu1 %3077 }
 0x55c   : > { %v3218_v28 = vmul.f32 %v3078_v11, %v1165_v48 }
 0x55d   : > { %v2384_v24 = vpop.permute.xlu0 %2383 }
 0x55e   : > { %v7705_v23 = vadd.f32 %v3218_v28, %v2898_v5  ;;  %v7707_v63 = vmul.f32 %v2384_v24, %v846_v46  ;;  %3537 = vperm.xlu1 %4315, %v8714_v43   ;;  %v822_v5 = vadd.f32 %v8717_v51, %v6195_v18  ;;  %v7718_v28 = vpop.f32.mrb[158].mxu0 }
 0x55f   : > { %8718 = vst [vmem:[#allocation59_spill] sm:$0xff] %v7718_v28  ;;  %v7723_v24 = vpop.f32.mrb[159].mxu0 }
 0x560   : > { %v2698_v8 = vpop.permute.xlu1 %2697  ;;  %8720 = vst [vmem:[#allocation106_spill] sm:$0xff] %v7723_v24 }
 0x561   : > { %v2835_v44 = vmul.f32 %v2698_v8, %v1167_v12  ;;  %v8721_v12 = vld [vmem:[#allocation33_spill] sm:$0xff]  ;;  %v8723_v8 = vld [vmem:[#allocation204_spill] sm:$0xff] }
 0x562   : > { %3545 = vperm.xlu1 %4315, %v8716_v22   ;;  %v3106_v37 = vpop.permute.xlu0 %3105  ;;  %v8722_v22 = vld [vmem:[#allocation186_spill] sm:$0xff] }
 0x563   : > { %v2899_v48 = vadd.f32 %v2835_v44, %v7607_v41  ;;  %v7714_v11 = vmul.f32 %v3106_v37, %v1199_v57  ;;  %v1175_v25 = vadd.f32 %v8722_v22, %v6202_v16  ;;  %v8724_v44 = vld [vmem:[#allocation94_spill] sm:$0xff]  ;;  %v8726_v22 = vld [vmem:[#allocation201_spill] sm:$0xff] }
 0x564   : > { %v856_v51 = vadd.f32 %v8724_v44, %v6195_v18  ;;  %v1209_v24 = vadd.f32 %v8726_v22, %v6202_v16 }
 0x565   : > { %v2359_v46 = vpop.permute.xlu1 %2358  ;;  %v7721_v50 = vadd.f32 %v7618_v6, %v2899_v48  ;;  %v8725_v48 = vld [vmem:[#allocation187_spill] sm:$0xff] }
 0x566   : > { %v2516_v43 = vmul.f32 %v2359_v46, %v822_v5  ;;  %3553 = vperm.xlu1 %4315, %v8721_v12   ;;  %v1177_v28 = vadd.f32 %v8725_v48, %v6190_v62  ;;  %v8728_v48 = vld [vmem:[#allocation190_spill] sm:$0xff] }
 0x567   : > { %8719 = vst [vmem:[#allocation221_spill] sm:$0xff] %v7721_v50  ;;  %v7728_v41 = vpop.permute.xlu0 %2725 }
 0x568   : > { %v2900_v37 = vadd.f32 %v7641_v10, %v2516_v43 }
 0x56a   : > { %v3086_v57 = vpop.permute.xlu1 %3085  ;;  %3561 = vperm.xlu1 %4315, %v8723_v8  }
 0x56b   : > { %v3220_v6 = vmul.f32 %v3086_v57, %v1175_v25  ;;  %v8727_v25 = vld [vmem:[#allocation89_spill] sm:$0xff] }
 0x56c   : > { %v2394_v5 = vpop.permute.xlu0 %2393  ;;  %v832_v57 = vadd.f32 %v8727_v25, %v6195_v18  ;;  %v1446_v25 = vadd.f32 %v7420_v7, %v6214_v40 }
 0x56d   : > { %v7736_v46 = vadd.f32 %v3220_v6, %v2900_v37  ;;  %v7738_v12 = vmul.f32 %v2394_v5, %v856_v51  ;;  %v1430_v37 = vadd.f32 %v6868_v39, %v6214_v40  ;;  %v1438_v5 = vadd.f32 %v7425_v59, %v6214_v40 }
 0x56f   : > { %v2706_v50 = vpop.permute.xlu1 %2705 }
 0x570   : > { %v2837_v10 = vmul.f32 %v2706_v50, %v1177_v28  ;;  %v1185_v28 = vadd.f32 %v8728_v48, %v6202_v16  ;;  %v1454_v48 = vadd.f32 %v7449_v33, %v6214_v40 }
 0x571   : > { %v3114_v43 = vpop.permute.xlu0 %3113 }
 0x572   : > { %v2901_v8 = vadd.f32 %v2837_v10, %v7652_v38  ;;  %v7743_v21 = vmul.f32 %v3114_v43, %v1209_v24 }
 0x574   : > { %v2369_v44 = vpop.permute.xlu1 %2368  ;;  %v7750_v51 = vadd.f32 %v7658_v1, %v2901_v8  ;;  %v8729_v1 = vld [vmem:[#allocation191_spill] sm:$0xff] }
 0x575   : > { %v2518_v6 = vmul.f32 %v2369_v44, %v832_v57  ;;  %v1187_v8 = vadd.f32 %v8729_v1, %v6190_v62 }
 0x576   : > { %v3414_v50 = vpop.permute.xlu0 %3413 }
 0x577   : > { %v2902_v38 = vadd.f32 %v7671_v60, %v2518_v6  ;;  %v3590_v24 = vmul.f32 %v3414_v50, %v1430_v37 }
 0x579   : > { %v3654_v22 = vadd.f32 %v3590_v24, %v7455_v30  ;;  %v3094_v10 = vpop.permute.xlu1 %3093 }
 0x57a   : > { %v3222_v39 = vmul.f32 %v3094_v10, %v1185_v28  ;;  %v3422_v43 = vpop.permute.xlu0 %3421  ;;  %v8730_v28 = vld [vmem:[#allocation194_spill] sm:$0xff] }
 0x57b   : > { %3718 = vst [vmem:[%s6231_s10 + $0xd0] sm:$0xff] %v3654_v22  ;;  %v3592_v57 = vmul.f32 %v3422_v43, %v1438_v5  ;;  %v1193_v50 = vadd.f32 %v8730_v28, %v6190_v62  ;;  %v1462_v22 = vadd.f32 %v7445_v52, %v6214_v40  ;;  %v1470_v52 = vadd.f32 %v7483_v29, %v6214_v40 }
 0x57c   : > { %v7763_v44 = vadd.f32 %v3222_v39, %v2902_v38  ;;  %v8731_v38 = vld [vmem:[#allocation91_spill] sm:$0xff] }
 0x57d   : > { %v3656_v60 = vadd.f32 %v3592_v57, %v7509_v54  ;;  %v842_v5 = vadd.f32 %v8731_v38, %v6195_v18  ;;  %v2840_v43 = vmul.f32 %v7697_v17, %v1193_v50  ;;  %v8733_v17 = vld [vmem:[#allocation196_spill] sm:$0xff]  ;;  %v8734_v38 = vld [vmem:[#allocation198_spill] sm:$0xff] }
 0x57e   : > { %v2714_v37 = vpop.permute.xlu1 %2713  ;;  %v3430_v59 = vpop.permute.xlu0 %3429 }
 0x57f   : > { %3720 = vst [vmem:[%s6231_s10 + $0xe0] sm:$0xff] %v3656_v60  ;;  %v2839_v30 = vmul.f32 %v2714_v37, %v1187_v8  ;;  %v3594_v6 = vmul.f32 %v3430_v59, %v1446_v25 }
 0x581   : > { %v2903_v24 = vadd.f32 %v2839_v30, %v7681_v20  ;;  %v3658_v7 = vadd.f32 %v3594_v6, %v7558_v49  ;;  %v8732_v20 = vld [vmem:[#allocation195_spill] sm:$0xff]  ;;  %v1197_v30 = vadd.f32 %v8733_v17, %v6190_v62 }
 0x582   : > { %v3438_v54 = vpop.permute.xlu0 %3437  ;;  %v1195_v49 = vadd.f32 %v8732_v20, %v6202_v16 }
 0x583   : > { %3722 = vst [vmem:[%s6231_s10 + $0xf0] sm:$0xff] %v3658_v7  ;;  %v3596_v10 = vmul.f32 %v3438_v54, %v1454_v48  ;;  %v2379_v39 = vpop.permute.xlu1 %2378  ;;  %v7779_v33 = vadd.f32 %v7687_v15, %v2903_v24  ;;  %v1486_v54 = vadd.f32 %v7507_v13, %v6214_v40 }
 0x584   : > { %v2520_v1 = vmul.f32 %v2379_v39, %v842_v5 }
 0x585   : > { %v3660_v8 = vadd.f32 %v3596_v10, %v7605_v2  ;;  %v1478_v2 = vadd.f32 %v7477_v36, %v6214_v40  ;;  %v8735_v36 = vld [vmem:[#allocation93_spill] sm:$0xff] }
 0x586   : > { %v2904_v25 = vadd.f32 %v2840_v43, %v2520_v1  ;;  %v3446_v57 = vpop.permute.xlu0 %3445  ;;  %v852_v10 = vadd.f32 %v8735_v36, %v6195_v18 }
 0x587   : > { %3724 = vst [vmem:[%s6231_s10 + $0x100] sm:$0xff] %v3660_v8  ;;  %v3598_v60 = vmul.f32 %v3446_v57, %v1462_v22 }
 0x588   : > { %v3102_v37 = vpop.permute.xlu1 %3101 }
 0x589   : > { %v3662_v15 = vadd.f32 %v3598_v60, %v7650_v19  ;;  %v3224_v59 = vmul.f32 %v3102_v37, %v1195_v49  ;;  %v1203_v19 = vadd.f32 %v8734_v38, %v6190_v62  ;;  %v1494_v49 = vadd.f32 %v7502_v55, %v6214_v40  ;;  %v8737_v55 = vld [vmem:[#allocation200_spill] sm:$0xff] }
 0x58a   : > { %v3454_v6 = vpop.permute.xlu0 %3453  ;;  %v1207_v37 = vadd.f32 %v8737_v55, %v6190_v62  ;;  %v1518_v62 = vadd.f32 %v7563_v27, %v6214_v40 }
 0x58b   : > { %3726 = vst [vmem:[%s6231_s10 + $0x110] sm:$0xff] %v3662_v15  ;;  %v3288_v48 = vadd.f32 %v3224_v59, %v2904_v25  ;;  %v3600_v28 = vmul.f32 %v3454_v6, %v1470_v52  ;;  %v2842_v20 = vmul.f32 %v7728_v41, %v1203_v19  ;;  %v1502_v41 = vadd.f32 %v7533_v14, %v6214_v40 }
 0x58d   : > { %v3664_v50 = vadd.f32 %v3600_v28, %v7679_v56  ;;  %v2722_v24 = vpop.permute.xlu1 %2721 }
 0x58e   : > { %v2841_v7 = vmul.f32 %v2722_v24, %v1197_v30  ;;  %v3462_v29 = vpop.permute.xlu0 %3461 }
 0x58f   : > { %3728 = vst [vmem:[%s6231_s10 + $0x120] sm:$0xff] %v3664_v50  ;;  %v3602_v5 = vmul.f32 %v3462_v29, %v1478_v2 }
 0x590   : > { %v2905_v22 = vadd.f32 %v2841_v7, %v7707_v63  ;;  %v8736_v63 = vld [vmem:[#allocation199_spill] sm:$0xff] }
 0x591   : > { %v3666_v39 = vadd.f32 %v3602_v5, %v7705_v23  ;;  %v1205_v25 = vadd.f32 %v8736_v63, %v6202_v16  ;;  %v1510_v16 = vadd.f32 %v7531_v31, %v6214_v40 }
 0x592   : > { %v2389_v56 = vpop.permute.xlu1 %2388  ;;  %v3470_v43 = vpop.permute.xlu0 %3469  ;;  %v7805_v1 = vadd.f32 %v7714_v11, %v2905_v22 }
 0x593   : > { %3730 = vst [vmem:[%s6231_s10 + $0x130] sm:$0xff] %v3666_v39  ;;  %v2522_v13 = vmul.f32 %v2389_v56, %v852_v10  ;;  %v3604_v8 = vmul.f32 %v3470_v43, %v1486_v54  ;;  %v8739_v39 = vld [vmem:[#allocation11_spill] sm:$0xff]  ;;  %v1457_v43 = vadd.f32 %v7471_v42, %v6214_v40 }
 0x595   : > { %v2906_v18 = vadd.f32 %v2842_v20, %v2522_v13  ;;  %v3668_v23 = vadd.f32 %v3604_v8, %v7736_v46  ;;  %v1542_v13 = vadd.f32 %v7581_v47, %v6214_v40  ;;  %v8740_v8 = vld [vmem:[#allocation203_spill] sm:$0xff]  ;;  %v1465_v47 = vadd.f32 %v7468_v53, %v6214_v40 }
 0x596   : > { %v3478_v57 = vpop.permute.xlu0 %3477 }
 0x597   : > { %3732 = vst [vmem:[%s6231_s10 + $0x140] sm:$0xff] %v3668_v23  ;;  %v3606_v11 = vmul.f32 %v3478_v57, %v1494_v49  ;;  %v3110_v60 = vpop.permute.xlu1 %3109  ;;  %v1550_v23 = vadd.f32 %v7614_v32, %v6214_v40 }
 0x598   : > { %v3226_v52 = vmul.f32 %v3110_v60, %v1205_v25 }
 0x599   : > { %v3670_v15 = vadd.f32 %v3606_v11, %v7763_v44  ;;  %v1433_v44 = vadd.f32 %v7034_v34, %v6214_v40  ;;  %v8738_v34 = vld [vmem:[#allocation6_spill] sm:$0xff]  ;;  %v8741_v11 = vld [vmem:[#allocation99_spill] sm:$0xff] }
 0x59a   : > { %v3290_v59 = vadd.f32 %v3226_v52, %v2906_v18  ;;  %v3486_v17 = vpop.permute.xlu0 %3485 }
 0x59b   : > { %3734 = vst [vmem:[%s6231_s10 + $0x150] sm:$0xff] %v3670_v15  ;;  %v3608_v46 = vmul.f32 %v3486_v17, %v1502_v41  ;;  %v1473_v41 = vadd.f32 %v7498_v4, %v6214_v40  ;;  %v8744_v17 = vld [vmem:[#allocation102_spill] sm:$0xff] }
 0x59c   : > { %v2730_v30 = vpop.permute.xlu1 %2729 }
 0x59d   : > { %v3672_v6 = vadd.f32 %v3608_v46, %v3288_v48  ;;  %v2843_v2 = vmul.f32 %v2730_v30, %v1207_v37  ;;  %v1441_v48 = vadd.f32 %v7443_v61, %v6214_v40  ;;  %v1534_v61 = vadd.f32 %v7587_v26, %v6214_v40  ;;  %v8742_v37 = vld [vmem:[#allocation103_spill] sm:$0xff] }
 0x59e   : > { %v3494_v28 = vpop.permute.xlu0 %3493  ;;  %v1558_v15 = vadd.f32 %v8742_v37, %v6214_v40 }
 0x59f   : > { %3736 = vst [vmem:[%s6231_s10 + $0x160] sm:$0xff] %v3672_v6  ;;  %v2907_v14 = vadd.f32 %v2843_v2, %v7738_v12  ;;  %v3610_v50 = vmul.f32 %v3494_v28, %v1510_v16  ;;  %v1526_v12 = vadd.f32 %v7556_v58, %v6214_v40  ;;  %v1449_v58 = vadd.f32 %v7441_v3, %v6214_v40  ;;  %v8745_v6 = vld [vmem:[#allocation104_spill] sm:$0xff]  ;;  %v8746_v28 = vld [vmem:[#allocation215_spill] sm:$0xff] }
 0x5a0   : > { %v1566_v2 = vadd.f32 %v8745_v6, %v6214_v40  ;;  %v8764_v6 = vld [vmem:[#allocation223_spill] sm:$0xff] }
 0x5a1   : > { %v3674_v24 = vadd.f32 %v3610_v50, %v3290_v59  ;;  %v3418_v31 = vpop.permute.xlu1 %3417  ;;  %v7830_v7 = vadd.f32 %v7743_v21, %v2907_v14  ;;  %v8743_v59 = vld [vmem:[#allocation55_spill] sm:$0xff]  ;;  %v1481_v14 = vadd.f32 %v8746_v28, %v6214_v40  ;;  %v8747_v50 = vld [vmem:[#allocation218_spill] sm:$0xff] }
 0x5a2   : > { %v3591_v29 = vmul.f32 %v3418_v31, %v1433_v44  ;;  %v3502_v38 = vpop.permute.xlu0 %3501  ;;  %v8748_v44 = vld [vmem:[#allocation34_spill] sm:$0xff] }
 0x5a3   : > { %3738 = vst [vmem:[%s6231_s10 + $0x170] sm:$0xff] %v3674_v24  ;;  %v3612_v27 = vmul.f32 %v3502_v38, %v1518_v62 }
 0x5a4   : > { %v3655_v19 = vadd.f32 %v3591_v29, %v7486_v9 }
 0x5a5   : > { %v3676_v5 = vadd.f32 %v3612_v27, %v8738_v34  ;;  %v3426_v54 = vpop.permute.xlu1 %3425  ;;  %v8750_v27 = vld [vmem:[#allocation19_spill] sm:$0xff] }
 0x5a6   : > { %3719 = vst [vmem:[%s6231_s10 + $0xd8] sm:$0xff] %v3655_v19  ;;  %v3593_v21 = vmul.f32 %v3426_v54, %v1441_v48  ;;  %v3510_v22 = vpop.permute.xlu0 %3509  ;;  %v8749_v48 = vld [vmem:[#allocation47_spill] sm:$0xff]  ;;  %v1574_v19 = vadd.f32 %v8750_v27, %v6214_v40  ;;  %v8768_v27 = vld [vmem:[#allocation106_spill] sm:$0xff] }
 0x5a7   : > { %3740 = vst [vmem:[%s6231_s10 + $0x180] sm:$0xff] %v3676_v5  ;;  %v3614_v36 = vmul.f32 %v3510_v22, %v1526_v12  ;;  %v1489_v29 = vadd.f32 %v8749_v48, %v6214_v40  ;;  %v8751_v5 = vld [vmem:[#allocation221_spill] sm:$0xff] }
 0x5a8   : > { %v3657_v10 = vadd.f32 %v3593_v21, %v7536_v35  ;;  %v8752_v21 = vld [vmem:[#allocation95_spill] sm:$0xff]  ;;  %v8767_v48 = vld [vmem:[#allocation17_spill] sm:$0xff] }
 0x5a9   : > { %v3678_v9 = vadd.f32 %v3614_v36, %v8739_v39  ;;  %v3434_v56 = vpop.permute.xlu1 %3433  ;;  %v8753_v39 = vld [vmem:[#allocation217_spill] sm:$0xff] }
 0x5aa   : > { %3721 = vst [vmem:[%s6231_s10 + $0xe8] sm:$0xff] %v3657_v10  ;;  %v3595_v20 = vmul.f32 %v3434_v56, %v1449_v58  ;;  %v3518_v49 = vpop.permute.xlu0 %3517 }
 0x5ab   : > { %3742 = vst [vmem:[%s6231_s10 + $0x190] sm:$0xff] %v3678_v9  ;;  %v3616_v26 = vmul.f32 %v3518_v49, %v1534_v61  ;;  %v1497_v9 = vadd.f32 %v8753_v39, %v6214_v40 }
 0x5ac   : > { %v3659_v3 = vadd.f32 %v3595_v20, %v7584_v0 }
 0x5ad   : > { %v3680_v35 = vadd.f32 %v3616_v26, %v8740_v8  ;;  %v3442_v63 = vpop.permute.xlu1 %3441 }
 0x5ae   : > { %3723 = vst [vmem:[%s6231_s10 + $0xf8] sm:$0xff] %v3659_v3  ;;  %v3597_v25 = vmul.f32 %v3442_v63, %v1457_v43  ;;  %v3526_v18 = vpop.permute.xlu0 %3525  ;;  %v8754_v43 = vld [vmem:[#allocation45_spill] sm:$0xff] }
 0x5af   : > { %3744 = vst [vmem:[%s6231_s10 + $0x1a0] sm:$0xff] %v3680_v35  ;;  %v3618_v42 = vmul.f32 %v3526_v18, %v1542_v13  ;;  %v8755_v13 = vld [vmem:[#allocation51_spill] sm:$0xff] }
 0x5b0   : > { %v3661_v57 = vadd.f32 %v3597_v25, %v7629_v45  ;;  %v1505_v26 = vadd.f32 %v8755_v13, %v6214_v40  ;;  %v8756_v25 = vld [vmem:[#allocation214_spill] sm:$0xff] }
 0x5b1   : > { %v3682_v0 = vadd.f32 %v3618_v42, %v8741_v11  ;;  %v3450_v60 = vpop.permute.xlu1 %3449  ;;  %v1513_v18 = vadd.f32 %v8756_v25, %v6214_v40 }
 0x5b2   : > { %3725 = vst [vmem:[%s6231_s10 + $0x108] sm:$0xff] %v3661_v57  ;;  %v3599_v52 = vmul.f32 %v3450_v60, %v1465_v47  ;;  %v3534_v55 = vpop.permute.xlu0 %3533  ;;  %v8758_v60 = vld [vmem:[#allocation216_spill] sm:$0xff] }
 0x5b3   : > { %3746 = vst [vmem:[%s6231_s10 + $0x1b0] sm:$0xff] %v3682_v0  ;;  %v3620_v32 = vmul.f32 %v3534_v55, %v1550_v23  ;;  %v8757_v23 = vld [vmem:[#allocation50_spill] sm:$0xff] }
 0x5b4   : > { %v3663_v53 = vadd.f32 %v3599_v52, %v8743_v59  ;;  %v1521_v47 = vadd.f32 %v8757_v23, %v6214_v40  ;;  %v8759_v52 = vld [vmem:[#allocation8_spill] sm:$0xff]  ;;  %v8761_v59 = vld [vmem:[#allocation235_spill] sm:$0xff] }
 0x5b5   : > { %v3684_v45 = vadd.f32 %v3620_v32, %v8744_v17  ;;  %v3458_v16 = vpop.permute.xlu1 %3457 }
 0x5b6   : > { %3727 = vst [vmem:[%s6231_s10 + $0x118] sm:$0xff] %v3663_v53  ;;  %v3601_v46 = vmul.f32 %v3458_v16, %v1473_v41  ;;  %v3542_v30 = vpop.permute.xlu0 %3541  ;;  %v1529_v41 = vadd.f32 %v8758_v60, %v6214_v40 }
 0x5b7   : > { %3748 = vst [vmem:[%s6231_s10 + $0x1c0] sm:$0xff] %v3684_v45  ;;  %v3622_v4 = vmul.f32 %v3542_v30, %v1558_v15  ;;  %v8762_v45 = vld [vmem:[#allocation53_spill] sm:$0xff] }
 0x5b8   : > { %v3665_v62 = vadd.f32 %v3601_v46, %v8747_v50  ;;  %v1545_v16 = vadd.f32 %v8762_v45, %v6214_v40  ;;  %v8763_v46 = vld [vmem:[#allocation209_spill] sm:$0xff] }
 0x5b9   : > { %v3686_v24 = vadd.f32 %v3622_v4, %v8748_v44  ;;  %v3466_v31 = vpop.permute.xlu1 %3465 }
 0x5ba   : > { %3729 = vst [vmem:[%s6231_s10 + $0x128] sm:$0xff] %v3665_v62  ;;  %v3603_v38 = vmul.f32 %v3466_v31, %v1481_v14  ;;  %v3550_v12 = vpop.permute.xlu0 %3549  ;;  %v8765_v14 = vld [vmem:[#allocation35_spill] sm:$0xff] }
 0x5bb   : > { %3750 = vst [vmem:[%s6231_s10 + $0x1d0] sm:$0xff] %v3686_v24  ;;  %v3624_v34 = vmul.f32 %v3550_v12, %v1566_v2  ;;  %v1553_v2 = vadd.f32 %v8764_v6, %v6214_v40  ;;  %v8766_v24 = vld [vmem:[#allocation18_spill] sm:$0xff] }
 0x5bc   : > { %v3667_v54 = vadd.f32 %v3603_v38, %v8751_v5  ;;  %v1561_v31 = vadd.f32 %v8766_v24, %v6214_v40 }
 0x5bd   : > { %v3688_v22 = vadd.f32 %v3624_v34, %v8752_v21  ;;  %v3474_v36 = vpop.permute.xlu1 %3473  ;;  %v8769_v34 = vld [vmem:[#allocation210_spill] sm:$0xff] }
 0x5be   : > { %3731 = vst [vmem:[%s6231_s10 + $0x138] sm:$0xff] %v3667_v54  ;;  %v3605_v61 = vmul.f32 %v3474_v36, %v1489_v29  ;;  %v3558_v58 = vpop.permute.xlu0 %3557 }
 0x5bf   : > { %3752 = vst [vmem:[%s6231_s10 + $0x1e0] sm:$0xff] %v3688_v22  ;;  %v3626_v10 = vmul.f32 %v3558_v58, %v1574_v19  ;;  %v1569_v19 = vadd.f32 %v8768_v27, %v6214_v40  ;;  %v8770_v22 = vld [vmem:[#allocation59_spill] sm:$0xff] }
 0x5c0   : > { %v3669_v56 = vadd.f32 %v3605_v61, %v7750_v51  ;;  %v1577_v36 = vadd.f32 %v8770_v22, %v6214_v40  ;;  %v8771_v61 = vld [vmem:[#allocation212_spill] sm:$0xff] }
 0x5c1   : > { %v3690_v20 = vadd.f32 %v3626_v10, %v8754_v43  ;;  %v3482_v49 = vpop.permute.xlu1 %3481 }
 0x5c2   : > { %3733 = vst [vmem:[%s6231_s10 + $0x148] sm:$0xff] %v3669_v56  ;;  %v3607_v3 = vmul.f32 %v3482_v49, %v1497_v9  ;;  %v8772_v9 = vld [vmem:[#allocation46_spill] sm:$0xff] }
 0x5c3   : > { %3754 = vst [vmem:[%s6231_s10 + $0x1f0] sm:$0xff] %v3690_v20 }
 0x5c4   : > { %v3671_v8 = vadd.f32 %v3607_v3, %v7779_v33 }
 0x5c5   : > { %v3490_v35 = vpop.permute.xlu1 %3489 }
 0x5c6   : > { %3735 = vst [vmem:[%s6231_s10 + $0x158] sm:$0xff] %v3671_v8  ;;  %v3609_v63 = vmul.f32 %v3490_v35, %v1505_v26 }
 0x5c8   : > { %v3673_v51 = vadd.f32 %v3609_v63, %v7805_v1  ;;  %v8760_v1 = vld [vmem:[#allocation219_spill] sm:$0xff] }
 0x5c9   : > { %v3498_v42 = vpop.permute.xlu1 %3497  ;;  %v1537_v15 = vadd.f32 %v8760_v1, %v6214_v40 }
 0x5ca   : > { %3737 = vst [vmem:[%s6231_s10 + $0x168] sm:$0xff] %v3673_v51  ;;  %v3611_v57 = vmul.f32 %v3498_v42, %v1513_v18 }
 0x5cc   : > { %v3675_v11 = vadd.f32 %v3611_v57, %v7830_v7 }
 0x5cd   : > { %v3506_v0 = vpop.permute.xlu1 %3505 }
 0x5ce   : > { %3739 = vst [vmem:[%s6231_s10 + $0x178] sm:$0xff] %v3675_v11  ;;  %v3613_v33 = vmul.f32 %v3506_v0, %v1521_v47 }
 0x5d0   : > { %v3677_v55 = vadd.f32 %v3613_v33, %v8759_v52 }
 0x5d1   : > { %v3514_v37 = vpop.permute.xlu1 %3513 }
 0x5d2   : > { %3741 = vst [vmem:[%s6231_s10 + $0x188] sm:$0xff] %v3677_v55  ;;  %v3615_v32 = vmul.f32 %v3514_v37, %v1529_v41 }
 0x5d4   : > { %v3679_v53 = vadd.f32 %v3615_v32, %v8761_v59 }
 0x5d5   : > { %v3522_v17 = vpop.permute.xlu1 %3521 }
 0x5d6   : > { %3743 = vst [vmem:[%s6231_s10 + $0x198] sm:$0xff] %v3679_v53  ;;  %v3617_v7 = vmul.f32 %v3522_v17, %v1537_v15 }
 0x5d8   : > { %v3681_v30 = vadd.f32 %v3617_v7, %v8763_v46 }
 0x5d9   : > { %v3530_v4 = vpop.permute.xlu1 %3529 }
 0x5da   : > { %3745 = vst [vmem:[%s6231_s10 + $0x1a8] sm:$0xff] %v3681_v30  ;;  %v3619_v28 = vmul.f32 %v3530_v4, %v1545_v16 }
 0x5dc   : > { %v3683_v50 = vadd.f32 %v3619_v28, %v8765_v14 }
 0x5dd   : > { %v3538_v62 = vpop.permute.xlu1 %3537 }
 0x5de   : > { %3747 = vst [vmem:[%s6231_s10 + $0x1b8] sm:$0xff] %v3683_v50  ;;  %v3621_v44 = vmul.f32 %v3538_v62, %v1553_v2 }
 0x5e0   : > { %v3685_v29 = vadd.f32 %v3621_v44, %v8767_v48 }
 0x5e1   : > { %v3546_v38 = vpop.permute.xlu1 %3545 }
 0x5e2   : > { %3749 = vst [vmem:[%s6231_s10 + $0x1c8] sm:$0xff] %v3685_v29  ;;  %v3623_v12 = vmul.f32 %v3546_v38, %v1561_v31 }
 0x5e4   : > { %v3687_v5 = vadd.f32 %v3623_v12, %v8769_v34 }
 0x5e5   : > { %v3554_v54 = vpop.permute.xlu1 %3553 }
 0x5e6   : > { %3751 = vst [vmem:[%s6231_s10 + $0x1d8] sm:$0xff] %v3687_v5  ;;  %v3625_v21 = vmul.f32 %v3554_v54, %v1569_v19 }
 0x5e8   : > { %v3689_v58 = vadd.f32 %v3625_v21, %v8771_v61 }
 0x5e9   : > { %v3562_v10 = vpop.permute.xlu1 %3561 }
 0x5ea   : > { %3753 = vst [vmem:[%s6231_s10 + $0x1e8] sm:$0xff] %v3689_v58  ;;  %v3627_v39 = vmul.f32 %v3562_v10, %v1577_v36 }
 0x5ec   : > { %v3691_v56 = vadd.f32 %v3627_v39, %v8772_v9 }
 0x5ee   : > { %3755 = vst [vmem:[%s6231_s10 + $0x1f8] sm:$0xff] %v3691_v56 }
 0x5ef   : > { %4640 = shalt.err (!%p4637_p3)
}
 0x5f0   : > { %s4641_s29 = scalar_lea.hbm %s7940_s24, 8192  ;;  %s4645_s5 = scalar_lea.hbm %s7992_s3, 16384 }
 0x5f1   : > { %p4642_p4 = scmp.ne.s32.totalorder %s7940_s24, %s4641_s29  ;;  %p4646_p9 = scmp.lt.u32.totalorder %s7940_s24, %s7992_s3 }
 0x5f2   : > { %p4647_p10 = scmp.lt.u32.totalorder %s4645_s5, %s4641_s29  ;;  %p4649_p12 = scmp.lt.u32.totalorder %s4641_s29, %s7940_s24 }
 0x5f3   : > { %p4643_p7 = pnand %p4642_p4, %p4756_p5 }
 0x5f4   : > { %p4648_p11 = por %p4647_p10, %p4646_p9 }
 0x5f5   : > { %p4644_p8 = pneg %p4643_p7 }
 0x5f6   : > { %p4650_p13 = por %p4649_p12, %p4648_p11 }
 0x5f8   : > { %p4651_p0 = pnand %p4650_p13, %p4644_p8 }
 0x5fa   : > { %4654 = shalt.err (!%p4651_p0)
}
 0x5fb   : > { %s4696_s8 = smov 128   ;;  %s4697_s9 = smov 8  }
 0x5fc   : > { %4089 = dma.vmem_to_hbm [thread:$0]  (%p4756_p5), %s7942_s17, 8192, %s7940_s24, %s7948_s25, %s4696_s8, %s4696_s8, %s4697_s9  }
 0x5fd PF: > { %p4095_p1 = scmp.ge.s32.totalorder %s4689_s15, 2  ;;  %s3785_s10 = sand.u32 1, %s4677_s12  }
 0x5fe   : > { %s3786_s11 = scalar_lea.sflag [#allocation3], %s3785_s10 }
 0x5ff   : > { %p4092_p2 = pnand %p4095_p1, %p4760_p6 }
 0x601   : > { %4672 = dma.done.wait (!%p4092_p2), %s3786_s11, 8192  }
 0x602   : > { %4674 = vsyncadd (!%p4092_p2), %s3786_s11, 4294959104  ;;  %p13_p3 = scmp.ge.s32.totalorder %s4743_s18, 4   ;;  %s8773_s12 = smov %s4681_s13 }
 0x603   : > { %s8774_s13 = smov %s4685_s14  ;;  %s8775_s14 = smov %s4754_s21 }
 0x604   : > { %s8776_s15 = smov %s4743_s18  ;;  %15 = sbr.rel (!%p13_p3) target bundleno = 3 (0x3), region = 67 }
 0x60b   :  { %3791 = vsyncpa [#allocation3], 1 }
 0x60c   :  { %3793 = vsyncpa [#allocation3 + $0x1], 1 }

</bundles_post_ra>
